<compile_context>
chip_gen: v6e
topology: v6e:2x2x1
jax: 0.10.0
libtpu: 0.0.40
codegen_flags: <defaults>
</compile_context>

<pallas_src>
import jax
import jax.numpy as jnp
from jax.experimental import pallas as pl
from jax.experimental.pallas import tpu as pltpu

EPS = 1e-5  # PyTorch GroupNorm default eps

# TODO(synk): only the module's default configuration is implemented
# (use_GN=True, use_GN_before_sigmoid=True, tanh activation); the optional
# relu / split tanh-sin activations and the no-GroupNorm identity path are
# simple kernel variants but are not wired up here.


def _round_up(n, m):
    return ((n + m - 1) // m) * m


def _vmem_capacity_bytes(default=64 * 1024 * 1024):
    """Physical VMEM of the local TPU; falls back to the smallest current
    generation (v7x, 64 MiB) if the query is unavailable."""
    try:
        info = pltpu.get_tpu_info()
    except Exception:
        return default
    for name in ("vmem_capacity_bytes", "vmem_size_bytes", "vmem_bytes"):
        val = getattr(info, name, None)
        if val:
            return int(val)
    return default


def _lane_col(m, i):
    # Column i of a narrow (C, n) tile as (C, 1): mask + lane-reduce instead of
    # an unaligned width-1 lane slice (negligible cost at n <= 3).
    lanes = jax.lax.broadcasted_iota(jnp.int32, (1, m.shape[1]), 1)
    return jnp.sum(jnp.where(lanes == i, m, 0.0), axis=1, keepdims=True)


def _gn_apply_from_sums(h_f32, s1, s2, v, a_mask, scale, n_pix):
    """GroupNorm((h + bias)) * gamma + beta applied to an f32 tile h_f32 (C, Np).

    s1/s2: raw per-channel sums of h / h^2 over the layer's full n_pix pixels
    (f32, (C, 1)).  v: packed per-channel params (C, 3) = [conv bias | gamma |
    beta].  a_mask: exact {0,1} group-membership mask (C, C), or None for
    per-channel groups.  scale: 1/(n_pix*group_size)  (1/n_pix when a_mask is
    None).  The conv bias is folded into the statistics (never added on the
    slab) and the whole normalization collapses to one scale/shift."""
    f32 = jnp.float32
    v = v.astype(f32)
    bias = _lane_col(v, 0)
    gamma = _lane_col(v, 1)
    beta = _lane_col(v, 2)
    # statistics of (h + bias) without materializing the bias add on the slab
    s1b = s1 + n_pix * bias
    s2b = s2 + 2.0 * bias * s1 + n_pix * (bias * bias)
    lane2 = jax.lax.broadcasted_iota(jnp.int32, (1, 2), 1)
    sb = jnp.where(lane2 == 0, s1b, s2b)                   # (C, 2) = [s1b | s2b]
    if a_mask is None:
        ms = sb * scale                                    # per-channel groups
    else:
        # one fused (C, C) @ (C, 2) MXU matmul -> per-channel group E[x], E[x^2]
        ms = jnp.dot(a_mask.astype(f32), sb, preferred_element_type=f32) * scale
    mean_c = _lane_col(ms, 0)
    ex2_c = _lane_col(ms, 1)
    # TODO(synk): E[x^2]-E[x]^2 can cancel for very large activation scales;
    # switch to a shifted variance if the activation scale ever grows.
    inv_c = jax.lax.rsqrt(ex2_c - mean_c * mean_c + EPS)
    a = inv_c * gamma
    shift = beta + (bias - mean_c) * a
    return h_f32 * a + shift


# -----------------------------------------------------------------------------
# Path A: fused single kernel (whole (C, P) slabs; used when VMEM allows)
# -----------------------------------------------------------------------------
def _maskgen_forward_fused(x_nchw, params, n_groups, weight_dtype, act_dtype,
                           vmem_limit):
    f32 = jnp.float32
    B, Cin, H, W = x_nchw.shape
    P = H * W
    hidden = params["w1"].shape[1]
    Cout = params["w4"].shape[1]
    group_size = hidden // n_groups
    inv_pg = 1.0 / float(P * group_size)
    inv_p = 1.0 / float(P)

    # NCHW -> (B, Cin, P): free reshape; pixels stay lane-dense in and out.
    x = x_nchw.reshape(B, Cin, P).astype(act_dtype)
    wts = [params[f"w{i}"].T.astype(weight_dtype) for i in range(1, 5)]
    vecs = [jnp.stack([params[f"b{i}"].reshape(-1),
                       params[f"g{i}"].reshape(-1),
                       params[f"bt{i}"].reshape(-1)], axis=1).astype(f32)
            for i in range(1, 5)]
    gids = jnp.arange(hidden) // group_size
    amat = (gids[:, None] == gids[None, :]).astype(f32)    # exact {0,1} mask

    def kernel(x_ref, wt1, v1, wt2, v2, wt3, v3, wt4, v4, amat_ref, o_ref):
        a_mask = amat_ref[...]

        def conv(w_ref, h):
            # 1x1 conv == (Cout, Cin) @ (Cin, P) on the MXU, f32 accumulation.
            w = w_ref[...]
            if h.dtype != w.dtype:
                h = h.astype(w.dtype)
            return jnp.dot(w, h, preferred_element_type=f32)

        def group_norm(h, v_ref, grouped):
            # NOTE: if profiling shows the VALU slot binding, s1 can be moved
            # onto the MXU as h @ ones((P, 1)); s2 still needs the h*h VPU pass.
            s1 = jnp.sum(h, axis=1, keepdims=True)
            s2 = jnp.sum(h * h, axis=1, keepdims=True)
            if grouped:
                return _gn_apply_from_sums(h, s1, s2, v_ref[...], a_mask, inv_pg, P)
            return _gn_apply_from_sums(h, s1, s2, v_ref[...], None, inv_p, P)

        def act(y):
            # Carry inter-layer activations in act_dtype (bf16 on v6e/v7x):
            # halves the live slab footprint, runs tanh on the bf16 EUP path
            # and feeds the MXU natively; GroupNorm stats / apply stay f32.
            return jnp.tanh(y.astype(act_dtype))

        h = act(group_norm(conv(wt1, x_ref[0]), v1, True))
        h = act(group_norm(conv(wt2, h), v2, True))
        h = act(group_norm(conv(wt3, h), v3, True))
        y = group_norm(conv(wt4, h), v4, False)             # norm4: per-channel
        o_ref[0] = jax.nn.sigmoid(y).astype(o_ref.dtype)    # lane-dense store

    def full_spec(a):
        nd = a.ndim

        def imap(b):
            return (0,) * nd

        return pl.BlockSpec(a.shape, imap)

    args = [x]
    in_specs = [pl.BlockSpec((1, Cin, P), lambda b: (b, 0, 0))]
    for w, v in zip(wts, vecs):
        args += [w, v]
        in_specs += [full_spec(w), full_spec(v)]
    args.append(amat)
    in_specs.append(full_spec(amat))

    out = pl.pallas_call(
        kernel,
        out_shape=jax.ShapeDtypeStruct((B, Cout, P), f32),
        grid_spec=pltpu.PrefetchScalarGridSpec(
            num_scalar_prefetch=0,
            grid=(B,),
            in_specs=in_specs,
            out_specs=pl.BlockSpec((1, Cout, P), lambda b: (b, 0, 0)),
        ),
        compiler_params=pltpu.CompilerParams(
            dimension_semantics=("parallel",),
            vmem_limit_bytes=vmem_limit),
    )(*args)

    # (B, Cout, P) is already NCHW-flattened -> plain reshape, no transpose.
    return out.reshape(B, Cout, H, W)


# -----------------------------------------------------------------------------
# Path B: pixel-tiled two-pass pipeline (bounded VMEM, for large H*W / v7x)
# -----------------------------------------------------------------------------
def _maskgen_forward_tiled(x_nchw, params, n_groups, weight_dtype, act_dtype,
                           tile_pixels, vmem_budget):
    f32 = jnp.float32
    B, Cin, H, W = x_nchw.shape
    P = H * W
    hidden = params["w1"].shape[1]
    Cout = params["w4"].shape[1]
    group_size = hidden // n_groups
    inv_pg = 1.0 / float(P * group_size)

    # Pixel tile: multiple of 128 lanes (prefer >= 512), sized so the per-step
    # working set stays well inside VMEM regardless of H*W.
    if tile_pixels is None:
        cap = max(512, (vmem_budget // (12 * hidden * 4)) // 512 * 512)
        TP = int(min(8192, cap, _round_up(P, 128)))
        TP = max(128, (TP // 128) * 128)
    else:
        TP = max(128, _round_up(int(tile_pixels), 128))
    Ppad = _round_up(P, TP)
    NT = Ppad // TP
    needs_mask = Ppad != P      # padded pixels are excluded from GN statistics

    x = x_nchw.reshape(B, Cin, P)
    if needs_mask:
        x = jnp.pad(x, ((0, 0), (0, 0), (0, Ppad - P)))
    x = x.astype(act_dtype)

    wts = [params[f"w{i}"].T.astype(weight_dtype) for i in range(1, 5)]
    vecs = [jnp.stack([params[f"b{i}"].reshape(-1),
                       params[f"g{i}"].reshape(-1),
                       params[f"bt{i}"].reshape(-1)], axis=1).astype(f32)
            for i in range(1, 5)]
    gids = jnp.arange(hidden) // group_size
    amat = (gids[:, None] == gids[None, :]).astype(f32)     # exact {0,1} mask

    inter_dtype = act_dtype     # raw conv outputs round-tripped through HBM

    est = 12 * hidden * TP * 4 + 5 * hidden * hidden * 4 + (2 << 20)
    vmem_limit = int(min(max(est, 32 << 20), vmem_budget))
    cp_acc = pltpu.CompilerParams(
        dimension_semantics=("parallel", "arbitrary"),  # stats accumulate over tiles
        vmem_limit_bytes=vmem_limit)
    cp_par = pltpu.CompilerParams(
        dimension_semantics=("parallel", "parallel"),
        vmem_limit_bytes=vmem_limit)
    # TODO(synk): with B == 1 on v7x the batch axis leaves one TensorCore idle;
    # reorder the grid to (pixel_tiles, B) with a re-read stats accumulator if
    # that configuration matters.

    def full_spec(a):
        nd = a.ndim

        def imap(b, t):
            return (0,) * nd

        return pl.BlockSpec(a.shape, imap)

    def make_conv_stage_kernel(apply_prev):
        def kernel(*refs):
            if apply_prev:
                (hin_ref, stats_in_ref, v_prev_ref, a_prev_ref, w_ref,
                 hout_ref, stats_out_ref) = refs
            else:
                hin_ref, w_ref, hout_ref, stats_out_ref = refs
            t = pl.program_id(1)
            h_in = hin_ref[0]                                 # (C_in, TP)
            if apply_prev:
                # Apply the previous layer's GroupNorm + tanh; its stats are
                # the raw per-channel sums accumulated by the previous stage.
                sp = stats_in_ref[0]                          # (C_in, 2) f32
                s1 = _lane_col(sp, 0)
                s2 = _lane_col(sp, 1)
                hn = _gn_apply_from_sums(h_in.astype(f32), s1, s2,
                                         v_prev_ref[...], a_prev_ref[...],
                                         inv_pg, P)
                act = jnp.tanh(hn.astype(act_dtype))
            else:
                act = h_in
            w = w_ref[...]
            if act.dtype != w.dtype:
                act = act.astype(w.dtype)
            hc = jnp.dot(w, act, preferred_element_type=f32)  # (C_out, TP) f32
            hout_ref[0] = hc.astype(hout_ref.dtype)

            # Accumulate this layer's per-channel s1/s2 over real pixels only.
            if needs_mask:
                pix = t * TP + jax.lax.broadcasted_iota(jnp.int32, (1, TP), 1)
                hm = jnp.where(pix < P, hc, 0.0)
            else:
                hm = hc
            ts1 = jnp.sum(hm, axis=1, keepdims=True)
            ts2 = jnp.sum(hm * hm, axis=1, keepdims=True)
            lane2 = jax.lax.broadcasted_iota(jnp.int32, (1, 2), 1)
            tile_stats = jnp.where(lane2 == 0, ts1, ts2)      # (C_out, 2)

            @pl.when(t == 0)
            def _init():
                stats_out_ref[0] = tile_stats

            @pl.when(t > 0)
            def _acc():
                stats_out_ref[0] += tile_stats

        return kernel

    def conv_stage(hin, w, stats_prev=None, v_prev=None):
        C_in = hin.shape[1]
        C_out = w.shape[0]
        apply_prev = stats_prev is not None
        args = [hin]
        in_specs = [pl.BlockSpec((1, C_in, TP), lambda b, t: (b, 0, t))]
        if apply_prev:
            args += [stats_prev, v_prev, amat]
            in_specs += [pl.BlockSpec((1, C_in, 2), lambda b, t: (b, 0, 0)),
                         full_spec(v_prev), full_spec(amat)]
        args.append(w)
        in_specs.append(full_spec(w))
        return pl.pallas_call(
            make_conv_stage_kernel(apply_prev),
            out_shape=(jax.ShapeDtypeStruct((B, C_out, Ppad), inter_dtype),
                       jax.ShapeDtypeStruct((B, C_out, 2), f32)),
            grid_spec=pltpu.PrefetchScalarGridSpec(
                num_scalar_prefetch=0,
                grid=(B, NT),
                in_specs=in_specs,
                out_specs=[pl.BlockSpec((1, C_out, TP), lambda b, t: (b, 0, t)),
                           pl.BlockSpec((1, C_out, 2), lambda b, t: (b, 0, 0))]),
            compiler_params=cp_acc,
        )(*args)

    def final_kernel(hin_ref, stats_in_ref, v_ref, out_ref):
        sp = stats_in_ref[0]
        s1 = _lane_col(sp, 0)
        s2 = _lane_col(sp, 1)
        hn = _gn_apply_from_sums(hin_ref[0].astype(f32), s1, s2, v_ref[...],
                                 None, 1.0 / float(P), P)    # norm4: per-channel
        out_ref[0] = jax.nn.sigmoid(hn).astype(out_ref.dtype)

    h1, st1 = conv_stage(x, wts[0])
    h2, st2 = conv_stage(h1, wts[1], st1, vecs[0])
    h3, st3 = conv_stage(h2, wts[2], st2, vecs[1])
    h4, st4 = conv_stage(h3, wts[3], st3, vecs[2])

    out = pl.pallas_call(
        final_kernel,
        out_shape=jax.ShapeDtypeStruct((B, Cout, Ppad), f32),
        grid_spec=pltpu.PrefetchScalarGridSpec(
            num_scalar_prefetch=0,
            grid=(B, NT),
            in_specs=[pl.BlockSpec((1, Cout, TP), lambda b, t: (b, 0, t)),
                      pl.BlockSpec((1, Cout, 2), lambda b, t: (b, 0, 0)),
                      full_spec(vecs[3])],
            out_specs=pl.BlockSpec((1, Cout, TP), lambda b, t: (b, 0, t))),
        compiler_params=cp_par,
    )(h4, st4, vecs[3])

    return out[:, :, :P].reshape(B, Cout, H, W)


# -----------------------------------------------------------------------------
# Public entry point
# -----------------------------------------------------------------------------
def maskgen_forward(x_nchw, params, n_groups=32, weight_dtype=jnp.bfloat16,
                    act_dtype=None, tile_pixels=None, force_tiled=False):
    """maskgen forward: (B, Cin, H, W) f32 -> (B, Cout, H, W) f32.

    weight_dtype / act_dtype are the dtypes fed to the MXU for the conv
    weights / inter-layer activations; GroupNorm statistics, normalization and
    the final sigmoid always run in f32.  Recommended: bf16/bf16 on v6e & v7x,
    bf16/f32 on v5e, f32/f32 for a strict numerics check.

    Dispatch: the fused whole-slab kernel is used whenever its working set
    fits the device VMEM budget (queried, with headroom); otherwise the
    pixel-tiled two-pass pipeline bounds VMEM independent of H*W."""
    if act_dtype is None:
        act_dtype = weight_dtype
    weight_dtype = jnp.dtype(weight_dtype)
    act_dtype = jnp.dtype(act_dtype)

    B, Cin, H, W = x_nchw.shape
    P = H * W
    hidden = params["w1"].shape[1]
    Cout = params["w4"].shape[1]
    assert hidden % n_groups == 0

    # VMEM budget: physical capacity minus ~15% headroom for compiler scratch
    # and double buffers (never a fixed cap that can exceed v7x's 64 MiB).
    budget = int(0.85 * _vmem_capacity_bytes())
    act_b = act_dtype.itemsize
    est_fused = ((5 * 4 + 2 * act_b) * hidden * P            # live f32 + act slabs
                 + 2 * P * (Cin * act_b + Cout * 4)          # double-buffered in/out
                 + 5 * hidden * hidden * 4 + (2 << 20))      # weights / mask / slack
    if force_tiled or est_fused > budget:
        return _maskgen_forward_tiled(x_nchw, params, n_groups, weight_dtype,
                                      act_dtype, tile_pixels, budget)
    vmem_limit = int(min(max(est_fused, 32 << 20), budget))
    return _maskgen_forward_fused(x_nchw, params, n_groups, weight_dtype,
                                  act_dtype, vmem_limit)


def make_params(key, in_channels, out_channels, hidden):
    """Deterministic synthetic parameters (shapes follow maskgen.__init__)."""
    ks = jax.random.split(key, 16)
    p = {}
    dims = [(in_channels, hidden), (hidden, hidden), (hidden, hidden),
            (hidden, out_channels)]
    for i, (cin, cout) in enumerate(dims, start=1):
        p[f"w{i}"] = 0.1 * jax.random.normal(ks[4 * (i - 1) + 0], (cin, cout), jnp.float32)
        p[f"b{i}"] = 0.1 * jax.random.normal(ks[4 * (i - 1) + 1], (1, cout), jnp.float32)
        p[f"g{i}"] = 1.0 + 0.1 * jax.random.normal(ks[4 * (i - 1) + 2], (1, cout), jnp.float32)
        p[f"bt{i}"] = 0.1 * jax.random.normal(ks[4 * (i - 1) + 3], (1, cout), jnp.float32)
    return p


# ---------- pure-JAX reference (for sanity check) ----------
def _gn_ref(x, gamma, beta, n_groups):
    B, P, C = x.shape
    gs = C // n_groups
    xr = x.reshape(B, P, n_groups, gs)
    mean = xr.mean(axis=(1, 3), keepdims=True)
    var = xr.var(axis=(1, 3), keepdims=True)
    xr = (xr - mean) / jnp.sqrt(var + EPS)
    return xr.reshape(B, P, C) * gamma + beta


def maskgen_ref(x_nchw, params, n_groups=32):
    B, Cin, H, W = x_nchw.shape
    x = jnp.transpose(x_nchw, (0, 2, 3, 1)).reshape(B, H * W, Cin)
    h = x @ params["w1"] + params["b1"]
    h = jnp.tanh(_gn_ref(h, params["g1"], params["bt1"], n_groups))
    h = h @ params["w2"] + params["b2"]
    h = jnp.tanh(_gn_ref(h, params["g2"], params["bt2"], n_groups))
    h = h @ params["w3"] + params["b3"]
    h = jnp.tanh(_gn_ref(h, params["g3"], params["bt3"], n_groups))
    y = h @ params["w4"] + params["b4"]
    Cout = y.shape[-1]
    y = _gn_ref(y, params["g4"], params["bt4"], Cout)   # norm4: per-channel groups
    y = jax.nn.sigmoid(y)
    return jnp.transpose(y.reshape(B, H, W, Cout), (0, 3, 1, 2))


if __name__ == "__main__":
    B, Cin, Cout, H, W = 2, 4, 8, 16, 16
    hidden = 128  # must be divisible by n_groups=32

    key = jax.random.PRNGKey(0)
    kx, kx2, kp = jax.random.split(key, 3)
    x = jax.random.normal(kx, (B, Cin, H, W), jnp.float32)
    params = make_params(kp, Cin, Cout, hidden)
    ref = maskgen_ref(x, params)

    # fused kernel, strict f32 path (safe on every TPU generation)
    out = maskgen_forward(x, params, weight_dtype=jnp.float32, act_dtype=jnp.float32)
    jax.block_until_ready(out)
    assert out.shape == (B, Cout, H, W)
    assert jnp.max(jnp.abs(out - ref)) < 1e-3, "fused f32 kernel mismatch vs reference"

    # fused kernel, bf16 weights + bf16 activations (v6e / v7x MXU path);
    # GroupNorm statistics / normalization stay f32.
    out_bf16 = maskgen_forward(x, params, weight_dtype=jnp.bfloat16,
                               act_dtype=jnp.bfloat16)
    jax.block_until_ready(out_bf16)
    assert jnp.max(jnp.abs(out_bf16 - ref)) < 5e-2, "fused bf16 kernel mismatch vs reference"

    # pixel-tiled two-pass path, forced at a small shape whose H*W (=240) is
    # not a multiple of the 128-lane tile: exercises tiling, cross-tile stats
    # accumulation, the pixel-padding mask, and the final crop.
    x2 = jax.random.normal(kx2, (B, Cin, 20, 12), jnp.float32)
    ref2 = maskgen_ref(x2, params)
    out2 = maskgen_forward(x2, params, weight_dtype=jnp.float32,
                           act_dtype=jnp.float32, force_tiled=True,
                           tile_pixels=128)
    jax.block_until_ready(out2)
    assert out2.shape == (B, Cout, 20, 12)
    assert jnp.max(jnp.abs(out2 - ref2)) < 1e-3, "tiled f32 kernel mismatch vs reference"

    print("KERNEL_OK")
</pallas_src>

<mosaic_0001>
module attributes {stable_mosaic.version = 11 : i64} {
  func.func @kernel(%arg0: i32, %arg1: memref<1x4x256xf32, #tpu.memory_space<vmem>>, %arg2: memref<128x4xf32, #tpu.memory_space<vmem>>, %arg3: memref<128x3xf32, #tpu.memory_space<vmem>>, %arg4: memref<128x128xf32, #tpu.memory_space<vmem>>, %arg5: memref<128x3xf32, #tpu.memory_space<vmem>>, %arg6: memref<128x128xf32, #tpu.memory_space<vmem>>, %arg7: memref<128x3xf32, #tpu.memory_space<vmem>>, %arg8: memref<8x128xf32, #tpu.memory_space<vmem>>, %arg9: memref<8x3xf32, #tpu.memory_space<vmem>>, %arg10: memref<128x128xf32, #tpu.memory_space<vmem>>, %arg11: memref<1x8x256xf32, #tpu.memory_space<vmem>>) attributes {dimension_semantics = [#tpu.dimension_semantics<parallel>], iteration_bounds = array<i64: 2>, scalar_prefetch = 0 : i64, scratch_operands = 0 : i64, tpu.core_type = #tpu.core_type<tc>, window_params = [{transform_indices = @transform_0, window_bounds = array<i64: 1, 4, 256>}, {pipeline_mode = #tpu.pipeline_mode<synchronous>, transform_indices = @transform_1, window_bounds = array<i64: 128, 4>}, {pipeline_mode = #tpu.pipeline_mode<synchronous>, transform_indices = @transform_2, window_bounds = array<i64: 128, 3>}, {pipeline_mode = #tpu.pipeline_mode<synchronous>, transform_indices = @transform_3, window_bounds = array<i64: 128, 128>}, {pipeline_mode = #tpu.pipeline_mode<synchronous>, transform_indices = @transform_4, window_bounds = array<i64: 128, 3>}, {pipeline_mode = #tpu.pipeline_mode<synchronous>, transform_indices = @transform_5, window_bounds = array<i64: 128, 128>}, {pipeline_mode = #tpu.pipeline_mode<synchronous>, transform_indices = @transform_6, window_bounds = array<i64: 128, 3>}, {pipeline_mode = #tpu.pipeline_mode<synchronous>, transform_indices = @transform_7, window_bounds = array<i64: 8, 128>}, {pipeline_mode = #tpu.pipeline_mode<synchronous>, transform_indices = @transform_8, window_bounds = array<i64: 8, 3>}, {pipeline_mode = #tpu.pipeline_mode<synchronous>, transform_indices = @transform_9, window_bounds = array<i64: 128, 128>}, {transform_indices = @transform_10, window_bounds = array<i64: 1, 8, 256>}]} {
    %c0 = arith.constant 0 : index
    %c0_0 = arith.constant 0 : index
    %0 = vector.load %arg10[%c0, %c0_0] : memref<128x128xf32, #tpu.memory_space<vmem>>, vector<128x128xf32>
    %c0_1 = arith.constant 0 : index
    %c0_2 = arith.constant 0 : index
    %c0_3 = arith.constant 0 : index
    %1 = vector.load %arg1[%c0_1, %c0_2, %c0_3] : memref<1x4x256xf32, #tpu.memory_space<vmem>>, vector<1x4x256xf32>
    %2 = vector.shape_cast %1 : vector<1x4x256xf32> to vector<4x256xf32>
    %c0_4 = arith.constant 0 : index
    %c0_5 = arith.constant 0 : index
    %3 = vector.load %arg2[%c0_4, %c0_5] : memref<128x4xf32, #tpu.memory_space<vmem>>, vector<128x4xf32>
    %cst = arith.constant dense<0.000000e+00> : vector<128x256xf32>
    %4 = tpu.matmul %3, %2, %cst {dimension_numbers = #tpu.dot_dimension_numbers<[1], [0], [0], [1], [0, 0, 1, 1], [], []>} : vector<128x4xf32>, vector<4x256xf32>, vector<128x256xf32> -> vector<128x256xf32>
    %cst_6 = arith.constant dense<0.000000e+00> : vector<128xf32>
    %5 = vector.multi_reduction <add>, %4, %cst_6 [1] : vector<128x256xf32> to vector<128xf32>
    %6 = vector.shape_cast %5 : vector<128xf32> to vector<128x1xf32>
    %7 = arith.mulf %4, %4 : vector<128x256xf32>
    %cst_7 = arith.constant dense<0.000000e+00> : vector<128xf32>
    %8 = vector.multi_reduction <add>, %7, %cst_7 [1] : vector<128x256xf32> to vector<128xf32>
    %9 = vector.shape_cast %8 : vector<128xf32> to vector<128x1xf32>
    %c0_8 = arith.constant 0 : index
    %c0_9 = arith.constant 0 : index
    %10 = vector.load %arg3[%c0_8, %c0_9] : memref<128x3xf32, #tpu.memory_space<vmem>>, vector<128x3xf32>
    %11 = tpu.iota {dimensions = array<i32: 1>} : vector<1x3xi32>
    %c0_i32 = arith.constant 0 : i32
    %12 = vector.broadcast %c0_i32 : i32 to vector<1x3xi32>
    %13 = arith.cmpi eq, %11, %12 : vector<1x3xi32>
    %cst_10 = arith.constant 0.000000e+00 : f32
    %14 = vector.shape_cast %13 : vector<1x3xi1> to vector<1x3xi1>
    %15 = vector.broadcast %14 : vector<1x3xi1> to vector<128x3xi1>
    %16 = vector.broadcast %cst_10 : f32 to vector<128x3xf32>
    %17 = arith.select %15, %10, %16 : vector<128x3xi1>, vector<128x3xf32>
    %cst_11 = arith.constant dense<0.000000e+00> : vector<128xf32>
    %18 = vector.multi_reduction <add>, %17, %cst_11 [1] : vector<128x3xf32> to vector<128xf32>
    %19 = vector.shape_cast %18 : vector<128xf32> to vector<128x1xf32>
    %20 = tpu.iota {dimensions = array<i32: 1>} : vector<1x3xi32>
    %c1_i32 = arith.constant 1 : i32
    %21 = vector.broadcast %c1_i32 : i32 to vector<1x3xi32>
    %22 = arith.cmpi eq, %20, %21 : vector<1x3xi32>
    %cst_12 = arith.constant 0.000000e+00 : f32
    %23 = vector.shape_cast %22 : vector<1x3xi1> to vector<1x3xi1>
    %24 = vector.broadcast %23 : vector<1x3xi1> to vector<128x3xi1>
    %25 = vector.broadcast %cst_12 : f32 to vector<128x3xf32>
    %26 = arith.select %24, %10, %25 : vector<128x3xi1>, vector<128x3xf32>
    %cst_13 = arith.constant dense<0.000000e+00> : vector<128xf32>
    %27 = vector.multi_reduction <add>, %26, %cst_13 [1] : vector<128x3xf32> to vector<128xf32>
    %28 = vector.shape_cast %27 : vector<128xf32> to vector<128x1xf32>
    %29 = tpu.iota {dimensions = array<i32: 1>} : vector<1x3xi32>
    %c2_i32 = arith.constant 2 : i32
    %30 = vector.broadcast %c2_i32 : i32 to vector<1x3xi32>
    %31 = arith.cmpi eq, %29, %30 : vector<1x3xi32>
    %cst_14 = arith.constant 0.000000e+00 : f32
    %32 = vector.shape_cast %31 : vector<1x3xi1> to vector<1x3xi1>
    %33 = vector.broadcast %32 : vector<1x3xi1> to vector<128x3xi1>
    %34 = vector.broadcast %cst_14 : f32 to vector<128x3xf32>
    %35 = arith.select %33, %10, %34 : vector<128x3xi1>, vector<128x3xf32>
    %cst_15 = arith.constant dense<0.000000e+00> : vector<128xf32>
    %36 = vector.multi_reduction <add>, %35, %cst_15 [1] : vector<128x3xf32> to vector<128xf32>
    %37 = vector.shape_cast %36 : vector<128xf32> to vector<128x1xf32>
    %cst_16 = arith.constant 2.560000e+02 : f32
    %38 = vector.broadcast %cst_16 : f32 to vector<128x1xf32>
    %39 = arith.mulf %38, %19 : vector<128x1xf32>
    %40 = arith.addf %6, %39 : vector<128x1xf32>
    %cst_17 = arith.constant 2.000000e+00 : f32
    %41 = vector.broadcast %cst_17 : f32 to vector<128x1xf32>
    %42 = arith.mulf %41, %19 : vector<128x1xf32>
    %43 = arith.mulf %42, %6 : vector<128x1xf32>
    %44 = arith.addf %9, %43 : vector<128x1xf32>
    %45 = arith.mulf %19, %19 : vector<128x1xf32>
    %cst_18 = arith.constant 2.560000e+02 : f32
    %46 = vector.broadcast %cst_18 : f32 to vector<128x1xf32>
    %47 = arith.mulf %46, %45 : vector<128x1xf32>
    %48 = arith.addf %44, %47 : vector<128x1xf32>
    %49 = tpu.iota {dimensions = array<i32: 1>} : vector<1x2xi32>
    %c0_i32_19 = arith.constant 0 : i32
    %50 = vector.broadcast %c0_i32_19 : i32 to vector<1x2xi32>
    %51 = arith.cmpi eq, %49, %50 : vector<1x2xi32>
    %52 = vector.shape_cast %51 : vector<1x2xi1> to vector<1x2xi1>
    %53 = vector.broadcast %52 : vector<1x2xi1> to vector<128x2xi1>
    %54 = vector.shape_cast %40 : vector<128x1xf32> to vector<128x1xf32>
    %55 = vector.broadcast %54 : vector<128x1xf32> to vector<128x2xf32>
    %56 = vector.shape_cast %48 : vector<128x1xf32> to vector<128x1xf32>
    %57 = vector.broadcast %56 : vector<128x1xf32> to vector<128x2xf32>
    %58 = arith.select %53, %55, %57 : vector<128x2xi1>, vector<128x2xf32>
    %cst_20 = arith.constant dense<0.000000e+00> : vector<128x2xf32>
    %59 = tpu.matmul %0, %58, %cst_20 {dimension_numbers = #tpu.dot_dimension_numbers<[1], [0], [0], [1], [0, 0, 1, 1], [], []>} : vector<128x128xf32>, vector<128x2xf32>, vector<128x2xf32> -> vector<128x2xf32>
    %cst_21 = arith.constant 9.765625E-4 : f32
    %60 = vector.broadcast %cst_21 : f32 to vector<128x2xf32>
    %61 = arith.mulf %59, %60 : vector<128x2xf32>
    %62 = tpu.iota {dimensions = array<i32: 1>} : vector<1x2xi32>
    %c0_i32_22 = arith.constant 0 : i32
    %63 = vector.broadcast %c0_i32_22 : i32 to vector<1x2xi32>
    %64 = arith.cmpi eq, %62, %63 : vector<1x2xi32>
    %cst_23 = arith.constant 0.000000e+00 : f32
    %65 = vector.shape_cast %64 : vector<1x2xi1> to vector<1x2xi1>
    %66 = vector.broadcast %65 : vector<1x2xi1> to vector<128x2xi1>
    %67 = vector.broadcast %cst_23 : f32 to vector<128x2xf32>
    %68 = arith.select %66, %61, %67 : vector<128x2xi1>, vector<128x2xf32>
    %cst_24 = arith.constant dense<0.000000e+00> : vector<128xf32>
    %69 = vector.multi_reduction <add>, %68, %cst_24 [1] : vector<128x2xf32> to vector<128xf32>
    %70 = vector.shape_cast %69 : vector<128xf32> to vector<128x1xf32>
    %71 = tpu.iota {dimensions = array<i32: 1>} : vector<1x2xi32>
    %c1_i32_25 = arith.constant 1 : i32
    %72 = vector.broadcast %c1_i32_25 : i32 to vector<1x2xi32>
    %73 = arith.cmpi eq, %71, %72 : vector<1x2xi32>
    %cst_26 = arith.constant 0.000000e+00 : f32
    %74 = vector.shape_cast %73 : vector<1x2xi1> to vector<1x2xi1>
    %75 = vector.broadcast %74 : vector<1x2xi1> to vector<128x2xi1>
    %76 = vector.broadcast %cst_26 : f32 to vector<128x2xf32>
    %77 = arith.select %75, %61, %76 : vector<128x2xi1>, vector<128x2xf32>
    %cst_27 = arith.constant dense<0.000000e+00> : vector<128xf32>
    %78 = vector.multi_reduction <add>, %77, %cst_27 [1] : vector<128x2xf32> to vector<128xf32>
    %79 = vector.shape_cast %78 : vector<128xf32> to vector<128x1xf32>
    %80 = arith.mulf %70, %70 : vector<128x1xf32>
    %81 = arith.subf %79, %80 : vector<128x1xf32>
    %cst_28 = arith.constant 9.99999974E-6 : f32
    %82 = vector.broadcast %cst_28 : f32 to vector<128x1xf32>
    %83 = arith.addf %81, %82 : vector<128x1xf32>
    %84 = math.rsqrt %83 : vector<128x1xf32>
    %85 = arith.mulf %84, %28 : vector<128x1xf32>
    %86 = arith.subf %19, %70 : vector<128x1xf32>
    %87 = arith.mulf %86, %85 : vector<128x1xf32>
    %88 = arith.addf %37, %87 : vector<128x1xf32>
    %89 = vector.broadcast %85 : vector<128x1xf32> to vector<128x256xf32>
    %90 = arith.mulf %4, %89 : vector<128x256xf32>
    %91 = vector.broadcast %88 : vector<128x1xf32> to vector<128x256xf32>
    %92 = arith.addf %90, %91 : vector<128x256xf32>
    %93 = math.tanh %92 : vector<128x256xf32>
    %c0_29 = arith.constant 0 : index
    %c0_30 = arith.constant 0 : index
    %94 = vector.load %arg4[%c0_29, %c0_30] : memref<128x128xf32, #tpu.memory_space<vmem>>, vector<128x128xf32>
    %cst_31 = arith.constant dense<0.000000e+00> : vector<128x256xf32>
    %95 = tpu.matmul %94, %93, %cst_31 {dimension_numbers = #tpu.dot_dimension_numbers<[1], [0], [0], [1], [0, 0, 1, 1], [], []>} : vector<128x128xf32>, vector<128x256xf32>, vector<128x256xf32> -> vector<128x256xf32>
    %cst_32 = arith.constant dense<0.000000e+00> : vector<128xf32>
    %96 = vector.multi_reduction <add>, %95, %cst_32 [1] : vector<128x256xf32> to vector<128xf32>
    %97 = vector.shape_cast %96 : vector<128xf32> to vector<128x1xf32>
    %98 = arith.mulf %95, %95 : vector<128x256xf32>
    %cst_33 = arith.constant dense<0.000000e+00> : vector<128xf32>
    %99 = vector.multi_reduction <add>, %98, %cst_33 [1] : vector<128x256xf32> to vector<128xf32>
    %100 = vector.shape_cast %99 : vector<128xf32> to vector<128x1xf32>
    %c0_34 = arith.constant 0 : index
    %c0_35 = arith.constant 0 : index
    %101 = vector.load %arg5[%c0_34, %c0_35] : memref<128x3xf32, #tpu.memory_space<vmem>>, vector<128x3xf32>
    %102 = tpu.iota {dimensions = array<i32: 1>} : vector<1x3xi32>
    %c0_i32_36 = arith.constant 0 : i32
    %103 = vector.broadcast %c0_i32_36 : i32 to vector<1x3xi32>
    %104 = arith.cmpi eq, %102, %103 : vector<1x3xi32>
    %cst_37 = arith.constant 0.000000e+00 : f32
    %105 = vector.shape_cast %104 : vector<1x3xi1> to vector<1x3xi1>
    %106 = vector.broadcast %105 : vector<1x3xi1> to vector<128x3xi1>
    %107 = vector.broadcast %cst_37 : f32 to vector<128x3xf32>
    %108 = arith.select %106, %101, %107 : vector<128x3xi1>, vector<128x3xf32>
    %cst_38 = arith.constant dense<0.000000e+00> : vector<128xf32>
    %109 = vector.multi_reduction <add>, %108, %cst_38 [1] : vector<128x3xf32> to vector<128xf32>
    %110 = vector.shape_cast %109 : vector<128xf32> to vector<128x1xf32>
    %111 = tpu.iota {dimensions = array<i32: 1>} : vector<1x3xi32>
    %c1_i32_39 = arith.constant 1 : i32
    %112 = vector.broadcast %c1_i32_39 : i32 to vector<1x3xi32>
    %113 = arith.cmpi eq, %111, %112 : vector<1x3xi32>
    %cst_40 = arith.constant 0.000000e+00 : f32
    %114 = vector.shape_cast %113 : vector<1x3xi1> to vector<1x3xi1>
    %115 = vector.broadcast %114 : vector<1x3xi1> to vector<128x3xi1>
    %116 = vector.broadcast %cst_40 : f32 to vector<128x3xf32>
    %117 = arith.select %115, %101, %116 : vector<128x3xi1>, vector<128x3xf32>
    %cst_41 = arith.constant dense<0.000000e+00> : vector<128xf32>
    %118 = vector.multi_reduction <add>, %117, %cst_41 [1] : vector<128x3xf32> to vector<128xf32>
    %119 = vector.shape_cast %118 : vector<128xf32> to vector<128x1xf32>
    %120 = tpu.iota {dimensions = array<i32: 1>} : vector<1x3xi32>
    %c2_i32_42 = arith.constant 2 : i32
    %121 = vector.broadcast %c2_i32_42 : i32 to vector<1x3xi32>
    %122 = arith.cmpi eq, %120, %121 : vector<1x3xi32>
    %cst_43 = arith.constant 0.000000e+00 : f32
    %123 = vector.shape_cast %122 : vector<1x3xi1> to vector<1x3xi1>
    %124 = vector.broadcast %123 : vector<1x3xi1> to vector<128x3xi1>
    %125 = vector.broadcast %cst_43 : f32 to vector<128x3xf32>
    %126 = arith.select %124, %101, %125 : vector<128x3xi1>, vector<128x3xf32>
    %cst_44 = arith.constant dense<0.000000e+00> : vector<128xf32>
    %127 = vector.multi_reduction <add>, %126, %cst_44 [1] : vector<128x3xf32> to vector<128xf32>
    %128 = vector.shape_cast %127 : vector<128xf32> to vector<128x1xf32>
    %cst_45 = arith.constant 2.560000e+02 : f32
    %129 = vector.broadcast %cst_45 : f32 to vector<128x1xf32>
    %130 = arith.mulf %129, %110 : vector<128x1xf32>
    %131 = arith.addf %97, %130 : vector<128x1xf32>
    %cst_46 = arith.constant 2.000000e+00 : f32
    %132 = vector.broadcast %cst_46 : f32 to vector<128x1xf32>
    %133 = arith.mulf %132, %110 : vector<128x1xf32>
    %134 = arith.mulf %133, %97 : vector<128x1xf32>
    %135 = arith.addf %100, %134 : vector<128x1xf32>
    %136 = arith.mulf %110, %110 : vector<128x1xf32>
    %cst_47 = arith.constant 2.560000e+02 : f32
    %137 = vector.broadcast %cst_47 : f32 to vector<128x1xf32>
    %138 = arith.mulf %137, %136 : vector<128x1xf32>
    %139 = arith.addf %135, %138 : vector<128x1xf32>
    %140 = tpu.iota {dimensions = array<i32: 1>} : vector<1x2xi32>
    %c0_i32_48 = arith.constant 0 : i32
    %141 = vector.broadcast %c0_i32_48 : i32 to vector<1x2xi32>
    %142 = arith.cmpi eq, %140, %141 : vector<1x2xi32>
    %143 = vector.shape_cast %142 : vector<1x2xi1> to vector<1x2xi1>
    %144 = vector.broadcast %143 : vector<1x2xi1> to vector<128x2xi1>
    %145 = vector.shape_cast %131 : vector<128x1xf32> to vector<128x1xf32>
    %146 = vector.broadcast %145 : vector<128x1xf32> to vector<128x2xf32>
    %147 = vector.shape_cast %139 : vector<128x1xf32> to vector<128x1xf32>
    %148 = vector.broadcast %147 : vector<128x1xf32> to vector<128x2xf32>
    %149 = arith.select %144, %146, %148 : vector<128x2xi1>, vector<128x2xf32>
    %cst_49 = arith.constant dense<0.000000e+00> : vector<128x2xf32>
    %150 = tpu.matmul %0, %149, %cst_49 {dimension_numbers = #tpu.dot_dimension_numbers<[1], [0], [0], [1], [0, 0, 1, 1], [], []>} : vector<128x128xf32>, vector<128x2xf32>, vector<128x2xf32> -> vector<128x2xf32>
    %cst_50 = arith.constant 9.765625E-4 : f32
    %151 = vector.broadcast %cst_50 : f32 to vector<128x2xf32>
    %152 = arith.mulf %150, %151 : vector<128x2xf32>
    %153 = tpu.iota {dimensions = array<i32: 1>} : vector<1x2xi32>
    %c0_i32_51 = arith.constant 0 : i32
    %154 = vector.broadcast %c0_i32_51 : i32 to vector<1x2xi32>
    %155 = arith.cmpi eq, %153, %154 : vector<1x2xi32>
    %cst_52 = arith.constant 0.000000e+00 : f32
    %156 = vector.shape_cast %155 : vector<1x2xi1> to vector<1x2xi1>
    %157 = vector.broadcast %156 : vector<1x2xi1> to vector<128x2xi1>
    %158 = vector.broadcast %cst_52 : f32 to vector<128x2xf32>
    %159 = arith.select %157, %152, %158 : vector<128x2xi1>, vector<128x2xf32>
    %cst_53 = arith.constant dense<0.000000e+00> : vector<128xf32>
    %160 = vector.multi_reduction <add>, %159, %cst_53 [1] : vector<128x2xf32> to vector<128xf32>
    %161 = vector.shape_cast %160 : vector<128xf32> to vector<128x1xf32>
    %162 = tpu.iota {dimensions = array<i32: 1>} : vector<1x2xi32>
    %c1_i32_54 = arith.constant 1 : i32
    %163 = vector.broadcast %c1_i32_54 : i32 to vector<1x2xi32>
    %164 = arith.cmpi eq, %162, %163 : vector<1x2xi32>
    %cst_55 = arith.constant 0.000000e+00 : f32
    %165 = vector.shape_cast %164 : vector<1x2xi1> to vector<1x2xi1>
    %166 = vector.broadcast %165 : vector<1x2xi1> to vector<128x2xi1>
    %167 = vector.broadcast %cst_55 : f32 to vector<128x2xf32>
    %168 = arith.select %166, %152, %167 : vector<128x2xi1>, vector<128x2xf32>
    %cst_56 = arith.constant dense<0.000000e+00> : vector<128xf32>
    %169 = vector.multi_reduction <add>, %168, %cst_56 [1] : vector<128x2xf32> to vector<128xf32>
    %170 = vector.shape_cast %169 : vector<128xf32> to vector<128x1xf32>
    %171 = arith.mulf %161, %161 : vector<128x1xf32>
    %172 = arith.subf %170, %171 : vector<128x1xf32>
    %cst_57 = arith.constant 9.99999974E-6 : f32
    %173 = vector.broadcast %cst_57 : f32 to vector<128x1xf32>
    %174 = arith.addf %172, %173 : vector<128x1xf32>
    %175 = math.rsqrt %174 : vector<128x1xf32>
    %176 = arith.mulf %175, %119 : vector<128x1xf32>
    %177 = arith.subf %110, %161 : vector<128x1xf32>
    %178 = arith.mulf %177, %176 : vector<128x1xf32>
    %179 = arith.addf %128, %178 : vector<128x1xf32>
    %180 = vector.broadcast %176 : vector<128x1xf32> to vector<128x256xf32>
    %181 = arith.mulf %95, %180 : vector<128x256xf32>
    %182 = vector.broadcast %179 : vector<128x1xf32> to vector<128x256xf32>
    %183 = arith.addf %181, %182 : vector<128x256xf32>
    %184 = math.tanh %183 : vector<128x256xf32>
    %c0_58 = arith.constant 0 : index
    %c0_59 = arith.constant 0 : index
    %185 = vector.load %arg6[%c0_58, %c0_59] : memref<128x128xf32, #tpu.memory_space<vmem>>, vector<128x128xf32>
    %cst_60 = arith.constant dense<0.000000e+00> : vector<128x256xf32>
    %186 = tpu.matmul %185, %184, %cst_60 {dimension_numbers = #tpu.dot_dimension_numbers<[1], [0], [0], [1], [0, 0, 1, 1], [], []>} : vector<128x128xf32>, vector<128x256xf32>, vector<128x256xf32> -> vector<128x256xf32>
    %cst_61 = arith.constant dense<0.000000e+00> : vector<128xf32>
    %187 = vector.multi_reduction <add>, %186, %cst_61 [1] : vector<128x256xf32> to vector<128xf32>
    %188 = vector.shape_cast %187 : vector<128xf32> to vector<128x1xf32>
    %189 = arith.mulf %186, %186 : vector<128x256xf32>
    %cst_62 = arith.constant dense<0.000000e+00> : vector<128xf32>
    %190 = vector.multi_reduction <add>, %189, %cst_62 [1] : vector<128x256xf32> to vector<128xf32>
    %191 = vector.shape_cast %190 : vector<128xf32> to vector<128x1xf32>
    %c0_63 = arith.constant 0 : index
    %c0_64 = arith.constant 0 : index
    %192 = vector.load %arg7[%c0_63, %c0_64] : memref<128x3xf32, #tpu.memory_space<vmem>>, vector<128x3xf32>
    %193 = tpu.iota {dimensions = array<i32: 1>} : vector<1x3xi32>
    %c0_i32_65 = arith.constant 0 : i32
    %194 = vector.broadcast %c0_i32_65 : i32 to vector<1x3xi32>
    %195 = arith.cmpi eq, %193, %194 : vector<1x3xi32>
    %cst_66 = arith.constant 0.000000e+00 : f32
    %196 = vector.shape_cast %195 : vector<1x3xi1> to vector<1x3xi1>
    %197 = vector.broadcast %196 : vector<1x3xi1> to vector<128x3xi1>
    %198 = vector.broadcast %cst_66 : f32 to vector<128x3xf32>
    %199 = arith.select %197, %192, %198 : vector<128x3xi1>, vector<128x3xf32>
    %cst_67 = arith.constant dense<0.000000e+00> : vector<128xf32>
    %200 = vector.multi_reduction <add>, %199, %cst_67 [1] : vector<128x3xf32> to vector<128xf32>
    %201 = vector.shape_cast %200 : vector<128xf32> to vector<128x1xf32>
    %202 = tpu.iota {dimensions = array<i32: 1>} : vector<1x3xi32>
    %c1_i32_68 = arith.constant 1 : i32
    %203 = vector.broadcast %c1_i32_68 : i32 to vector<1x3xi32>
    %204 = arith.cmpi eq, %202, %203 : vector<1x3xi32>
    %cst_69 = arith.constant 0.000000e+00 : f32
    %205 = vector.shape_cast %204 : vector<1x3xi1> to vector<1x3xi1>
    %206 = vector.broadcast %205 : vector<1x3xi1> to vector<128x3xi1>
    %207 = vector.broadcast %cst_69 : f32 to vector<128x3xf32>
    %208 = arith.select %206, %192, %207 : vector<128x3xi1>, vector<128x3xf32>
    %cst_70 = arith.constant dense<0.000000e+00> : vector<128xf32>
    %209 = vector.multi_reduction <add>, %208, %cst_70 [1] : vector<128x3xf32> to vector<128xf32>
    %210 = vector.shape_cast %209 : vector<128xf32> to vector<128x1xf32>
    %211 = tpu.iota {dimensions = array<i32: 1>} : vector<1x3xi32>
    %c2_i32_71 = arith.constant 2 : i32
    %212 = vector.broadcast %c2_i32_71 : i32 to vector<1x3xi32>
    %213 = arith.cmpi eq, %211, %212 : vector<1x3xi32>
    %cst_72 = arith.constant 0.000000e+00 : f32
    %214 = vector.shape_cast %213 : vector<1x3xi1> to vector<1x3xi1>
    %215 = vector.broadcast %214 : vector<1x3xi1> to vector<128x3xi1>
    %216 = vector.broadcast %cst_72 : f32 to vector<128x3xf32>
    %217 = arith.select %215, %192, %216 : vector<128x3xi1>, vector<128x3xf32>
    %cst_73 = arith.constant dense<0.000000e+00> : vector<128xf32>
    %218 = vector.multi_reduction <add>, %217, %cst_73 [1] : vector<128x3xf32> to vector<128xf32>
    %219 = vector.shape_cast %218 : vector<128xf32> to vector<128x1xf32>
    %cst_74 = arith.constant 2.560000e+02 : f32
    %220 = vector.broadcast %cst_74 : f32 to vector<128x1xf32>
    %221 = arith.mulf %220, %201 : vector<128x1xf32>
    %222 = arith.addf %188, %221 : vector<128x1xf32>
    %cst_75 = arith.constant 2.000000e+00 : f32
    %223 = vector.broadcast %cst_75 : f32 to vector<128x1xf32>
    %224 = arith.mulf %223, %201 : vector<128x1xf32>
    %225 = arith.mulf %224, %188 : vector<128x1xf32>
    %226 = arith.addf %191, %225 : vector<128x1xf32>
    %227 = arith.mulf %201, %201 : vector<128x1xf32>
    %cst_76 = arith.constant 2.560000e+02 : f32
    %228 = vector.broadcast %cst_76 : f32 to vector<128x1xf32>
    %229 = arith.mulf %228, %227 : vector<128x1xf32>
    %230 = arith.addf %226, %229 : vector<128x1xf32>
    %231 = tpu.iota {dimensions = array<i32: 1>} : vector<1x2xi32>
    %c0_i32_77 = arith.constant 0 : i32
    %232 = vector.broadcast %c0_i32_77 : i32 to vector<1x2xi32>
    %233 = arith.cmpi eq, %231, %232 : vector<1x2xi32>
    %234 = vector.shape_cast %233 : vector<1x2xi1> to vector<1x2xi1>
    %235 = vector.broadcast %234 : vector<1x2xi1> to vector<128x2xi1>
    %236 = vector.shape_cast %222 : vector<128x1xf32> to vector<128x1xf32>
    %237 = vector.broadcast %236 : vector<128x1xf32> to vector<128x2xf32>
    %238 = vector.shape_cast %230 : vector<128x1xf32> to vector<128x1xf32>
    %239 = vector.broadcast %238 : vector<128x1xf32> to vector<128x2xf32>
    %240 = arith.select %235, %237, %239 : vector<128x2xi1>, vector<128x2xf32>
    %cst_78 = arith.constant dense<0.000000e+00> : vector<128x2xf32>
    %241 = tpu.matmul %0, %240, %cst_78 {dimension_numbers = #tpu.dot_dimension_numbers<[1], [0], [0], [1], [0, 0, 1, 1], [], []>} : vector<128x128xf32>, vector<128x2xf32>, vector<128x2xf32> -> vector<128x2xf32>
    %cst_79 = arith.constant 9.765625E-4 : f32
    %242 = vector.broadcast %cst_79 : f32 to vector<128x2xf32>
    %243 = arith.mulf %241, %242 : vector<128x2xf32>
    %244 = tpu.iota {dimensions = array<i32: 1>} : vector<1x2xi32>
    %c0_i32_80 = arith.constant 0 : i32
    %245 = vector.broadcast %c0_i32_80 : i32 to vector<1x2xi32>
    %246 = arith.cmpi eq, %244, %245 : vector<1x2xi32>
    %cst_81 = arith.constant 0.000000e+00 : f32
    %247 = vector.shape_cast %246 : vector<1x2xi1> to vector<1x2xi1>
    %248 = vector.broadcast %247 : vector<1x2xi1> to vector<128x2xi1>
    %249 = vector.broadcast %cst_81 : f32 to vector<128x2xf32>
    %250 = arith.select %248, %243, %249 : vector<128x2xi1>, vector<128x2xf32>
    %cst_82 = arith.constant dense<0.000000e+00> : vector<128xf32>
    %251 = vector.multi_reduction <add>, %250, %cst_82 [1] : vector<128x2xf32> to vector<128xf32>
    %252 = vector.shape_cast %251 : vector<128xf32> to vector<128x1xf32>
    %253 = tpu.iota {dimensions = array<i32: 1>} : vector<1x2xi32>
    %c1_i32_83 = arith.constant 1 : i32
    %254 = vector.broadcast %c1_i32_83 : i32 to vector<1x2xi32>
    %255 = arith.cmpi eq, %253, %254 : vector<1x2xi32>
    %cst_84 = arith.constant 0.000000e+00 : f32
    %256 = vector.shape_cast %255 : vector<1x2xi1> to vector<1x2xi1>
    %257 = vector.broadcast %256 : vector<1x2xi1> to vector<128x2xi1>
    %258 = vector.broadcast %cst_84 : f32 to vector<128x2xf32>
    %259 = arith.select %257, %243, %258 : vector<128x2xi1>, vector<128x2xf32>
    %cst_85 = arith.constant dense<0.000000e+00> : vector<128xf32>
    %260 = vector.multi_reduction <add>, %259, %cst_85 [1] : vector<128x2xf32> to vector<128xf32>
    %261 = vector.shape_cast %260 : vector<128xf32> to vector<128x1xf32>
    %262 = arith.mulf %252, %252 : vector<128x1xf32>
    %263 = arith.subf %261, %262 : vector<128x1xf32>
    %cst_86 = arith.constant 9.99999974E-6 : f32
    %264 = vector.broadcast %cst_86 : f32 to vector<128x1xf32>
    %265 = arith.addf %263, %264 : vector<128x1xf32>
    %266 = math.rsqrt %265 : vector<128x1xf32>
    %267 = arith.mulf %266, %210 : vector<128x1xf32>
    %268 = arith.subf %201, %252 : vector<128x1xf32>
    %269 = arith.mulf %268, %267 : vector<128x1xf32>
    %270 = arith.addf %219, %269 : vector<128x1xf32>
    %271 = vector.broadcast %267 : vector<128x1xf32> to vector<128x256xf32>
    %272 = arith.mulf %186, %271 : vector<128x256xf32>
    %273 = vector.broadcast %270 : vector<128x1xf32> to vector<128x256xf32>
    %274 = arith.addf %272, %273 : vector<128x256xf32>
    %275 = math.tanh %274 : vector<128x256xf32>
    %c0_87 = arith.constant 0 : index
    %c0_88 = arith.constant 0 : index
    %276 = vector.load %arg8[%c0_87, %c0_88] : memref<8x128xf32, #tpu.memory_space<vmem>>, vector<8x128xf32>
    %cst_89 = arith.constant dense<0.000000e+00> : vector<8x256xf32>
    %277 = tpu.matmul %276, %275, %cst_89 {dimension_numbers = #tpu.dot_dimension_numbers<[1], [0], [0], [1], [0, 0, 1, 1], [], []>} : vector<8x128xf32>, vector<128x256xf32>, vector<8x256xf32> -> vector<8x256xf32>
    %cst_90 = arith.constant dense<0.000000e+00> : vector<8xf32>
    %278 = vector.multi_reduction <add>, %277, %cst_90 [1] : vector<8x256xf32> to vector<8xf32>
    %279 = vector.shape_cast %278 : vector<8xf32> to vector<8x1xf32>
    %280 = arith.mulf %277, %277 : vector<8x256xf32>
    %cst_91 = arith.constant dense<0.000000e+00> : vector<8xf32>
    %281 = vector.multi_reduction <add>, %280, %cst_91 [1] : vector<8x256xf32> to vector<8xf32>
    %282 = vector.shape_cast %281 : vector<8xf32> to vector<8x1xf32>
    %c0_92 = arith.constant 0 : index
    %c0_93 = arith.constant 0 : index
    %283 = vector.load %arg9[%c0_92, %c0_93] : memref<8x3xf32, #tpu.memory_space<vmem>>, vector<8x3xf32>
    %284 = tpu.iota {dimensions = array<i32: 1>} : vector<1x3xi32>
    %c0_i32_94 = arith.constant 0 : i32
    %285 = vector.broadcast %c0_i32_94 : i32 to vector<1x3xi32>
    %286 = arith.cmpi eq, %284, %285 : vector<1x3xi32>
    %cst_95 = arith.constant 0.000000e+00 : f32
    %287 = vector.shape_cast %286 : vector<1x3xi1> to vector<1x3xi1>
    %288 = vector.broadcast %287 : vector<1x3xi1> to vector<8x3xi1>
    %289 = vector.broadcast %cst_95 : f32 to vector<8x3xf32>
    %290 = arith.select %288, %283, %289 : vector<8x3xi1>, vector<8x3xf32>
    %cst_96 = arith.constant dense<0.000000e+00> : vector<8xf32>
    %291 = vector.multi_reduction <add>, %290, %cst_96 [1] : vector<8x3xf32> to vector<8xf32>
    %292 = vector.shape_cast %291 : vector<8xf32> to vector<8x1xf32>
    %293 = tpu.iota {dimensions = array<i32: 1>} : vector<1x3xi32>
    %c1_i32_97 = arith.constant 1 : i32
    %294 = vector.broadcast %c1_i32_97 : i32 to vector<1x3xi32>
    %295 = arith.cmpi eq, %293, %294 : vector<1x3xi32>
    %cst_98 = arith.constant 0.000000e+00 : f32
    %296 = vector.shape_cast %295 : vector<1x3xi1> to vector<1x3xi1>
    %297 = vector.broadcast %296 : vector<1x3xi1> to vector<8x3xi1>
    %298 = vector.broadcast %cst_98 : f32 to vector<8x3xf32>
    %299 = arith.select %297, %283, %298 : vector<8x3xi1>, vector<8x3xf32>
    %cst_99 = arith.constant dense<0.000000e+00> : vector<8xf32>
    %300 = vector.multi_reduction <add>, %299, %cst_99 [1] : vector<8x3xf32> to vector<8xf32>
    %301 = vector.shape_cast %300 : vector<8xf32> to vector<8x1xf32>
    %302 = tpu.iota {dimensions = array<i32: 1>} : vector<1x3xi32>
    %c2_i32_100 = arith.constant 2 : i32
    %303 = vector.broadcast %c2_i32_100 : i32 to vector<1x3xi32>
    %304 = arith.cmpi eq, %302, %303 : vector<1x3xi32>
    %cst_101 = arith.constant 0.000000e+00 : f32
    %305 = vector.shape_cast %304 : vector<1x3xi1> to vector<1x3xi1>
    %306 = vector.broadcast %305 : vector<1x3xi1> to vector<8x3xi1>
    %307 = vector.broadcast %cst_101 : f32 to vector<8x3xf32>
    %308 = arith.select %306, %283, %307 : vector<8x3xi1>, vector<8x3xf32>
    %cst_102 = arith.constant dense<0.000000e+00> : vector<8xf32>
    %309 = vector.multi_reduction <add>, %308, %cst_102 [1] : vector<8x3xf32> to vector<8xf32>
    %310 = vector.shape_cast %309 : vector<8xf32> to vector<8x1xf32>
    %cst_103 = arith.constant 2.560000e+02 : f32
    %311 = vector.broadcast %cst_103 : f32 to vector<8x1xf32>
    %312 = arith.mulf %311, %292 : vector<8x1xf32>
    %313 = arith.addf %279, %312 : vector<8x1xf32>
    %cst_104 = arith.constant 2.000000e+00 : f32
    %314 = vector.broadcast %cst_104 : f32 to vector<8x1xf32>
    %315 = arith.mulf %314, %292 : vector<8x1xf32>
    %316 = arith.mulf %315, %279 : vector<8x1xf32>
    %317 = arith.addf %282, %316 : vector<8x1xf32>
    %318 = arith.mulf %292, %292 : vector<8x1xf32>
    %cst_105 = arith.constant 2.560000e+02 : f32
    %319 = vector.broadcast %cst_105 : f32 to vector<8x1xf32>
    %320 = arith.mulf %319, %318 : vector<8x1xf32>
    %321 = arith.addf %317, %320 : vector<8x1xf32>
    %322 = tpu.iota {dimensions = array<i32: 1>} : vector<1x2xi32>
    %c0_i32_106 = arith.constant 0 : i32
    %323 = vector.broadcast %c0_i32_106 : i32 to vector<1x2xi32>
    %324 = arith.cmpi eq, %322, %323 : vector<1x2xi32>
    %325 = vector.shape_cast %324 : vector<1x2xi1> to vector<1x2xi1>
    %326 = vector.broadcast %325 : vector<1x2xi1> to vector<8x2xi1>
    %327 = vector.shape_cast %313 : vector<8x1xf32> to vector<8x1xf32>
    %328 = vector.broadcast %327 : vector<8x1xf32> to vector<8x2xf32>
    %329 = vector.shape_cast %321 : vector<8x1xf32> to vector<8x1xf32>
    %330 = vector.broadcast %329 : vector<8x1xf32> to vector<8x2xf32>
    %331 = arith.select %326, %328, %330 : vector<8x2xi1>, vector<8x2xf32>
    %cst_107 = arith.constant 3.906250e-03 : f32
    %332 = vector.broadcast %cst_107 : f32 to vector<8x2xf32>
    %333 = arith.mulf %331, %332 : vector<8x2xf32>
    %334 = tpu.iota {dimensions = array<i32: 1>} : vector<1x2xi32>
    %c0_i32_108 = arith.constant 0 : i32
    %335 = vector.broadcast %c0_i32_108 : i32 to vector<1x2xi32>
    %336 = arith.cmpi eq, %334, %335 : vector<1x2xi32>
    %cst_109 = arith.constant 0.000000e+00 : f32
    %337 = vector.shape_cast %336 : vector<1x2xi1> to vector<1x2xi1>
    %338 = vector.broadcast %337 : vector<1x2xi1> to vector<8x2xi1>
    %339 = vector.broadcast %cst_109 : f32 to vector<8x2xf32>
    %340 = arith.select %338, %333, %339 : vector<8x2xi1>, vector<8x2xf32>
    %cst_110 = arith.constant dense<0.000000e+00> : vector<8xf32>
    %341 = vector.multi_reduction <add>, %340, %cst_110 [1] : vector<8x2xf32> to vector<8xf32>
    %342 = vector.shape_cast %341 : vector<8xf32> to vector<8x1xf32>
    %343 = tpu.iota {dimensions = array<i32: 1>} : vector<1x2xi32>
    %c1_i32_111 = arith.constant 1 : i32
    %344 = vector.broadcast %c1_i32_111 : i32 to vector<1x2xi32>
    %345 = arith.cmpi eq, %343, %344 : vector<1x2xi32>
    %cst_112 = arith.constant 0.000000e+00 : f32
    %346 = vector.shape_cast %345 : vector<1x2xi1> to vector<1x2xi1>
    %347 = vector.broadcast %346 : vector<1x2xi1> to vector<8x2xi1>
    %348 = vector.broadcast %cst_112 : f32 to vector<8x2xf32>
    %349 = arith.select %347, %333, %348 : vector<8x2xi1>, vector<8x2xf32>
    %cst_113 = arith.constant dense<0.000000e+00> : vector<8xf32>
    %350 = vector.multi_reduction <add>, %349, %cst_113 [1] : vector<8x2xf32> to vector<8xf32>
    %351 = vector.shape_cast %350 : vector<8xf32> to vector<8x1xf32>
    %352 = arith.mulf %342, %342 : vector<8x1xf32>
    %353 = arith.subf %351, %352 : vector<8x1xf32>
    %cst_114 = arith.constant 9.99999974E-6 : f32
    %354 = vector.broadcast %cst_114 : f32 to vector<8x1xf32>
    %355 = arith.addf %353, %354 : vector<8x1xf32>
    %356 = math.rsqrt %355 : vector<8x1xf32>
    %357 = arith.mulf %356, %301 : vector<8x1xf32>
    %358 = arith.subf %292, %342 : vector<8x1xf32>
    %359 = arith.mulf %358, %357 : vector<8x1xf32>
    %360 = arith.addf %310, %359 : vector<8x1xf32>
    %361 = vector.broadcast %357 : vector<8x1xf32> to vector<8x256xf32>
    %362 = arith.mulf %277, %361 : vector<8x256xf32>
    %363 = vector.broadcast %360 : vector<8x1xf32> to vector<8x256xf32>
    %364 = arith.addf %362, %363 : vector<8x256xf32>
    %365 = arith.negf %364 : vector<8x256xf32>
    %366 = math.exp %365 : vector<8x256xf32>
    %cst_115 = arith.constant 1.000000e+00 : f32
    %367 = vector.broadcast %cst_115 : f32 to vector<8x256xf32>
    %368 = arith.addf %367, %366 : vector<8x256xf32>
    %369 = arith.divf %367, %368 : vector<8x256xf32>
    %c0_116 = arith.constant 0 : index
    %c0_117 = arith.constant 0 : index
    %c0_118 = arith.constant 0 : index
    %370 = vector.load %arg11[%c0_116, %c0_117, %c0_118] : memref<1x8x256xf32, #tpu.memory_space<vmem>>, vector<1x8x256xf32>
    %371 = vector.shape_cast %370 : vector<1x8x256xf32> to vector<8x256xf32>
    %372 = vector.shape_cast %369 : vector<8x256xf32> to vector<1x8x256xf32>
    tpu.vector_store %arg11[%c0_116, %c0_117, %c0_118], %372 {strides = array<i32>} : memref<1x8x256xf32, #tpu.memory_space<vmem>>, vector<1x8x256xf32>,
    return
  }
  func.func @transform_0(%arg0: i32) -> (i32, i32, i32) {
    %c0_i32 = arith.constant 0 : i32
    %c0_i32_0 = arith.constant 0 : i32
    %c0_i32_1 = arith.constant 0 : i32
    return %arg0, %c0_i32, %c0_i32_0 : i32, i32, i32
  }
  func.func @transform_1(%arg0: i32) -> (i32, i32) {
    %c0_i32 = arith.constant 0 : i32
    %c0_i32_0 = arith.constant 0 : i32
    %c0_i32_1 = arith.constant 0 : i32
    return %c0_i32, %c0_i32_0 : i32, i32
  }
  func.func @transform_2(%arg0: i32) -> (i32, i32) {
    %c0_i32 = arith.constant 0 : i32
    %c0_i32_0 = arith.constant 0 : i32
    %c0_i32_1 = arith.constant 0 : i32
    return %c0_i32, %c0_i32_0 : i32, i32
  }
  func.func @transform_3(%arg0: i32) -> (i32, i32) {
    %c0_i32 = arith.constant 0 : i32
    %c0_i32_0 = arith.constant 0 : i32
    %c0_i32_1 = arith.constant 0 : i32
    return %c0_i32, %c0_i32_0 : i32, i32
  }
  func.func @transform_4(%arg0: i32) -> (i32, i32) {
    %c0_i32 = arith.constant 0 : i32
    %c0_i32_0 = arith.constant 0 : i32
    %c0_i32_1 = arith.constant 0 : i32
    return %c0_i32, %c0_i32_0 : i32, i32
  }
  func.func @transform_5(%arg0: i32) -> (i32, i32) {
    %c0_i32 = arith.constant 0 : i32
    %c0_i32_0 = arith.constant 0 : i32
    %c0_i32_1 = arith.constant 0 : i32
    return %c0_i32, %c0_i32_0 : i32, i32
  }
  func.func @transform_6(%arg0: i32) -> (i32, i32) {
    %c0_i32 = arith.constant 0 : i32
    %c0_i32_0 = arith.constant 0 : i32
    %c0_i32_1 = arith.constant 0 : i32
    return %c0_i32, %c0_i32_0 : i32, i32
  }
  func.func @transform_7(%arg0: i32) -> (i32, i32) {
    %c0_i32 = arith.constant 0 : i32
    %c0_i32_0 = arith.constant 0 : i32
    %c0_i32_1 = arith.constant 0 : i32
    return %c0_i32, %c0_i32_0 : i32, i32
  }
  func.func @transform_8(%arg0: i32) -> (i32, i32) {
    %c0_i32 = arith.constant 0 : i32
    %c0_i32_0 = arith.constant 0 : i32
    %c0_i32_1 = arith.constant 0 : i32
    return %c0_i32, %c0_i32_0 : i32, i32
  }
  func.func @transform_9(%arg0: i32) -> (i32, i32) {
    %c0_i32 = arith.constant 0 : i32
    %c0_i32_0 = arith.constant 0 : i32
    %c0_i32_1 = arith.constant 0 : i32
    return %c0_i32, %c0_i32_0 : i32, i32
  }
  func.func @transform_10(%arg0: i32) -> (i32, i32, i32) {
    %c0_i32 = arith.constant 0 : i32
    %c0_i32_0 = arith.constant 0 : i32
    %c0_i32_1 = arith.constant 0 : i32
    return %arg0, %c0_i32, %c0_i32_0 : i32, i32, i32
  }
}

</mosaic_0001>

<bundles_post_ra>
// kernel: tpu_custom_call.1
= control target key start
LH: loop header
LB: loop body
LE: loop exit
PB: predicated region body
PF: predicated region fallthrough
CT: control target
= control target key end

     0   :  { %15 = vsyncpa [#allocation3], 0  ;;  %s8334_s0 = inlined_call_operand.vmem [shape: f32[2,4,256], index: 0, kind: input, shape index: {}]   ;;  %s8335_s1 = inlined_call_operand.vmem [shape: f32[128,4], index: 1, kind: input, shape index: {}]   ;;  %s8336_s2 = inlined_call_operand.vmem [shape: f32[128,3], index: 2, kind: input, shape index: {}]   ;;  %s8337_s3 = inlined_call_operand.vmem [shape: f32[128,128], index: 3, kind: input, shape index: {}]   ;;  %s8338_s4 = inlined_call_operand.vmem [shape: f32[128,3], index: 4, kind: input, shape index: {}]   ;;  %s8339_s5 = inlined_call_operand.vmem [shape: f32[128,128], index: 5, kind: input, shape index: {}]   ;;  %s8340_s6 = inlined_call_operand.vmem [shape: f32[128,3], index: 6, kind: input, shape index: {}]   ;;  %s8341_s7 = inlined_call_operand.vmem [shape: f32[8,128], index: 7, kind: input, shape index: {}]   ;;  %s8342_s8 = inlined_call_operand.vmem [shape: f32[8,3], index: 8, kind: input, shape index: {}]   ;;  %s8343_s9 = inlined_call_operand.vmem [shape: f32[128,128], index: 9, kind: input, shape index: {}]   ;;  %s8344_s10 = inlined_call_operand.hbm [shape: f32[2,8,256], index: 10, kind: output, shape index: {}]  }
   0x1   :  { %17 = vsyncpa [#allocation3 + $0x1], 0  ;;  %s4980_s13 = smov 0   ;;  %s4982_s14 = smov 0  }
   0x2   :  { %s4984_s15 = smov 0   ;;  %s4986_s16 = smov 0  }
   0x3 LB: > { %s5001_s17 = sadd.s32 4294967295, %s4921_s16   ;;  %s4165_s18 = sadd.s32 4294967294, %s4921_s16   ;;  %s4921_s16 = sphi %s4986_s16, %s8772_s16   ;;  %s4917_s15 = sphi %s4984_s15, %s8771_s15   ;;  %s4913_s14 = sphi %s4982_s14, %s8770_s14   ;;  %s4909_s13 = sphi %s4980_s13, %s8769_s13  }
   0x4   : > { %s5005_s19 = sadd.s32 1, %s4921_s16   ;;  %s245_s20 = sadd.s32 1, %s4917_s15 }
   0x5   : > { %s242_s21 = ssub.s32 %s4921_s16, %s5005_s19  ;;  %p255_p0 = scmp.ne.s32.totalorder %s4917_s15, %s4913_s14 }
   0x6   : > { %p243_p1 = scmp.eq.s32.totalorder %s242_s21, 0  ;;  %p256_p2 = scmp.eq.s32.totalorder %s5001_s17, 1 }
   0x7   : > { %p261_p3 = scmp.ne.s32.totalorder %s4913_s14, %s4909_s13  ;;  %p262_p4 = scmp.eq.s32.totalorder %s4165_s18, 1 }
   0x8   : > { %s5016_s22 = scalar_select %p243_p1, %s4917_s15, %s245_s20  }
   0x9   : > { %p5018_p5 = por %p256_p2, %p255_p0  ;;  %p5022_p6 = por %p262_p4, %p261_p3 }
   0xa   : > { %p4168_p7 = scmp.ge.s32.totalorder %s4921_s16, 1  ;;  %p315_p8 = scmp.lt.s32.totalorder %s4921_s16, 3 }
   0xc   : > { %p316_p9 = pnand %p4168_p7, %p315_p8 }
   0xe   : > { %319 = sbr.rel (%p316_p9) target bundleno = 3301 (0xce5), region = 60 }
  0x13   : > { %p353_p10 = scmp.lt.s32.totalorder %s5001_s17, 1  ;;  %v752_v0 = vlaneseq  ;;  %v8345_v1 = vmov 0.0   ;;  %vm773_vm1 = vcmask 23552   ;;  %v5040_v3 = vld [vmem:[%s8336_s2 + $0x70] sm:$0xff]  ;;  %vm442_vm2 = vcmask 1043456   ;;  %v5048_v6 = vld [vmem:[%s8336_s2 + $0x78] sm:$0xff] }
  0x14   : > { %511 = vmatprep.mubr.f32.mxu0 %v8345_v1  ;;  %v375_v10 = vld [vmem:[%s8335_s1] sm:$0xff]  ;;  %vm393_vm3 = vcmask 31744   ;;  %v376_v12 = vld [vmem:[%s8335_s1 + $0x8] sm:$0xff]  ;;  %v377_v13 = vld [vmem:[%s8335_s1 + $0x10] sm:$0xff]  ;;  %vm1277_vm6 = vcmask 15360   ;;  %s350_s21 = sand.u32 1, %s4913_s14  }
  0x15   : > { %s354_s25 = scalar_select %p353_p10, %s5001_s17, 1  ;;  %v5031_v2 = vand.u32 127, %v752_v0  ;;  %v378_v14 = vld [vmem:[%s8335_s1 + $0x18] sm:$0xff]  ;;  %v379_v15 = vld [vmem:[%s8335_s1 + $0x20] sm:$0xff]  ;;  %v380_v16 = vld [vmem:[%s8335_s1 + $0x28] sm:$0xff] }
  0x16   : > { %v381_v17 = vld [vmem:[%s8335_s1 + $0x30] sm:$0xff]  ;;  %v382_v18 = vld [vmem:[%s8335_s1 + $0x38] sm:$0xff]  ;;  %v383_v19 = vld [vmem:[%s8335_s1 + $0x40] sm:$0xff]  ;;  %s4092_s12 = scalar_lea.sflag [#allocation3], %s350_s21 }
  0x17   : > { %8494 = vst [vmem:[#allocation5_spill] sm:$0xff] %v5031_v2  ;;  %s4197_s26 = sshll.u32 %s354_s25, 3  ;;  %vm754_vm0 = vcmp.eq.s32.totalorder %v5031_v2, 0  ;;  %v384_v20 = vld [vmem:[%s8335_s1 + $0x48] sm:$0xff]  ;;  %v385_v21 = vld [vmem:[%s8335_s1 + $0x50] sm:$0xff]  ;;  %v386_v22 = vld [vmem:[%s8335_s1 + $0x58] sm:$0xff] }
  0x18   : > { %s357_s29 = scalar_lea.vmem %s8334_s0, %s4197_s26  ;;  %v771_v5 = vsel %vm754_vm0, %v5040_v3, 0.0  ;;  %v772_v9 = vsel %vm754_vm0, %v5048_v6, 0.0  ;;  %v387_v23 = vld [vmem:[%s8335_s1 + $0x60] sm:$0xff]  ;;  %v388_v24 = vld [vmem:[%s8335_s1 + $0x68] sm:$0xff]  ;;  %v389_v25 = vld [vmem:[%s8335_s1 + $0x70] sm:$0xff]  ;;  %vm822_vm4 = vcmp.eq.s32.totalorder %v5031_v2, 1 }
  0x19   : > { %v374_v4 = vld [vmem:[%s357_s29] sm:$0xff]  ;;  %v816_v8 = vsel %vm773_vm1, %v771_v5, 0.0  ;;  %v819_v11 = vsel %vm773_vm1, %v772_v9, 0.0  ;;  %v390_v26 = vld [vmem:[%s8335_s1 + $0x78] sm:$0xff]  ;;  %v5137_v27 = vld [vmem:[%s8336_s2 + $0x68] sm:$0xff]  ;;  %vm889_vm5 = vcmp.eq.s32.totalorder %v5031_v2, 2 }
  0x1a   : > { %v392_v7 = vcombine.high %v374_v4, %v374_v4  ;;  %817 = vadd.xlane.f32.xlu1 %v816_v8  ;;  %820 = vadd.xlane.f32.xlu0 %v819_v11  ;;  %v770_v28 = vsel %vm754_vm0, %v5137_v27, 0.0  ;;  %v5146_v30 = vld [vmem:[%s8336_s2 + $0x60] sm:$0xff]  ;;  %v5155_v33 = vld [vmem:[%s8336_s2 + $0x58] sm:$0xff]  ;;  %v5164_v36 = vld [vmem:[%s8336_s2 + $0x50] sm:$0xff]  ;;  %s4169_s25 = sshll.u32 %s350_s21, 4  ;;  %s4198_s26 = sshll.u32 %s5001_s17, 8 }
  0x1b   : > { %v813_v29 = vsel %vm773_vm1, %v770_v28, 0.0  ;;  %v769_v31 = vsel %vm754_vm0, %v5146_v30, 0.0  ;;  %v768_v34 = vsel %vm754_vm0, %v5155_v33, 0.0  ;;  %v767_v37 = vsel %vm754_vm0, %v5164_v36, 0.0  ;;  %v745_v39 = vld [vmem:[%s8336_s2 + $0x48] sm:$0xff]  ;;  %v744_v42 = vld [vmem:[%s8336_s2 + $0x40] sm:$0xff]  ;;  %s8293_s11 = scalar_lea.hbm %s8344_s10, %s4198_s26 }
  0x1c   : > { %4172 = vmatprep.subr.msk.mxu0 %vm442_vm2, %v392_v7  ;;  %v810_v32 = vsel %vm773_vm1, %v769_v31, 0.0  ;;  %v807_v35 = vsel %vm773_vm1, %v768_v34, 0.0  ;;  %v804_v38 = vsel %vm773_vm1, %v767_v37, 0.0  ;;  %v766_v40 = vsel %vm754_vm0, %v745_v39, 0.0  ;;  %v743_v45 = vld [vmem:[%s8336_s2 + $0x38] sm:$0xff]  ;;  %v742_v48 = vld [vmem:[%s8336_s2 + $0x30] sm:$0xff] }
  0x1d   : > { %4173 = vmatpush1.msk.msra.mxu0 %vm442_vm2, %v374_v4  ;;  %v801_v41 = vsel %vm773_vm1, %v766_v40, 0.0  ;;  %v765_v43 = vsel %vm754_vm0, %v744_v42, 0.0  ;;  %v764_v46 = vsel %vm754_vm0, %v743_v45, 0.0  ;;  %v763_v49 = vsel %vm754_vm0, %v742_v48, 0.0  ;;  %v741_v51 = vld [vmem:[%s8336_s2 + $0x28] sm:$0xff]  ;;  %v740_v54 = vld [vmem:[%s8336_s2 + $0x20] sm:$0xff] }
  0x1e   : > { %4174 = vmatmul.mubr.msk.f32.vlgmr.msra.gmra.mxu0 %vm393_vm3, %v375_v10  ;;  %814 = vadd.xlane.f32.xlu1 %v813_v29  ;;  %v798_v44 = vsel %vm773_vm1, %v765_v43, 0.0  ;;  %v795_v47 = vsel %vm773_vm1, %v764_v46, 0.0  ;;  %v792_v50 = vsel %vm773_vm1, %v763_v49, 0.0  ;;  %v762_v52 = vsel %vm754_vm0, %v741_v51, 0.0  ;;  %s352_s27 = scalar_lea.vmem [#allocation2], %s4169_s25  ;;  %s4924_s17 = smov [#allocation2]  }
  0x1f   : > { %517 = vmatprep.mubr.f32.mxu0 %v8345_v1  ;;  %811 = vadd.xlane.f32.xlu0 %v810_v32  ;;  %v789_v53 = vsel %vm773_vm1, %v762_v52, 0.0  ;;  %v761_v55 = vsel %vm754_vm0, %v740_v54, 0.0  ;;  %s4106_s28 = sshll.u32 %s352_s27, 4  ;;  %s4865_s20 = sshll.u32 %s4924_s17, 4  ;;  %s8295_s28 = int_to_ptr.vmem [resolvable:$true] %s4106_s28  ;;  %s4866_s20 = int_to_ptr.vmem [resolvable:$false] %s4865_s20 }
  0x20   : > { %v786_v56 = vsel %vm773_vm1, %v761_v55, 0.0  ;;  %s4861_s18 = scalar_lea.vmem %s8295_s28, 256  ;;  %s4867_s25 = scalar_lea.vmem %s4866_s20, 512 }
  0x21   : > { %p4862_p11 = scmp.ne.s32.totalorder %s8295_s28, %s4861_s18  ;;  %p4868_p0 = scmp.lt.s32.totalorder %s8295_s28, %s4866_s20 }
  0x22   : > { %4175 = vmatmul.mubr.msk.f32.gmra.mxu0 %vm393_vm3, %v376_v12  ;;  %808 = vadd.xlane.f32.xlu1 %v807_v35  ;;  %p4869_p1 = scmp.lt.s32.totalorder %s4867_s25, %s4861_s18 }
  0x23   : > { %523 = vmatprep.mubr.f32.mxu0 %v8345_v1  ;;  %805 = vadd.xlane.f32.xlu0 %v804_v38  ;;  %p4863_p12 = pnand %p4862_p11, %p5018_p5 }
  0x24   : > { %p4870_p2 = por %p4869_p1, %p4868_p0 }
  0x25   : > { %p4864_p13 = pneg %p4863_p12 }
  0x26   : > { %4176 = vmatmul.mubr.msk.f32.gmra.mxu0 %vm393_vm3, %v377_v13  ;;  %802 = vadd.xlane.f32.xlu1 %v801_v41 }
  0x27   : > { %529 = vmatprep.mubr.f32.mxu0 %v8345_v1  ;;  %799 = vadd.xlane.f32.xlu0 %v798_v44  ;;  %p4871_p3 = pnand %p4870_p2, %p4864_p13 }
  0x2a   : > { %4177 = vmatmul.mubr.msk.f32.gmra.mxu0 %vm393_vm3, %v378_v14  ;;  %796 = vadd.xlane.f32.xlu1 %v795_v47 }
  0x2b   : > { %535 = vmatprep.mubr.f32.mxu0 %v8345_v1  ;;  %793 = vadd.xlane.f32.xlu0 %v792_v50 }
  0x2e   : > { %4178 = vmatmul.mubr.msk.f32.gmra.mxu0 %vm393_vm3, %v379_v15  ;;  %790 = vadd.xlane.f32.xlu1 %v789_v53 }
  0x2f   : > { %541 = vmatprep.mubr.f32.mxu0 %v8345_v1  ;;  %787 = vadd.xlane.f32.xlu0 %v786_v56 }
  0x32   : > { %4179 = vmatmul.mubr.msk.f32.gmra.mxu0 %vm393_vm3, %v380_v16 }
  0x33   : > { %547 = vmatprep.mubr.f32.mxu0 %v8345_v1 }
  0x36   : > { %4180 = vmatmul.mubr.msk.f32.gmra.mxu0 %vm393_vm3, %v381_v17 }
  0x37   : > { %553 = vmatprep.mubr.f32.mxu0 %v8345_v1 }
  0x3a   : > { %4181 = vmatmul.mubr.msk.f32.gmra.mxu0 %vm393_vm3, %v382_v18 }
  0x3b   : > { %559 = vmatprep.mubr.f32.mxu0 %v8345_v1 }
  0x3e   : > { %4182 = vmatmul.mubr.msk.f32.gmra.mxu0 %vm393_vm3, %v383_v19 }
  0x3f   : > { %565 = vmatprep.mubr.f32.mxu0 %v8345_v1 }
  0x42   : > { %4183 = vmatmul.mubr.msk.f32.gmra.mxu0 %vm393_vm3, %v384_v20 }
  0x43   : > { %571 = vmatprep.mubr.f32.mxu0 %v8345_v1 }
  0x46   : > { %4184 = vmatmul.mubr.msk.f32.gmra.mxu0 %vm393_vm3, %v385_v21 }
  0x47   : > { %577 = vmatprep.mubr.f32.mxu0 %v8345_v1 }
  0x4a   : > { %4185 = vmatmul.mubr.msk.f32.gmra.mxu0 %vm393_vm3, %v386_v22 }
  0x4b   : > { %583 = vmatprep.mubr.f32.mxu0 %v8345_v1 }
  0x4e   : > { %4186 = vmatmul.mubr.msk.f32.gmra.mxu0 %vm393_vm3, %v387_v23 }
  0x4f   : > { %589 = vmatprep.mubr.f32.mxu0 %v8345_v1 }
  0x52   : > { %4187 = vmatmul.mubr.msk.f32.gmra.mxu0 %vm393_vm3, %v388_v24 }
  0x53   : > { %595 = vmatprep.mubr.f32.mxu0 %v8345_v1 }
  0x56   : > { %4188 = vmatmul.mubr.msk.f32.gmra.mxu0 %vm393_vm3, %v389_v25 }
  0x57   : > { %601 = vmatprep.mubr.f32.mxu0 %v8345_v1 }
  0x5a   : > { %4189 = vmatmul.mubr.msk.f32.gmra.mxu0 %vm393_vm3, %v390_v26 }
  0xde   : > { %v5206_v57 = vpop.f32.mrf.mxu0 }
  0xdf   : > { %8495 = vst [vmem:[#allocation6_spill] sm:$0xff] %v5206_v57 }
  0xe0   : > { %v5208_v58 = vpop.f32.mrf.mxu0 }
  0xe1   : > { %8496 = vst [vmem:[#allocation7_spill] sm:$0xff] %v5208_v58 }
  0xe2   : > { %v5210_v59 = vpop.f32.mrf.mxu0 }
  0xe3   : > { %8497 = vst [vmem:[#allocation8_spill] sm:$0xff] %v5210_v59 }
  0xe4   : > { %v5212_v60 = vpop.f32.mrf.mxu0 }
  0xe5   : > { %8498 = vst [vmem:[#allocation9_spill] sm:$0xff] %v5212_v60 }
  0xe6   : > { %v5214_v61 = vpop.f32.mrf.mxu0 }
  0xe7   : > { %8499 = vst [vmem:[#allocation10_spill] sm:$0xff] %v5214_v61 }
  0xe8   : > { %v5216_v62 = vpop.f32.mrf.mxu0 }
  0xe9   : > { %8500 = vst [vmem:[#allocation11_spill] sm:$0xff] %v5216_v62 }
  0xea   : > { %v5218_v63 = vpop.f32.mrf.mxu0 }
  0xeb   : > { %8501 = vst [vmem:[#allocation12_spill] sm:$0xff] %v5218_v63 }
  0xec   : > { %v5220_v0 = vpop.f32.mrf.mxu0 }
  0xed   : > { %8502 = vst [vmem:[#allocation13_spill] sm:$0xff] %v5220_v0 }
  0xee   : > { %v5222_v4 = vpop.f32.mrf.mxu0 }
  0xef   : > { %8503 = vst [vmem:[#allocation14_spill] sm:$0xff] %v5222_v4 }
  0xf0   : > { %v5224_v5 = vpop.f32.mrf.mxu0 }
  0xf1   : > { %8504 = vst [vmem:[#allocation15_spill] sm:$0xff] %v5224_v5  ;;  %v620_v7 = vadd.f32 %v5224_v5, %v5222_v4 }
  0xf2   : > { %v5228_v8 = vpop.f32.mrf.mxu0 }
  0xf3   : > { %8505 = vst [vmem:[#allocation16_spill] sm:$0xff] %v5228_v8  ;;  %621 = vadd.xlane.f32.xlu1 %v620_v7 }
  0xf4   : > { %v5230_v9 = vpop.f32.mrf.mxu0 }
  0xf5   : > { %8506 = vst [vmem:[#allocation17_spill] sm:$0xff] %v5230_v9  ;;  %v623_v10 = vadd.f32 %v5230_v9, %v5228_v8 }
  0xf6   : > { %v5234_v11 = vpop.f32.mrf.mxu0 }
  0xf7   : > { %8507 = vst [vmem:[#allocation18_spill] sm:$0xff] %v5234_v11  ;;  %624 = vadd.xlane.f32.xlu0 %v623_v10  ;;  %v668_v16 = vmul.f32 %v5234_v11, %v5234_v11 }
  0xf8   : > { %v5236_v12 = vpop.f32.mrf.mxu0 }
  0xf9   : > { %8508 = vst [vmem:[#allocation19_spill] sm:$0xff] %v5236_v12  ;;  %v626_v13 = vadd.f32 %v5236_v12, %v5234_v11  ;;  %v669_v14 = vmul.f32 %v5236_v12, %v5236_v12 }
  0xfa   : > { %v5242_v15 = vpop.f32.mrf.mxu0 }
  0xfb   : > { %8509 = vst [vmem:[#allocation20_spill] sm:$0xff] %v5242_v15  ;;  %627 = vadd.xlane.f32.xlu1 %v626_v13  ;;  %v706_v18 = vadd.f32 %v669_v14, %v668_v16  ;;  %v670_v22 = vmul.f32 %v5242_v15, %v5242_v15 }
  0xfc   : > { %v5246_v17 = vpop.f32.mrf.mxu0 }
  0xfd   : > { %8510 = vst [vmem:[#allocation21_spill] sm:$0xff] %v5246_v17  ;;  %v629_v19 = vadd.f32 %v5246_v17, %v5242_v15  ;;  %v671_v20 = vmul.f32 %v5246_v17, %v5246_v17 }
  0xfe   : > { %v5252_v21 = vpop.f32.mrf.mxu0 }
  0xff   : > { %8511 = vst [vmem:[#allocation22_spill] sm:$0xff] %v5252_v21  ;;  %707 = vadd.xlane.f32.xlu1 %v706_v18  ;;  %630 = vadd.xlane.f32.xlu0 %v629_v19  ;;  %v709_v24 = vadd.f32 %v671_v20, %v670_v22  ;;  %v672_v29 = vmul.f32 %v5252_v21, %v5252_v21 }
 0x100   : > { %v5256_v23 = vpop.f32.mrf.mxu0 }
 0x101   : > { %8512 = vst [vmem:[#allocation23_spill] sm:$0xff] %v5256_v23  ;;  %v632_v25 = vadd.f32 %v5256_v23, %v5252_v21  ;;  %v673_v26 = vmul.f32 %v5256_v23, %v5256_v23 }
 0x102   : > { %v5262_v28 = vpop.f32.mrf.mxu0 }
 0x103   : > { %8513 = vst [vmem:[#allocation24_spill] sm:$0xff] %v5262_v28  ;;  %710 = vadd.xlane.f32.xlu0 %v709_v24  ;;  %633 = vadd.xlane.f32.xlu1 %v632_v25  ;;  %v712_v32 = vadd.f32 %v673_v26, %v672_v29  ;;  %v674_v38 = vmul.f32 %v5262_v28, %v5262_v28  ;;  %v739_v26 = vld [vmem:[%s8336_s2 + $0x18] sm:$0xff] }
 0x104   : > { %v5266_v31 = vpop.f32.mrf.mxu0 }
 0x105   : > { %8514 = vst [vmem:[#allocation25_spill] sm:$0xff] %v5266_v31  ;;  %v635_v34 = vadd.f32 %v5266_v31, %v5262_v28  ;;  %v675_v35 = vmul.f32 %v5266_v31, %v5266_v31 }
 0x106   : > { %v5272_v37 = vpop.f32.mrf.mxu0 }
 0x107   : > { %8515 = vst [vmem:[#allocation26_spill] sm:$0xff] %v5272_v37  ;;  %713 = vadd.xlane.f32.xlu1 %v712_v32  ;;  %636 = vadd.xlane.f32.xlu0 %v635_v34  ;;  %v715_v40 = vadd.f32 %v675_v35, %v674_v38  ;;  %v676_v44 = vmul.f32 %v5272_v37, %v5272_v37  ;;  %v760_v38 = vsel %vm754_vm0, %v739_v26, 0.0 }
 0x108   : > { %v5276_v39 = vpop.f32.mrf.mxu0  ;;  %v663_v26 = vmul.f32 %v5220_v0, %v5220_v0 }
 0x109   : > { %8516 = vst [vmem:[#allocation27_spill] sm:$0xff] %v5276_v39  ;;  %v638_v41 = vadd.f32 %v5276_v39, %v5272_v37  ;;  %v677_v42 = vmul.f32 %v5276_v39, %v5276_v39 }
 0x10a   : > { %v5282_v43 = vpop.f32.mrf.mxu0 }
 0x10b   : > { %8517 = vst [vmem:[#allocation28_spill] sm:$0xff] %v5282_v43  ;;  %716 = vadd.xlane.f32.xlu0 %v715_v40  ;;  %639 = vadd.xlane.f32.xlu1 %v638_v41  ;;  %v718_v46 = vadd.f32 %v677_v42, %v676_v44  ;;  %v678_v50 = vmul.f32 %v5282_v43, %v5282_v43  ;;  %v783_v42 = vsel %vm773_vm1, %v760_v38, 0.0 }
 0x10c   : > { %v5286_v45 = vpop.f32.mrf.mxu0 }
 0x10d   : > { %8518 = vst [vmem:[#allocation29_spill] sm:$0xff] %v5286_v45  ;;  %v641_v47 = vadd.f32 %v5286_v45, %v5282_v43  ;;  %v679_v48 = vmul.f32 %v5286_v45, %v5286_v45 }
 0x10e   : > { %v5292_v49 = vpop.f32.mrf.mxu0 }
 0x10f   : > { %8519 = vst [vmem:[#allocation30_spill] sm:$0xff] %v5292_v49  ;;  %719 = vadd.xlane.f32.xlu1 %v718_v46  ;;  %642 = vadd.xlane.f32.xlu0 %v641_v47  ;;  %v721_v52 = vadd.f32 %v679_v48, %v678_v50  ;;  %v680_v56 = vmul.f32 %v5292_v49, %v5292_v49 }
 0x110   : > { %v5296_v51 = vpop.f32.mrf.mxu0  ;;  %v665_v46 = vmul.f32 %v5224_v5, %v5224_v5  ;;  %v667_v47 = vmul.f32 %v5230_v9, %v5230_v9  ;;  %v664_v48 = vmul.f32 %v5222_v4, %v5222_v4  ;;  %v666_v50 = vmul.f32 %v5228_v8, %v5228_v8 }
 0x111   : > { %8520 = vst [vmem:[#allocation31_spill] sm:$0xff] %v5296_v51  ;;  %v644_v53 = vadd.f32 %v5296_v51, %v5292_v49  ;;  %v681_v54 = vmul.f32 %v5296_v51, %v5296_v51 }
 0x112   : > { %v5302_v55 = vpop.f32.mrf.mxu0 }
 0x113   : > { %8521 = vst [vmem:[#allocation32_spill] sm:$0xff] %v5302_v55  ;;  %722 = vadd.xlane.f32.xlu0 %v721_v52  ;;  %645 = vadd.xlane.f32.xlu1 %v644_v53  ;;  %v724_v10 = vadd.f32 %v681_v54, %v680_v56  ;;  %v682_v18 = vmul.f32 %v5302_v55, %v5302_v55  ;;  %v5351_v54 = vld [vmem:[%s8336_s2 + $0x8] sm:$0xff]  ;;  %v5356_v56 = vld [vmem:[%s8336_s2 + $0x10] sm:$0xff] }
 0x114   : > { %v5306_v7 = vpop.f32.mrf.mxu0  ;;  %v700_v52 = vadd.f32 %v665_v46, %v664_v48  ;;  %v703_v53 = vadd.f32 %v667_v47, %v666_v50  ;;  %8527 = vst [vmem:[#allocation38_spill] sm:$0xff] %v5351_v54  ;;  %8528 = vst [vmem:[#allocation39_spill] sm:$0xff] %v5356_v56  ;;  %v656_v47 = vmul.f32 %v5206_v57, %v5206_v57 }
 0x115   : > { %8522 = vst [vmem:[#allocation33_spill] sm:$0xff] %v5306_v7  ;;  %v647_v13 = vadd.f32 %v5306_v7, %v5302_v55  ;;  %v683_v14 = vmul.f32 %v5306_v7, %v5306_v7 }
 0x116   : > { %v5312_v16 = vpop.f32.mrf.mxu0  ;;  %v8558_v2 = vld [vmem:[#allocation30_spill] sm:$0xff] }
 0x117   : > { %8523 = vst [vmem:[#allocation34_spill] sm:$0xff] %v5312_v16  ;;  %725 = vadd.xlane.f32.xlu1 %v724_v10  ;;  %648 = vadd.xlane.f32.xlu0 %v647_v13  ;;  %v727_v20 = vadd.f32 %v683_v14, %v682_v18  ;;  %v684_v29 = vmul.f32 %v5312_v16, %v5312_v16  ;;  %v758_v14 = vsel %vm754_vm0, %v5351_v54, 0.0  ;;  %v759_v18 = vsel %vm754_vm0, %v5356_v56, 0.0 }
 0x118   : > { %v5316_v19 = vpop.f32.mrf.mxu0  ;;  %v614_v10 = vadd.f32 %v5216_v62, %v5214_v61  ;;  %v617_v13 = vadd.f32 %v5220_v0, %v5218_v63 }
 0x119   : > { %8524 = vst [vmem:[#allocation35_spill] sm:$0xff] %v5316_v19  ;;  %v650_v22 = vadd.f32 %v5316_v19, %v5312_v16  ;;  %v685_v24 = vmul.f32 %v5316_v19, %v5316_v19 }
 0x11a   : > { %v5322_v25 = vpop.f32.mrf.mxu0 }
 0x11b   : > { %8525 = vst [vmem:[#allocation36_spill] sm:$0xff] %v5322_v25  ;;  %728 = vadd.xlane.f32.xlu0 %v727_v20  ;;  %651 = vadd.xlane.f32.xlu1 %v650_v22  ;;  %v730_v34 = vadd.f32 %v685_v24, %v684_v29  ;;  %v686_v41 = vmul.f32 %v5322_v25, %v5322_v25  ;;  %v777_v20 = vsel %vm773_vm1, %v758_v14, 0.0  ;;  %v780_v22 = vsel %vm773_vm1, %v759_v18, 0.0  ;;  %v5402_v14 = vpop.xlane.xlu1 %817  ;;  %v5404_v18 = vpop.xlane.xlu0 %820 }
 0x11c   : > { %v5329_v32 = vpop.f32.mrf.mxu0  ;;  %v661_v24 = vmul.f32 %v5216_v62, %v5216_v62  ;;  %v660_v29 = vmul.f32 %v5214_v61, %v5214_v61  ;;  %8530 = vst [vmem:[#allocation41_spill] sm:$0xff] %v5402_v14  ;;  %8531 = vst [vmem:[#allocation42_spill] sm:$0xff] %v5404_v18  ;;  %v1050_v4 = vmul.f32 %v5402_v14, %v5402_v14  ;;  %v1002_v5 = vmul.f32 2.0, %v5402_v14 }
 0x11d   : > { %8526 = vst [vmem:[#allocation37_spill] sm:$0xff] %v5329_v32  ;;  %v653_v35 = vadd.f32 %v5329_v32, %v5322_v25  ;;  %v687_v40 = vmul.f32 %v5329_v32, %v5329_v32  ;;  %v971_v9 = vmul.f32 256.0, %v5404_v18  ;;  %v1003_v8 = vmul.f32 2.0, %v5404_v18 }
 0x11e   : > { %v970_v17 = vmul.f32 256.0, %v5402_v14  ;;  %v1066_v7 = vmul.f32 256.0, %v1050_v4 }
 0x11f   : > { %731 = vadd.xlane.f32.xlu1 %v730_v34  ;;  %654 = vadd.xlane.f32.xlu0 %v653_v35  ;;  %v733_v44 = vadd.f32 %v687_v40, %v686_v41  ;;  %v662_v34 = vmul.f32 %v5218_v63, %v5218_v63  ;;  %v694_v35 = vadd.f32 %v661_v24, %v660_v29  ;;  %v5381_v40 = vld [vmem:[%s8336_s2] sm:$0xff] }
 0x120   : > { %8529 = vst [vmem:[#allocation40_spill] sm:$0xff] %v5381_v40  ;;  %v608_v41 = vadd.f32 %v5208_v58, %v5206_v57  ;;  %v757_v46 = vsel %vm754_vm0, %v5381_v40, 0.0  ;;  %v1051_v63 = vmul.f32 %v5404_v18, %v5404_v18 }
 0x121   : > { %v697_v38 = vadd.f32 %v663_v26, %v662_v34  ;;  %v774_v48 = vsel %vm773_vm1, %v757_v46, 0.0  ;;  %v840_v34 = vsel %vm822_vm4, %v5048_v6, 0.0 }
 0x122   : > { %v1067_v21 = vmul.f32 256.0, %v1051_v63 }
 0x123   : > { %784 = vadd.xlane.f32.xlu1 %v783_v42  ;;  %734 = vadd.xlane.f32.xlu0 %v733_v44  ;;  %v611_v42 = vadd.f32 %v5212_v60, %v5210_v59  ;;  %v657_v44 = vmul.f32 %v5208_v58, %v5208_v58 }
 0x125   : > { %v688_v50 = vadd.f32 %v657_v44, %v656_v47  ;;  %v907_v44 = vsel %vm889_vm5, %v5048_v6, 0.0 }
 0x126   : > { %v953_v47 = vsel %vm773_vm1, %v907_v44, 0.0 }
 0x127   : > { %701 = vadd.xlane.f32.xlu1 %v700_v52  ;;  %704 = vadd.xlane.f32.xlu0 %v703_v53  ;;  %v659_v52 = vmul.f32 %v5212_v60, %v5212_v60  ;;  %v658_v53 = vmul.f32 %v5210_v59, %v5210_v59 }
 0x12b   : > { %615 = vadd.xlane.f32.xlu1 %v614_v10  ;;  %618 = vadd.xlane.f32.xlu0 %v617_v13  ;;  %v691_v10 = vadd.f32 %v659_v52, %v658_v53  ;;  %v358_v13 = vld [vmem:[%s8343_s9] sm:$0xff] }
 0x12c   : > { %4327 = vmatprep.mubr.f32.mxu1 %v358_v13  ;;  %4383 = vmatprep.mubr.f32.mxu0 %v358_v13  ;;  %v836_v13 = vsel %vm822_vm4, %v5155_v33, 0.0 }
 0x12f   : > { %778 = vadd.xlane.f32.xlu1 %v777_v20  ;;  %781 = vadd.xlane.f32.xlu0 %v780_v22  ;;  %v5406_v20 = vpop.xlane.xlu1 %814  ;;  %v5408_v22 = vpop.xlane.xlu0 %811 }
 0x130   : > { %8532 = vst [vmem:[#allocation43_spill] sm:$0xff] %v5406_v20  ;;  %8533 = vst [vmem:[#allocation44_spill] sm:$0xff] %v5408_v22  ;;  %v1048_v0 = vmul.f32 %v5408_v22, %v5408_v22  ;;  %v5494_v12 = vmul.f32 256.0, %v5408_v22  ;;  %v1049_v11 = vmul.f32 %v5406_v20, %v5406_v20  ;;  %v1000_v28 = vmul.f32 2.0, %v5408_v22 }
 0x131   : > { %v1001_v45 = vmul.f32 2.0, %v5406_v20  ;;  %v969_v16 = vmul.f32 256.0, %v5406_v20 }
 0x132   : > { %v1064_v19 = vmul.f32 256.0, %v1048_v0 }
 0x133   : > { %695 = vadd.xlane.f32.xlu1 %v694_v35  ;;  %698 = vadd.xlane.f32.xlu0 %v697_v38  ;;  %v5410_v24 = vpop.xlane.xlu1 %808  ;;  %v5412_v26 = vpop.xlane.xlu0 %805  ;;  %v838_v35 = vsel %vm822_vm4, %v5137_v27, 0.0  ;;  %v839_v38 = vsel %vm822_vm4, %v5040_v3, 0.0 }
 0x134   : > { %8534 = vst [vmem:[#allocation45_spill] sm:$0xff] %v5410_v24  ;;  %8535 = vst [vmem:[#allocation46_spill] sm:$0xff] %v5412_v26  ;;  %v880_v46 = vsel %vm773_vm1, %v838_v35, 0.0  ;;  %v1046_v31 = vmul.f32 %v5412_v26, %v5412_v26  ;;  %v5504_v49 = vmul.f32 256.0, %v5412_v26  ;;  %v998_v32 = vmul.f32 2.0, %v5412_v26 }
 0x135   : > { %v967_v55 = vmul.f32 256.0, %v5410_v24  ;;  %v999_v37 = vmul.f32 2.0, %v5410_v24  ;;  %v1047_v43 = vmul.f32 %v5410_v24, %v5410_v24 }
 0x136   : > { %v1062_v0 = vmul.f32 256.0, %v1046_v31 }
 0x137   : > { %609 = vadd.xlane.f32.xlu1 %v608_v41  ;;  %612 = vadd.xlane.f32.xlu0 %v611_v42  ;;  %v5414_v29 = vpop.xlane.xlu1 %802  ;;  %v886_v41 = vsel %vm773_vm1, %v840_v34, 0.0  ;;  %v883_v42 = vsel %vm773_vm1, %v839_v38, 0.0  ;;  %v5440_v52 = vpop.xlane.xlu0 %799 }
 0x138   : > { %8536 = vst [vmem:[#allocation47_spill] sm:$0xff] %v5440_v52 }
 0x13b   : > { %689 = vadd.xlane.f32.xlu1 %v688_v50  ;;  %775 = vadd.xlane.f32.xlu0 %v774_v48  ;;  %v837_v48 = vsel %vm822_vm4, %v5146_v30, 0.0  ;;  %v906_v50 = vsel %vm889_vm5, %v5040_v3, 0.0  ;;  %v5442_v53 = vpop.xlane.xlu1 %796  ;;  %v5449_v34 = vpop.xlane.xlu0 %793  ;;  %v874_v3 = vsel %vm773_vm1, %v836_v13, 0.0 }
 0x13c   : > { %v877_v6 = vsel %vm773_vm1, %v837_v48, 0.0 }
 0x13f   : > { %692 = vadd.xlane.f32.xlu0 %v691_v10  ;;  %887 = vadd.xlane.f32.xlu1 %v886_v41  ;;  %v950_v10 = vsel %vm773_vm1, %v906_v50, 0.0  ;;  %v5451_v35 = vpop.xlane.xlu1 %790  ;;  %v5454_v38 = vpop.xlane.xlu0 %787 }
 0x140   : > { %v5523_v31 = vmul.f32 2.0, %v5454_v38 }
 0x143   : > { %884 = vadd.xlane.f32.xlu0 %v883_v42  ;;  %881 = vadd.xlane.f32.xlu1 %v880_v46 }
 0x147   : > { %954 = vadd.xlane.f32.xlu0 %v953_v47  ;;  %878 = vadd.xlane.f32.xlu1 %v877_v6 }
 0x14b   : > { %951 = vadd.xlane.f32.xlu0 %v950_v10  ;;  %875 = vadd.xlane.f32.xlu1 %v874_v3 }
 0x17c   : > { %v5456_v41 = vpop.xlane.xlu1 %621 }
 0x180   : > { %v5458_v42 = vpop.xlane.xlu0 %624 }
 0x184   : > { %v5460_v44 = vpop.xlane.xlu1 %627 }
 0x188   : > { %v5462_v46 = vpop.xlane.xlu1 %707  ;;  %v5464_v33 = vpop.xlane.xlu0 %630 }
 0x18c   : > { %v5466_v47 = vpop.xlane.xlu0 %710  ;;  %v5468_v48 = vpop.xlane.xlu1 %633 }
 0x190   : > { %v5470_v50 = vpop.xlane.xlu1 %713  ;;  %v5472_v6 = vpop.xlane.xlu0 %636 }
 0x194   : > { %v5474_v10 = vpop.xlane.xlu0 %716  ;;  %v5476_v13 = vpop.xlane.xlu1 %639 }
 0x198   : > { %v5478_v3 = vpop.xlane.xlu1 %719  ;;  %v5480_v1 = vpop.xlane.xlu0 %642 }
 0x19c   : > { %v723_v57 = vpop.xlane.xlu0 %722  ;;  %v5482_v58 = vpop.xlane.xlu1 %645 }
 0x19d   : > { %v1016_v22 = vmul.f32 %v1000_v28, %v5482_v58  ;;  %v1014_v28 = vmul.f32 %v998_v32, %v5476_v13  ;;  %v1043_v32 = vmul.f32 %v5442_v53, %v5442_v53 }
 0x1a0   : > { %v726_v60 = vpop.xlane.xlu1 %725  ;;  %v649_v59 = vpop.xlane.xlu0 %648 }
 0x1a1   : > { %v1017_v25 = vmul.f32 %v1001_v45, %v649_v59  ;;  %v5516_v45 = vmul.f32 256.0, %v5440_v52  ;;  %v1032_v26 = vadd.f32 %v1016_v22, %v726_v60 }
 0x1a4   : > { %v729_v61 = vpop.xlane.xlu0 %728  ;;  %v652_v62 = vpop.xlane.xlu1 %651 }
 0x1a5   : > { %v1018_v51 = vmul.f32 %v1002_v5, %v652_v62  ;;  %v1065_v5 = vmul.f32 256.0, %v1049_v11  ;;  %v1033_v4 = vadd.f32 %v1017_v25, %v729_v61  ;;  %v997_v61 = vmul.f32 2.0, %v5414_v29 }
 0x1a6   : > { %v1063_v25 = vmul.f32 256.0, %v1047_v43  ;;  %v986_v56 = vadd.f32 %v970_v17, %v652_v62  ;;  %v1080_v43 = vadd.f32 %v1064_v19, %v1032_v26  ;;  %v5541_v62 = vmul.f32 256.0, %v5451_v35 }
 0x1a7   : > { %v995_v17 = vmul.f32 2.0, %v5442_v53  ;;  %v984_v19 = vadd.f32 %v5494_v12, %v5482_v58  ;;  %v994_v26 = vmul.f32 2.0, %v5449_v34  ;;  %v962_v12 = vmul.f32 256.0, %v5449_v34 }
 0x1a8   : > { %v732_v15 = vpop.xlane.xlu1 %731  ;;  %v655_v23 = vpop.xlane.xlu0 %654 }
 0x1a9   : > { %v1034_v39 = vadd.f32 %v1018_v51, %v732_v15  ;;  %v1019_v63 = vmul.f32 %v1003_v8, %v655_v23  ;;  %v996_v8 = vmul.f32 2.0, %v5440_v52  ;;  %v1044_v15 = vmul.f32 %v5440_v52, %v5440_v52 }
 0x1aa   : > { %v1015_v51 = vmul.f32 %v999_v37, %v5480_v1  ;;  %v987_v24 = vadd.f32 %v971_v9, %v655_v23  ;;  %v1081_v52 = vadd.f32 %v1065_v5, %v1033_v4  ;;  %v1013_v23 = vmul.f32 %v997_v61, %v5472_v6 }
 0x1ab   : > { %v1082_v11 = vadd.f32 %v1066_v7, %v1034_v39  ;;  %v1060_v9 = vmul.f32 256.0, %v1044_v15  ;;  %v1045_v37 = vmul.f32 %v5414_v29, %v5414_v29  ;;  %v1030_v39 = vadd.f32 %v1014_v28, %v5478_v3 }
 0x1ac   : > { %v5512_v18 = vpop.xlane.xlu1 %784  ;;  %v735_v14 = vpop.xlane.xlu0 %734  ;;  %v1031_v54 = vadd.f32 %v1015_v51, %v723_v57  ;;  %v985_v7 = vadd.f32 %v969_v16, %v649_v59  ;;  %v1029_v59 = vadd.f32 %v1013_v23, %v5474_v10  ;;  %v1011_v3 = vmul.f32 %v995_v17, %v5464_v33 }
 0x1ad   : > { %v1035_v20 = vadd.f32 %v1019_v63, %v735_v14  ;;  %v1098_v57 = vsel %vm754_vm0, %v986_v56, %v1082_v11  ;;  %v1061_v5 = vmul.f32 256.0, %v1045_v37  ;;  %v1096_v58 = vsel %vm754_vm0, %v984_v19, %v1080_v43 }
 0x1ae   : > { %v1079_v16 = vadd.f32 %v1063_v25, %v1031_v54  ;;  %v1097_v56 = vsel %vm754_vm0, %v985_v7, %v1081_v52  ;;  %v983_v54 = vadd.f32 %v967_v55, %v5480_v1  ;;  %v1010_v52 = vmul.f32 %v994_v26, %v5460_v44 }
 0x1af   : > { %v1083_v40 = vadd.f32 %v1067_v21, %v1035_v20  ;;  %v965_v21 = vmul.f32 256.0, %v5414_v29  ;;  %v1042_v10 = vmul.f32 %v5449_v34, %v5449_v34  ;;  %v1059_v15 = vmul.f32 256.0, %v1043_v32 }
 0x1b0   : > { %v5527_v14 = vpop.xlane.xlu1 %701  ;;  %v5529_v63 = vpop.xlane.xlu0 %704  ;;  %v1077_v1 = vadd.f32 %v1061_v5, %v1029_v59  ;;  %v982_v55 = vadd.f32 %v5504_v49, %v5476_v13  ;;  %v1026_v28 = vadd.f32 %v1010_v52, %v5462_v46  ;;  %v1041_v25 = vmul.f32 %v5451_v35, %v5451_v35 }
 0x1b1   : > { %v1099_v60 = vsel %vm754_vm0, %v987_v24, %v1083_v40  ;;  %v1012_v40 = vmul.f32 %v996_v8, %v5468_v48  ;;  %v993_v24 = vmul.f32 2.0, %v5451_v35  ;;  %v1078_v8 = vadd.f32 %v1062_v0, %v1030_v39 }
 0x1b2   : > { %4295 = vmatprep.subr.mxu1 %v1099_v60  ;;  %v1095_v0 = vsel %vm754_vm0, %v983_v54, %v1079_v16  ;;  %v1008_v37 = vmul.f32 %v5523_v31, %v5456_v41  ;;  %v1058_v39 = vmul.f32 256.0, %v1042_v10  ;;  %v963_v46 = vmul.f32 256.0, %v5442_v53 }
 0x1b3   : > { %4296 = vmatpush3.msra.mxu1 %v1099_v60  ;;  %v1028_v4 = vadd.f32 %v1012_v40, %v5470_v50  ;;  %v1027_v50 = vadd.f32 %v1011_v3, %v5466_v47  ;;  %v1009_v61 = vmul.f32 %v993_v24, %v5458_v42  ;;  %v991_v60 = vmul.f32 2.0, %v5512_v18 }
 0x1b4   : > { %v5547_v20 = vpop.xlane.xlu1 %615  ;;  %4297 = vmatprep.subr.mxu1 %v1098_v57  ;;  %v5549_v22 = vpop.xlane.xlu0 %618  ;;  %v981_v47 = vadd.f32 %v965_v21, %v5472_v6  ;;  %v1094_v13 = vsel %vm754_vm0, %v982_v55, %v1078_v8  ;;  %v1040_v43 = vmul.f32 %v5454_v38, %v5454_v38  ;;  %v980_v6 = vadd.f32 %v5516_v45, %v5468_v48 }
 0x1b5   : > { %4298 = vmatpush3.msra.mxu1 %v1098_v57  ;;  %v1076_v23 = vadd.f32 %v1060_v9, %v1028_v4  ;;  %v1075_v57 = vadd.f32 %v1059_v15, %v1027_v50  ;;  %v1025_v21 = vadd.f32 %v1009_v61, %v5529_v63  ;;  %v1024_v31 = vadd.f32 %v1008_v37, %v5527_v14 }
 0x1b6   : > { %4299 = vmatprep.subr.mxu1 %v1097_v56  ;;  %v1093_v17 = vsel %vm754_vm0, %v981_v47, %v1077_v1  ;;  %v1057_v32 = vmul.f32 256.0, %v1041_v25  ;;  %v1007_v40 = vmul.f32 %v991_v60, %v5549_v22  ;;  %v1039_v59 = vmul.f32 %v5512_v18, %v5512_v18 }
 0x1b7   : > { %4300 = vmatpush3.msra.mxu1 %v1097_v56  ;;  %v1074_v16 = vadd.f32 %v1058_v39, %v1026_v28  ;;  %v979_v19 = vadd.f32 %v963_v46, %v5464_v33  ;;  %v1092_v45 = vsel %vm754_vm0, %v980_v6, %v1076_v23  ;;  %v960_v63 = vmul.f32 256.0, %v5454_v38 }
 0x1b8   : > { %v5567_v51 = vpop.xlane.xlu1 %778  ;;  %4301 = vmatprep.subr.mxu1 %v1096_v58  ;;  %v5569_v11 = vpop.xlane.xlu0 %781  ;;  %v1056_v56 = vmul.f32 256.0, %v1040_v43  ;;  %v978_v26 = vadd.f32 %v962_v12, %v5460_v44  ;;  %v1073_v3 = vadd.f32 %v1057_v32, %v1025_v21  ;;  %v959_v8 = vmul.f32 256.0, %v5512_v18 }
 0x1b9   : > { %4302 = vmatpush3.msra.mxu1 %v1096_v58  ;;  %v990_v49 = vmul.f32 2.0, %v5569_v11  ;;  %v1038_v5 = vmul.f32 %v5569_v11, %v5569_v11  ;;  %v1091_v33 = vsel %vm754_vm0, %v979_v19, %v1075_v57  ;;  %v1055_v54 = vmul.f32 256.0, %v1039_v59  ;;  %v359_v59 = vld [vmem:[%s8343_s9 + $0x8] sm:$0xff]  ;;  %v361_v19 = vld [vmem:[%s8343_s9 + $0x18] sm:$0xff] }
 0x1ba   : > { %4303 = vmatprep.subr.mxu1 %v1095_v0  ;;  %v1072_v4 = vadd.f32 %v1056_v56, %v1024_v31  ;;  %v977_v52 = vadd.f32 %v5541_v62, %v5458_v42  ;;  %v989_v44 = vmul.f32 2.0, %v5567_v51  ;;  %v1090_v12 = vsel %vm754_vm0, %v978_v26, %v1074_v16  ;;  %v360_v16 = vld [vmem:[%s8343_s9 + $0x10] sm:$0xff]  ;;  %v365_v56 = vld [vmem:[%s8343_s9 + $0x38] sm:$0xff] }
 0x1bb   : > { %4304 = vmatpush3.msra.mxu1 %v1095_v0  ;;  %v1006_v48 = vmul.f32 %v990_v49, %v5547_v20  ;;  %v976_v15 = vadd.f32 %v960_v63, %v5456_v41  ;;  %v1037_v55 = vmul.f32 %v5567_v51, %v5567_v51  ;;  %v958_v0 = vmul.f32 256.0, %v5569_v11  ;;  %v364_v63 = vld [vmem:[%s8343_s9 + $0x30] sm:$0xff] }
 0x1bc   : > { %v696_v7 = vpop.xlane.xlu1 %695  ;;  %4305 = vmatprep.subr.mxu1 %v1094_v13  ;;  %v699_v9 = vpop.xlane.xlu0 %698  ;;  %v1054_v61 = vmul.f32 256.0, %v1038_v5  ;;  %v1089_v28 = vsel %vm754_vm0, %v977_v52, %v1073_v3  ;;  %v975_v41 = vadd.f32 %v959_v8, %v5549_v22  ;;  %v957_v23 = vmul.f32 256.0, %v5567_v51  ;;  %v368_v26 = vld [vmem:[%s8343_s9 + $0x50] sm:$0xff]  ;;  %v369_v3 = vld [vmem:[%s8343_s9 + $0x58] sm:$0xff]  ;;  %v370_v5 = vld [vmem:[%s8343_s9 + $0x60] sm:$0xff] }
 0x1bd   : > { %4306 = vmatpush3.msra.mxu1 %v1094_v13  ;;  %v1023_v14 = vadd.f32 %v1007_v40, %v699_v9  ;;  %v1022_v10 = vadd.f32 %v1006_v48, %v696_v7  ;;  %v1088_v25 = vsel %vm754_vm0, %v976_v15, %v1072_v4  ;;  %v1053_v37 = vmul.f32 256.0, %v1037_v55  ;;  %v362_v48 = vld [vmem:[%s8343_s9 + $0x20] sm:$0xff]  ;;  %v372_v4 = vld [vmem:[%s8343_s9 + $0x70] sm:$0xff]  ;;  %v373_v8 = vld [vmem:[%s8343_s9 + $0x78] sm:$0xff] }
 0x1be   : > { %4307 = vmatprep.subr.mxu1 %v1093_v17  ;;  %v974_v43 = vadd.f32 %v958_v0, %v5547_v20  ;;  %v905_v52 = vsel %vm889_vm5, %v5137_v27, 0.0 }
 0x1bf   : > { %4308 = vmatpush3.msra.mxu1 %v1093_v17  ;;  %v1071_v50 = vadd.f32 %v1055_v54, %v1023_v14  ;;  %v1070_v60 = vadd.f32 %v1054_v61, %v1022_v10  ;;  %v366_v14 = vld [vmem:[%s8343_s9 + $0x40] sm:$0xff]  ;;  %v8538_v54 = vmov 0.0  }
 0x1c0   : > { %4309 = vmatprep.subr.mxu1 %v1092_v45  ;;  %v613_v24 = vpop.xlane.xlu0 %612  ;;  %v610_v58 = vpop.xlane.xlu1 %609 }
 0x1c1   : > { %4310 = vmatpush3.msra.mxu1 %v1092_v45  ;;  %v1005_v47 = vmul.f32 %v989_v44, %v613_v24  ;;  %v1087_v46 = vsel %vm754_vm0, %v975_v41, %v1071_v50  ;;  %v973_v6 = vadd.f32 %v957_v23, %v613_v24  ;;  %v1086_v17 = vsel %vm754_vm0, %v974_v43, %v1070_v60  ;;  %v363_v45 = vld [vmem:[%s8343_s9 + $0x28] sm:$0xff] }
 0x1c2   : > { %4311 = vmatprep.subr.mxu1 %v1091_v33  ;;  %v367_v24 = vld [vmem:[%s8343_s9 + $0x48] sm:$0xff]  ;;  %v947_v44 = vsel %vm773_vm1, %v905_v52, 0.0 }
 0x1c3   : > { %4312 = vmatpush3.msra.mxu1 %v1091_v33  ;;  %v371_v33 = vld [vmem:[%s8343_s9 + $0x68] sm:$0xff]  ;;  %948 = vadd.xlane.f32.xlu0 %v947_v44 }
 0x1c4   : > { %4313 = vmatprep.subr.mxu1 %v1090_v12  ;;  %v5616_v1 = vpop.xlane.xlu0 %775  ;;  %v690_v13 = vpop.xlane.xlu1 %689 }
 0x1c5   : > { %8537 = vst [vmem:[#allocation48_spill] sm:$0xff] %v5616_v1  ;;  %v988_v42 = vmul.f32 2.0, %v5616_v1  ;;  %v1036_v62 = vmul.f32 %v5616_v1, %v5616_v1  ;;  %4314 = vmatpush3.msra.mxu1 %v1090_v12  ;;  %v956_v7 = vmul.f32 256.0, %v5616_v1  ;;  %v904_v12 = vsel %vm889_vm5, %v5146_v30, 0.0 }
 0x1c6   : > { %4315 = vmatprep.subr.mxu1 %v1089_v28  ;;  %v944_v15 = vsel %vm773_vm1, %v904_v12, 0.0 }
 0x1c7   : > { %4316 = vmatpush3.msra.mxu1 %v1089_v28  ;;  %v1004_v49 = vmul.f32 %v988_v42, %v610_v58  ;;  %v1052_v57 = vmul.f32 256.0, %v1036_v62  ;;  %v972_v20 = vadd.f32 %v956_v7, %v610_v58  ;;  %v835_v58 = vsel %vm822_vm4, %v5164_v36, 0.0  ;;  %945 = vadd.xlane.f32.xlu0 %v944_v15 }
 0x1c8   : > { %4317 = vmatprep.subr.mxu1 %v1088_v25  ;;  %v693_v39 = vpop.xlane.xlu0 %692  ;;  %v871_v10 = vsel %vm773_vm1, %v835_v58, 0.0 }
 0x1c9   : > { %v1021_v22 = vadd.f32 %v1005_v47, %v693_v39  ;;  %4318 = vmatpush3.msra.mxu1 %v1088_v25  ;;  %v1020_v9 = vadd.f32 %v1004_v49, %v690_v13  ;;  %872 = vadd.xlane.f32.xlu1 %v871_v10 }
 0x1ca   : > { %4319 = vmatprep.subr.mxu1 %v1087_v46 }
 0x1cb   : > { %v1069_v21 = vadd.f32 %v1053_v37, %v1021_v22  ;;  %4320 = vmatpush3.msra.mxu1 %v1087_v46  ;;  %v1068_v31 = vadd.f32 %v1052_v57, %v1020_v9 }
 0x1cc   : > { %4321 = vmatprep.subr.mxu1 %v1086_v17 }
 0x1cd   : > { %4322 = vmatpush3.msra.mxu1 %v1086_v17  ;;  %v1085_v32 = vsel %vm754_vm0, %v973_v6, %v1069_v21  ;;  %v1084_v40 = vsel %vm754_vm0, %v972_v20, %v1068_v31 }
 0x1ce   : > { %4323 = vmatprep.subr.mxu1 %v1085_v32 }
 0x1cf   : > { %4324 = vmatpush3.msra.mxu1 %v1085_v32 }
 0x1d0   : > { %4325 = vmatprep.subr.mxu1 %v1084_v40 }
 0x1d1   : > { %4326 = vmatpush3.msra.mxu1 %v1084_v40 }
 0x1d2   : > { %4328 = vmatmul.mubr.f32.vlgmr.msra.gmra.mxu1 %v359_v59 }
 0x1d3   : > { %4330 = vmatprep.mubr.f32.mxu1 %v360_v16 }
 0x1d6   : > { %4331 = vmatmul.mubr.f32.gmra.mxu1 %v361_v19 }
 0x1d7   : > { %4333 = vmatprep.mubr.f32.mxu1 %v362_v48 }
 0x1da   : > { %4334 = vmatmul.mubr.f32.gmra.mxu1 %v363_v45 }
 0x1db   : > { %4336 = vmatprep.mubr.f32.mxu1 %v364_v63 }
 0x1de   : > { %4337 = vmatmul.mubr.f32.gmra.mxu1 %v365_v56 }
 0x1df   : > { %4339 = vmatprep.mubr.f32.mxu1 %v366_v14 }
 0x1e2   : > { %4340 = vmatmul.mubr.f32.gmra.mxu1 %v367_v24 }
 0x1e3   : > { %4342 = vmatprep.mubr.f32.mxu1 %v368_v26 }
 0x1e6   : > { %4343 = vmatmul.mubr.f32.gmra.mxu1 %v369_v3 }
 0x1e7   : > { %4345 = vmatprep.mubr.f32.mxu1 %v370_v5 }
 0x1ea   : > { %4346 = vmatmul.mubr.f32.gmra.mxu1 %v371_v33 }
 0x1eb   : > { %4348 = vmatprep.mubr.f32.mxu1 %v372_v4 }
 0x1ee   : > { %4349 = vmatmul.mubr.f32.gmra.mxu1 %v373_v8 }
 0x1ef   : > { %1694 = vmatprep.mubr.f32.mxu1 %v8538_v54 }
 0x292   : > { %v4329_v50 = vpop.f32.mrf.mxu1 }
 0x293   : > { %v5698_v55 = vmul.f32 0.0009765625, %v4329_v50 }
 0x294   : > { %v5700_v36 = vpop.f32.mrf.mxu1 }
 0x295   : > { %v1262_v27 = vsel %vm754_vm0, %v5698_v55, 0.0 }
 0x296   : > { %v4332_v0 = vpop.f32.mrf.mxu1  ;;  %v1281_v61 = vsel %vm1277_vm6, %v1262_v27, 0.0 }
 0x297   : > { %v1248_v42 = vmul.f32 0.0009765625, %v4332_v0  ;;  %1282 = vadd.xlane.f32.xlu1 %v1281_v61 }
 0x298   : > { %v1176_v62 = vpop.f32.mrf.mxu1 }
 0x299   : > { %v1247_v30 = vmul.f32 0.0009765625, %v1176_v62  ;;  %v1329_v28 = vsel %vm822_vm4, %v1248_v42, 0.0  ;;  %v1264_v41 = vsel %vm754_vm0, %v1248_v42, 0.0 }
 0x29a   : > { %v1351_v25 = vsel %vm1277_vm6, %v1329_v28, 0.0  ;;  %v1287_v60 = vsel %vm1277_vm6, %v1264_v41, 0.0  ;;  %v4335_v23 = vpop.f32.mrf.mxu1 }
 0x29b   : > { %1352 = vadd.xlane.f32.xlu0 %v1351_v25  ;;  %1288 = vadd.xlane.f32.xlu1 %v1287_v60  ;;  %v1250_v47 = vmul.f32 0.0009765625, %v4335_v23  ;;  %v1328_v49 = vsel %vm822_vm4, %v1247_v30, 0.0  ;;  %v1263_v13 = vsel %vm754_vm0, %v1247_v30, 0.0 }
 0x29c   : > { %v1186_v37 = vpop.f32.mrf.mxu1  ;;  %v1348_v43 = vsel %vm1277_vm6, %v1328_v49, 0.0  ;;  %v1284_v22 = vsel %vm1277_vm6, %v1263_v13, 0.0 }
 0x29d   : > { %v1249_v39 = vmul.f32 0.0009765625, %v1186_v37  ;;  %v1266_v46 = vsel %vm754_vm0, %v1250_v47, 0.0  ;;  %v1331_v20 = vsel %vm822_vm4, %v1250_v47, 0.0 }
 0x29e   : > { %v4338_v7 = vpop.f32.mrf.mxu1  ;;  %v1293_v6 = vsel %vm1277_vm6, %v1266_v46, 0.0  ;;  %v1357_v16 = vsel %vm1277_vm6, %v1331_v20, 0.0 }
 0x29f   : > { %1349 = vadd.xlane.f32.xlu0 %v1348_v43  ;;  %1285 = vadd.xlane.f32.xlu1 %v1284_v22  ;;  %v1252_v9 = vmul.f32 0.0009765625, %v4338_v7  ;;  %v1265_v57 = vsel %vm754_vm0, %v1249_v39, 0.0  ;;  %v1330_v19 = vsel %vm822_vm4, %v1249_v39, 0.0 }
 0x2a0   : > { %v1290_v21 = vsel %vm1277_vm6, %v1265_v57, 0.0  ;;  %v1196_v17 = vpop.f32.mrf.mxu1  ;;  %v1354_v56 = vsel %vm1277_vm6, %v1330_v19, 0.0 }
 0x2a1   : > { %v1251_v31 = vmul.f32 0.0009765625, %v1196_v17  ;;  %v1268_v32 = vsel %vm754_vm0, %v1252_v9, 0.0  ;;  %v1333_v14 = vsel %vm822_vm4, %v1252_v9, 0.0 }
 0x2a2   : > { %v1299_v40 = vsel %vm1277_vm6, %v1268_v32, 0.0  ;;  %v4341_v45 = vpop.f32.mrf.mxu1  ;;  %v1363_v33 = vsel %vm1277_vm6, %v1333_v14, 0.0 }
 0x2a3   : > { %1294 = vadd.xlane.f32.xlu0 %v1293_v6  ;;  %1291 = vadd.xlane.f32.xlu1 %v1290_v21  ;;  %v1267_v59 = vsel %vm754_vm0, %v1251_v31, 0.0  ;;  %v1254_v63 = vmul.f32 0.0009765625, %v4341_v45  ;;  %v1332_v24 = vsel %vm822_vm4, %v1251_v31, 0.0 }
 0x2a4   : > { %v1296_v48 = vsel %vm1277_vm6, %v1267_v59, 0.0  ;;  %v1206_v26 = vpop.f32.mrf.mxu1  ;;  %v1360_v4 = vsel %vm1277_vm6, %v1332_v24, 0.0  ;;  %v1245_v59 = vmul.f32 0.0009765625, %v5700_v36 }
 0x2a5   : > { %v1335_v3 = vsel %vm822_vm4, %v1254_v63, 0.0  ;;  %v1270_v5 = vsel %vm754_vm0, %v1254_v63, 0.0  ;;  %v1253_v58 = vmul.f32 0.0009765625, %v1206_v26  ;;  %v4802_v63 = vld [vmem:[%s8336_s2 + $0x48] sm:$0xff] }
 0x2a6   : > { %v4344_v8 = vpop.f32.mrf.mxu1  ;;  %v1369_v52 = vsel %vm1277_vm6, %v1335_v3, 0.0  ;;  %v1305_v10 = vsel %vm1277_vm6, %v1270_v5, 0.0  ;;  %v1261_v45 = vsel %vm754_vm0, %v1245_v59, 0.0  ;;  %v834_v36 = vsel %vm822_vm4, %v4802_v63, 0.0 }
 0x2a7   : > { %1358 = vadd.xlane.f32.xlu0 %v1357_v16  ;;  %1300 = vadd.xlane.f32.xlu1 %v1299_v40  ;;  %v1256_v44 = vmul.f32 0.0009765625, %v4344_v8  ;;  %v1334_v15 = vsel %vm822_vm4, %v1253_v58, 0.0  ;;  %v1269_v50 = vsel %vm754_vm0, %v1253_v58, 0.0  ;;  %v1278_v14 = vsel %vm1277_vm6, %v1261_v45, 0.0  ;;  %v4804_v58 = vld [vmem:[%s8336_s2 + $0x50] sm:$0xff]  ;;  %v8540_v45 = vld [vmem:[#allocation38_spill] sm:$0xff] }
 0x2a8   : > { %v1216_v12 = vpop.f32.mrf.mxu1  ;;  %v1366_v42 = vsel %vm1277_vm6, %v1334_v15, 0.0  ;;  %v1302_v62 = vsel %vm1277_vm6, %v1269_v50, 0.0  ;;  %v868_v26 = vsel %vm773_vm1, %v834_v36, 0.0  ;;  %v1327_v5 = vsel %vm822_vm4, %v5698_v55, 0.0  ;;  %v4805_v15 = vld [vmem:[%s8336_s2 + $0x40] sm:$0xff] }
 0x2a9   : > { %v1337_v0 = vsel %vm822_vm4, %v1256_v44, 0.0  ;;  %v1272_v61 = vsel %vm754_vm0, %v1256_v44, 0.0  ;;  %v1255_v30 = vmul.f32 0.0009765625, %v1216_v12  ;;  %v833_v50 = vsel %vm822_vm4, %v4805_v15, 0.0 }
 0x2aa   : > { %v4347_v27 = vpop.f32.mrf.mxu1  ;;  %v1375_v28 = vsel %vm1277_vm6, %v1337_v0, 0.0  ;;  %v1311_v41 = vsel %vm1277_vm6, %v1272_v61, 0.0  ;;  %v865_v0 = vsel %vm773_vm1, %v833_v50, 0.0 }
 0x2ab   : > { %1355 = vadd.xlane.f32.xlu0 %v1354_v56  ;;  %1297 = vadd.xlane.f32.xlu1 %v1296_v48  ;;  %v1258_v60 = vmul.f32 0.0009765625, %v4347_v27  ;;  %v1336_v47 = vsel %vm822_vm4, %v1255_v30, 0.0  ;;  %v1271_v49 = vsel %vm754_vm0, %v1255_v30, 0.0  ;;  %v901_v27 = vsel %vm889_vm5, %v4802_v63, 0.0 }
 0x2ac   : > { %v1226_v25 = vpop.f32.mrf.mxu1  ;;  %v1372_v39 = vsel %vm1277_vm6, %v1336_v47, 0.0  ;;  %v1308_v46 = vsel %vm1277_vm6, %v1271_v49, 0.0  ;;  %v935_v61 = vsel %vm773_vm1, %v901_v27, 0.0  ;;  %v900_v30 = vsel %vm889_vm5, %v4805_v15, 0.0 }
 0x2ad   : > { %v1339_v13 = vsel %vm822_vm4, %v1258_v60, 0.0  ;;  %v1274_v37 = vsel %vm754_vm0, %v1258_v60, 0.0  ;;  %v1257_v22 = vmul.f32 0.0009765625, %v1226_v25  ;;  %v4807_v25 = vld [vmem:[%s8336_s2 + $0x30] sm:$0xff]  ;;  %v826_v63 = vsel %vm822_vm4, %v8540_v45, 0.0 }
 0x2ae   : > { %v4350_v23 = vpop.f32.mrf.mxu1  ;;  %v1381_v7 = vsel %vm1277_vm6, %v1339_v13, 0.0  ;;  %v1317_v9 = vsel %vm1277_vm6, %v1274_v37, 0.0  ;;  %v831_v60 = vsel %vm822_vm4, %v4807_v25, 0.0  ;;  %v4808_v13 = vld [vmem:[%s8336_s2 + $0x28] sm:$0xff] }
 0x2af   : > { %1364 = vadd.xlane.f32.xlu0 %v1363_v33  ;;  %1361 = vadd.xlane.f32.xlu1 %v1360_v4  ;;  %v1260_v57 = vmul.f32 0.0009765625, %v4350_v23  ;;  %v1338_v21 = vsel %vm822_vm4, %v1257_v22, 0.0  ;;  %v1273_v17 = vsel %vm754_vm0, %v1257_v22, 0.0  ;;  %v1326_v33 = vsel %vm822_vm4, %v1245_v59, 0.0  ;;  %v4803_v4 = vld [vmem:[%s8336_s2 + $0x58] sm:$0xff]  ;;  %v4809_v22 = vld [vmem:[%s8336_s2 + $0x20] sm:$0xff] }
 0x2b0   : > { %v1236_v43 = vpop.f32.mrf.mxu1  ;;  %v1378_v20 = vsel %vm1277_vm6, %v1338_v21, 0.0  ;;  %v1314_v40 = vsel %vm1277_vm6, %v1273_v17, 0.0  ;;  %v903_v8 = vsel %vm889_vm5, %v4803_v4, 0.0  ;;  %v1342_v55 = vsel %vm1277_vm6, %v1326_v33, 0.0  ;;  %v4810_v21 = vld [vmem:[%s8336_s2 + $0x18] sm:$0xff]  ;;  %v4811_v4 = vld [vmem:[%s8336_s2 + $0x8] sm:$0xff] }
 0x2b1   : > { %v1259_v6 = vmul.f32 0.0009765625, %v1236_v43  ;;  %v1276_v31 = vsel %vm754_vm0, %v1260_v57, 0.0  ;;  %v1341_v48 = vsel %vm822_vm4, %v1260_v57, 0.0  ;;  %v941_v44 = vsel %vm773_vm1, %v903_v8, 0.0 }
 0x2b2   : > { %v1323_v16 = vsel %vm1277_vm6, %v1276_v31, 0.0  ;;  %v1387_v56 = vsel %vm1277_vm6, %v1341_v48, 0.0  ;;  %v859_v47 = vsel %vm773_vm1, %v831_v60, 0.0  ;;  %v830_v37 = vsel %vm822_vm4, %v4808_v13, 0.0 }
 0x2b3   : > { %1370 = vadd.xlane.f32.xlu0 %v1369_v52  ;;  %1306 = vadd.xlane.f32.xlu1 %v1305_v10  ;;  %v1275_v32 = vsel %vm754_vm0, %v1259_v6, 0.0  ;;  %v1340_v24 = vsel %vm822_vm4, %v1259_v6, 0.0  ;;  %v902_v52 = vsel %vm889_vm5, %v4804_v58, 0.0  ;;  %v1345_v10 = vsel %vm1277_vm6, %v1327_v5, 0.0 }
 0x2b4   : > { %v1320_v19 = vsel %vm1277_vm6, %v1275_v32, 0.0  ;;  %v1384_v3 = vsel %vm1277_vm6, %v1340_v24, 0.0  ;;  %v938_v12 = vsel %vm773_vm1, %v902_v52, 0.0  ;;  %v828_v17 = vsel %vm822_vm4, %v4810_v21, 0.0  ;;  %v8541_v24 = vld [vmem:[#allocation40_spill] sm:$0xff]  ;;  %v5902_v52 = vpop.xlane.xlu1 %887 }
 0x2b5   : > { %v896_v31 = vsel %vm889_vm5, %v4809_v22, 0.0  ;;  %v850_v32 = vsel %vm773_vm1, %v828_v17, 0.0  ;;  %v893_v8 = vsel %vm889_vm5, %v4811_v4, 0.0 }
 0x2b6   : > { %v911_v58 = vsel %vm773_vm1, %v893_v8, 0.0 }
 0x2b7   : > { %1367 = vadd.xlane.f32.xlu0 %v1366_v42  ;;  %1303 = vadd.xlane.f32.xlu1 %v1302_v62  ;;  %v4806_v42 = vld [vmem:[%s8336_s2 + $0x38] sm:$0xff] }
 0x2b8   : > { %v832_v62 = vsel %vm822_vm4, %v4806_v42, 0.0  ;;  %v899_v23 = vsel %vm889_vm5, %v4806_v42, 0.0 }
 0x2b9   : > { %v929_v49 = vsel %vm773_vm1, %v899_v23, 0.0 }
 0x2bb   : > { %1376 = vadd.xlane.f32.xlu0 %v1375_v28  ;;  %1312 = vadd.xlane.f32.xlu1 %v1311_v41  ;;  %v862_v28 = vsel %vm773_vm1, %v832_v62, 0.0  ;;  %v932_v41 = vsel %vm773_vm1, %v900_v30, 0.0 }
 0x2bf   : > { %1373 = vadd.xlane.f32.xlu0 %v1372_v39  ;;  %1309 = vadd.xlane.f32.xlu1 %v1308_v46  ;;  %v898_v39 = vsel %vm889_vm5, %v4807_v25, 0.0  ;;  %v856_v46 = vsel %vm773_vm1, %v830_v37, 0.0 }
 0x2c0   : > { %v926_v43 = vsel %vm773_vm1, %v898_v39, 0.0 }
 0x2c3   : > { %1382 = vadd.xlane.f32.xlu0 %v1381_v7  ;;  %1318 = vadd.xlane.f32.xlu1 %v1317_v9  ;;  %v829_v7 = vsel %vm822_vm4, %v4809_v22, 0.0  ;;  %v897_v9 = vsel %vm889_vm5, %v4808_v13, 0.0 }
 0x2c4   : > { %v853_v57 = vsel %vm773_vm1, %v829_v7, 0.0  ;;  %v923_v6 = vsel %vm773_vm1, %v897_v9, 0.0 }
 0x2c7   : > { %1379 = vadd.xlane.f32.xlu0 %v1378_v20  ;;  %1315 = vadd.xlane.f32.xlu1 %v1314_v40  ;;  %v920_v20 = vsel %vm773_vm1, %v896_v31, 0.0  ;;  %v8539_v40 = vld [vmem:[#allocation39_spill] sm:$0xff] }
 0x2c8   : > { %v827_v59 = vsel %vm822_vm4, %v8539_v40, 0.0  ;;  %v894_v36 = vsel %vm889_vm5, %v8539_v40, 0.0 }
 0x2cb   : > { %1324 = vadd.xlane.f32.xlu0 %v1323_v16  ;;  %1321 = vadd.xlane.f32.xlu1 %v1320_v19  ;;  %v895_v16 = vsel %vm889_vm5, %v4810_v21, 0.0  ;;  %v847_v19 = vsel %vm773_vm1, %v827_v59, 0.0 }
 0x2cc   : > { %v917_v48 = vsel %vm773_vm1, %v895_v16, 0.0 }
 0x2cf   : > { %1388 = vadd.xlane.f32.xlu0 %v1387_v56  ;;  %1279 = vadd.xlane.f32.xlu1 %v1278_v14  ;;  %v844_v56 = vsel %vm773_vm1, %v826_v63, 0.0  ;;  %v914_v14 = vsel %vm773_vm1, %v894_v36, 0.0 }
 0x2d3   : > { %1385 = vadd.xlane.f32.xlu0 %v1384_v3  ;;  %869 = vadd.xlane.f32.xlu1 %v868_v26  ;;  %v825_v26 = vsel %vm822_vm4, %v8541_v24, 0.0  ;;  %v892_v3 = vsel %vm889_vm5, %v8541_v24, 0.0 }
 0x2d4   : > { %v841_v5 = vsel %vm773_vm1, %v825_v26, 0.0  ;;  %v908_v33 = vsel %vm773_vm1, %v892_v3, 0.0 }
 0x2d7   : > { %1346 = vadd.xlane.f32.xlu0 %v1345_v10  ;;  %1343 = vadd.xlane.f32.xlu1 %v1342_v55  ;;  %v5904_v10 = vpop.xlane.xlu0 %884  ;;  %v5906_v55 = vpop.xlane.xlu1 %881 }
 0x2db   : > { %942 = vadd.xlane.f32.xlu0 %v941_v44  ;;  %939 = vadd.xlane.f32.xlu1 %v938_v12  ;;  %v5908_v44 = vpop.xlane.xlu0 %954  ;;  %v5910_v12 = vpop.xlane.xlu1 %878 }
 0x2df   : > { %866 = vadd.xlane.f32.xlu0 %v865_v0  ;;  %936 = vadd.xlane.f32.xlu1 %v935_v61  ;;  %v5912_v15 = vpop.xlane.xlu0 %951  ;;  %v5914_v50 = vpop.xlane.xlu1 %875 }
 0x2e3   : > { %863 = vadd.xlane.f32.xlu0 %v862_v28  ;;  %933 = vadd.xlane.f32.xlu1 %v932_v41  ;;  %v5916_v27 = vpop.xlane.xlu0 %948  ;;  %v5918_v0 = vpop.xlane.xlu1 %872 }
 0x2e7   : > { %860 = vadd.xlane.f32.xlu0 %v859_v47  ;;  %930 = vadd.xlane.f32.xlu1 %v929_v49  ;;  %v5920_v61 = vpop.xlane.xlu0 %945 }
 0x2eb   : > { %857 = vadd.xlane.f32.xlu0 %v856_v46  ;;  %927 = vadd.xlane.f32.xlu1 %v926_v43 }
 0x2ef   : > { %854 = vadd.xlane.f32.xlu0 %v853_v57  ;;  %924 = vadd.xlane.f32.xlu1 %v923_v6 }
 0x2f3   : > { %851 = vadd.xlane.f32.xlu0 %v850_v32  ;;  %921 = vadd.xlane.f32.xlu1 %v920_v20 }
 0x2f7   : > { %848 = vadd.xlane.f32.xlu0 %v847_v19  ;;  %918 = vadd.xlane.f32.xlu1 %v917_v48 }
 0x2fb   : > { %845 = vadd.xlane.f32.xlu0 %v844_v56  ;;  %915 = vadd.xlane.f32.xlu1 %v914_v14 }
 0x2ff   : > { %842 = vadd.xlane.f32.xlu0 %v841_v5  ;;  %909 = vadd.xlane.f32.xlu1 %v908_v33 }
 0x303   : > { %912 = vadd.xlane.f32.xlu0 %v911_v58 }
 0x320   : > { %v5922_v42 = vpop.xlane.xlu1 %1282 }
 0x324   : > { %v5924_v62 = vpop.xlane.xlu1 %1288  ;;  %v5926_v30 = vpop.xlane.xlu0 %1352 }
 0x325   : > { %v1393_v33 = vmul.f32 %v5924_v62, %v5924_v62 }
 0x328   : > { %v5928_v28 = vpop.xlane.xlu1 %1285  ;;  %v5930_v41 = vpop.xlane.xlu0 %1349 }
 0x329   : > { %v1392_v4 = vmul.f32 %v5928_v28, %v5928_v28 }
 0x32c   : > { %v5932_v25 = vpop.xlane.xlu1 %1291  ;;  %v5934_v60 = vpop.xlane.xlu0 %1294 }
 0x330   : > { %v5936_v23 = vpop.xlane.xlu1 %1300  ;;  %v5938_v47 = vpop.xlane.xlu0 %1358 }
 0x334   : > { %v5940_v49 = vpop.xlane.xlu1 %1297  ;;  %v5942_v13 = vpop.xlane.xlu0 %1355 }
 0x338   : > { %v5944_v37 = vpop.xlane.xlu1 %1361  ;;  %v5946_v39 = vpop.xlane.xlu0 %1364 }
 0x33c   : > { %v5948_v46 = vpop.xlane.xlu1 %1306  ;;  %v1371_v43 = vpop.xlane.xlu0 %1370 }
 0x33d   : > { %v1399_v56 = vmul.f32 %v5948_v46, %v5948_v46 }
 0x33f   : > { %v1415_v8 = vsub.f32 %v1371_v43, %v1399_v56  ;;  %v1395_v43 = vmul.f32 %v5934_v60, %v5934_v60 }
 0x340   : > { %v5950_v22 = vpop.xlane.xlu1 %1303  ;;  %v1368_v7 = vpop.xlane.xlu0 %1367 }
 0x344   : > { %v5952_v9 = vpop.xlane.xlu1 %1312  ;;  %v1377_v57 = vpop.xlane.xlu0 %1376 }
 0x345   : > { %v1401_v17 = vmul.f32 %v5952_v9, %v5952_v9 }
 0x347   : > { %v1417_v16 = vsub.f32 %v1377_v57, %v1401_v17 }
 0x348   : > { %v5954_v6 = vpop.xlane.xlu1 %1309  ;;  %v1374_v21 = vpop.xlane.xlu0 %1373 }
 0x349   : > { %v1400_v20 = vmul.f32 %v5954_v6, %v5954_v6  ;;  %v1433_v24 = vadd.f32 1e-05, %v1417_v16  ;;  %v1431_v16 = vadd.f32 1e-05, %v1415_v8 }
 0x34b   : > { %v1416_v45 = vsub.f32 %v1374_v21, %v1400_v20  ;;  %v1398_v21 = vmul.f32 %v5950_v22, %v5950_v22 }
 0x34c   : > { %v5958_v31 = vpop.xlane.xlu1 %1318  ;;  %v1383_v32 = vpop.xlane.xlu0 %1382 }
 0x34d   : > { %v1403_v40 = vmul.f32 %v5958_v31, %v5958_v31  ;;  %v1432_v5 = vadd.f32 1e-05, %v1416_v45  ;;  %v1414_v56 = vsub.f32 %v1368_v7, %v1398_v21 }
 0x34f   : > { %v1419_v59 = vsub.f32 %v1383_v32, %v1403_v40  ;;  %v1409_v40 = vsub.f32 %v5926_v30, %v1393_v33  ;;  %v1396_v30 = vmul.f32 %v5940_v49, %v5940_v49 }
 0x350   : > { %v5964_v19 = vpop.xlane.xlu1 %1315  ;;  %v1380_v48 = vpop.xlane.xlu0 %1379 }
 0x351   : > { %v1435_v63 = vadd.f32 1e-05, %v1419_v59  ;;  %v1402_v36 = vmul.f32 %v5964_v19, %v5964_v19  ;;  %v1408_v59 = vsub.f32 %v5930_v41, %v1392_v4  ;;  %v1425_v33 = vadd.f32 1e-05, %v1409_v40  ;;  %v1934_v40 = vld [vmem:[%s8338_s4 + $0x78] sm:$0xff] }
 0x353   : > { %v1418_v14 = vsub.f32 %v1380_v48, %v1402_v36  ;;  %4504 = vrsqrt.f32 %v1435_v63  ;;  %v1397_v48 = vmul.f32 %v5936_v23, %v5936_v23  ;;  %v1394_v36 = vmul.f32 %v5932_v25, %v5932_v25 }
 0x354   : > { %v5970_v26 = vpop.xlane.xlu1 %1321  ;;  %v5972_v3 = vpop.xlane.xlu0 %1324  ;;  %4506 = vrsqrt.f32 %v1433_v24  ;;  %v1411_v24 = vsub.f32 %v5938_v47, %v1395_v43  ;;  %v1424_v8 = vadd.f32 1e-05, %v1408_v59 }
 0x355   : > { %v1434_v58 = vadd.f32 1e-05, %v1418_v14  ;;  %v1405_v57 = vmul.f32 %v5972_v3, %v5972_v3  ;;  %4508 = vrsqrt.f32 %v1432_v5  ;;  %v1404_v45 = vmul.f32 %v5970_v26, %v5970_v26 }
 0x356   : > { %v1410_v4 = vsub.f32 %v5942_v13, %v1394_v36  ;;  %v1427_v7 = vadd.f32 1e-05, %v1411_v24 }
 0x357   : > { %4510 = vrsqrt.f32 %v1434_v58  ;;  %v1413_v58 = vsub.f32 %v5946_v39, %v1397_v48 }
 0x358   : > { %v5982_v17 = vpop.xlane.xlu1 %1279  ;;  %v1389_v32 = vpop.xlane.xlu0 %1388  ;;  %v1426_v47 = vadd.f32 1e-05, %v1410_v4 }
 0x359   : > { %v1421_v20 = vsub.f32 %v1389_v32, %v1405_v57  ;;  %v1412_v32 = vsub.f32 %v5944_v37, %v1396_v30  ;;  %v1429_v13 = vadd.f32 1e-05, %v1413_v58  ;;  %v1950_v37 = vsel %vm754_vm0, %v1934_v40, 0.0  ;;  %v8544_v40 = vld [vmem:[#allocation45_spill] sm:$0xff] }
 0x35a   : > { %v1390_v36 = vmul.f32 %v5982_v17, %v5982_v17  ;;  %v1996_v30 = vsel %vm773_vm1, %v1950_v37, 0.0 }
 0x35b   : > { %v1437_v63 = vadd.f32 1e-05, %v1421_v20  ;;  %v1430_v20 = vadd.f32 1e-05, %v1414_v56  ;;  %v1428_v59 = vadd.f32 1e-05, %v1412_v32  ;;  %1997 = vadd.xlane.f32.xlu0 %v1996_v30  ;;  %v1479_v32 = vsub.f32 %v5414_v29, %v5948_v46 }
 0x35c   : > { %v870_v41 = vpop.xlane.xlu1 %869  ;;  %v1386_v14 = vpop.xlane.xlu0 %1385  ;;  %v8547_v46 = vld [vmem:[#allocation41_spill] sm:$0xff] }
 0x35d   : > { %4512 = vrsqrt.f32 %v1437_v63  ;;  %v1420_v5 = vsub.f32 %v1386_v14, %v1404_v45  ;;  %v1391_v63 = vmul.f32 %v5922_v42, %v5922_v42  ;;  %v1484_v30 = vsub.f32 %v8547_v46, %v5970_v26 }
 0x35e   : > { %4514 = vrsqrt.f32 %v1431_v16 }
 0x35f   : > { %v1436_v57 = vadd.f32 1e-05, %v1420_v5 }
 0x360   : > { %v1344_v54 = vpop.xlane.xlu1 %1343  ;;  %v1347_v1 = vpop.xlane.xlu0 %1346 }
 0x361   : > { %4516 = vrsqrt.f32 %v1436_v57  ;;  %v4505_v21 = vpop.eup %4504  ;;  %v1406_v4 = vsub.f32 %v1344_v54, %v1390_v36  ;;  %v8545_v54 = vld [vmem:[#allocation46_spill] sm:$0xff]  ;;  %v1407_v37 = vsub.f32 %v1347_v1, %v1391_v63  ;;  %v8546_v36 = vld [vmem:[#allocation44_spill] sm:$0xff] }
 0x362   : > { %4518 = vrsqrt.f32 %v1425_v33  ;;  %v4507_v43 = vpop.eup %4506  ;;  %v1467_v48 = vmul.f32 %v4505_v21, %v5906_v55  ;;  %v8542_v55 = vld [vmem:[#allocation43_spill] sm:$0xff]  ;;  %v1482_v29 = vsub.f32 %v8546_v36, %v5964_v19  ;;  %v8554_v33 = vld [vmem:[#allocation37_spill] sm:$0xff] }
 0x363   : > { %4520 = vrsqrt.f32 %v1424_v8  ;;  %v4509_v45 = vpop.eup %4508  ;;  %v1483_v5 = vsub.f32 %v8542_v55, %v5958_v31  ;;  %v6022_v8 = vmul.f32 %v4507_v43, %v5914_v50  ;;  %v1480_v50 = vsub.f32 %v8545_v54, %v5954_v6  ;;  %v8548_v55 = vld [vmem:[#allocation42_spill] sm:$0xff] }
 0x364   : > { %4522 = vrsqrt.f32 %v1430_v20  ;;  %v940_v39 = vpop.xlane.xlu1 %939  ;;  %v6003_v16 = vpop.xlane.xlu0 %942  ;;  %v8543_v20 = vld [vmem:[#allocation47_spill] sm:$0xff]  ;;  %v1464_v31 = vmul.f32 %v4509_v45, %v5918_v0  ;;  %v1485_v0 = vsub.f32 %v8548_v55, %v5972_v3  ;;  %v8550_v54 = vld [vmem:[#allocation26_spill] sm:$0xff] }
 0x365   : > { %4524 = vrsqrt.f32 %v1427_v7  ;;  %v4511_v56 = vpop.eup %4510  ;;  %v1499_v21 = vmul.f32 %v1483_v5, %v1467_v48 }
 0x366   : > { %4526 = vrsqrt.f32 %v1426_v47  ;;  %v1538_v3 = vmul.f32 %v1464_v31, %v8550_v54 }
 0x367   : > { %4528 = vrsqrt.f32 %v1429_v13  ;;  %v1481_v13 = vsub.f32 %v8544_v40, %v5952_v9  ;;  %v1422_v9 = vadd.f32 1e-05, %v1406_v4  ;;  %v8549_v40 = vld [vmem:[#allocation28_spill] sm:$0xff]  ;;  %v1515_v63 = vadd.f32 %v1499_v21, %v5916_v27 }
 0x368   : > { %4530 = vrsqrt.f32 %v1428_v59  ;;  %v6024_v58 = vpop.xlane.xlu1 %936  ;;  %v867_v57 = vpop.xlane.xlu0 %866  ;;  %v1466_v59 = vmul.f32 %v4511_v56, %v5910_v12  ;;  %v6048_v1 = vmul.f32 %v6022_v8, %v8549_v40  ;;  %v1496_v56 = vmul.f32 %v1480_v50, %v1464_v31  ;;  %v8553_v40 = vld [vmem:[#allocation36_spill] sm:$0xff]  ;;  %v8555_v50 = vld [vmem:[#allocation33_spill] sm:$0xff] }
 0x369   : > { %v1497_v6 = vmul.f32 %v1481_v13, %v6022_v8  ;;  %v1423_v4 = vadd.f32 1e-05, %v1407_v37  ;;  %4532 = vrsqrt.f32 %v1422_v9  ;;  %v8557_v9 = vld [vmem:[#allocation35_spill] sm:$0xff] }
 0x36a   : > { %v4513_v47 = vpop.eup %4512  ;;  %v1512_v54 = vadd.f32 %v1496_v56, %v940_v39 }
 0x36b   : > { %v4515_v43 = vpop.eup %4514  ;;  %v1469_v45 = vmul.f32 %v4513_v47, %v5902_v52  ;;  %v8551_v52 = vld [vmem:[#allocation32_spill] sm:$0xff]  ;;  %v1498_v47 = vmul.f32 %v1482_v29, %v1466_v59  ;;  %4534 = vrsqrt.f32 %v1423_v4 }
 0x36c   : > { %v6043_v5 = vmul.f32 %v4515_v43, %v870_v41  ;;  %v6050_v12 = vpop.xlane.xlu1 %933  ;;  %v864_v19 = vpop.xlane.xlu0 %863  ;;  %v1544_v41 = vmul.f32 %v1467_v48, %v8551_v52  ;;  %v8552_v43 = vld [vmem:[#allocation27_spill] sm:$0xff] }
 0x36d   : > { %v1501_v26 = vmul.f32 %v1485_v0, %v1469_v45  ;;  %v1539_v13 = vmul.f32 %v1464_v31, %v8552_v43  ;;  %v1548_v14 = vmul.f32 %v1469_v45, %v8553_v40  ;;  %v1549_v24 = vmul.f32 %v1469_v45, %v8554_v33 }
 0x36e   : > { %v4517_v36 = vpop.eup %4516  ;;  %v1545_v0 = vmul.f32 %v1467_v48, %v8555_v50  ;;  %v1495_v37 = vmul.f32 %v1479_v32, %v6043_v5  ;;  %v1576_v43 = vadd.f32 %v1544_v41, %v1515_v63  ;;  %v8556_v48 = vld [vmem:[#allocation34_spill] sm:$0xff]  ;;  %v1542_v41 = vmul.f32 %v1466_v59, %v8558_v2 }
 0x36f   : > { %v6056_v46 = vpop.eup %4518  ;;  %v1517_v55 = vadd.f32 %v1501_v26, %v5908_v44  ;;  %v1468_v27 = vmul.f32 %v4517_v36, %v5904_v10  ;;  %v1514_v10 = vadd.f32 %v1498_v47, %v5920_v61 }
 0x370   : > { %v6062_v21 = vpop.eup %4520  ;;  %v6066_v29 = vpop.xlane.xlu1 %930  ;;  %v1577_v33 = vadd.f32 %v1545_v0, %v1515_v63  ;;  %v1571_v0 = vadd.f32 %v1539_v13, %v1512_v54 }
 0x371   : > { %v861_v31 = vpop.xlane.xlu0 %860  ;;  %v4523_v52 = vpop.eup %4522  ;;  %v1580_v44 = vadd.f32 %v1548_v14, %v1517_v55  ;;  %v1581_v26 = vadd.f32 %v1549_v24, %v1517_v55  ;;  %v1500_v40 = vmul.f32 %v1484_v30, %v1468_v27  ;;  %v1546_v32 = vmul.f32 %v1468_v27, %v8556_v48 }
 0x372   : > { %v4525_v7 = vpop.eup %4524  ;;  %v1462_v45 = vmul.f32 %v4523_v52, %v867_v57  ;;  %v1547_v56 = vmul.f32 %v1468_v27, %v8557_v9  ;;  %v1570_v14 = vadd.f32 %v1538_v3, %v1512_v54  ;;  %v1513_v24 = vadd.f32 %v1497_v6, %v6003_v16 }
 0x373   : > { %v4527_v36 = vpop.eup %4526  ;;  %4536 = vtanh.f32 %v1580_v44  ;;  %v1516_v39 = vadd.f32 %v1500_v40, %v5912_v15  ;;  %v8559_v15 = vld [vmem:[#allocation31_spill] sm:$0xff]  ;;  %v8560_v27 = vsub.f32 %v8543_v20, %v5950_v22  ;;  %v1574_v2 = vadd.f32 %v1542_v41, %v1514_v10  ;;  %v8561_v44 = vld [vmem:[#allocation29_spill] sm:$0xff] }
 0x374   : > { %v4529_v50 = vpop.eup %4528  ;;  %4538 = vtanh.f32 %v1581_v26  ;;  %v928_v30 = vpop.xlane.xlu1 %927  ;;  %v1543_v55 = vmul.f32 %v1466_v59, %v8559_v15  ;;  %v1511_v3 = vadd.f32 %v1495_v37, %v6024_v58  ;;  %v8562_v26 = vld [vmem:[#allocation24_spill] sm:$0xff]  ;;  %v1572_v13 = vadd.f32 %v6048_v1, %v1513_v24  ;;  %v8564_v37 = vld [vmem:[#allocation25_spill] sm:$0xff] }
 0x375   : > { %v858_v63 = vpop.xlane.xlu0 %857  ;;  %v4531_v61 = vpop.eup %4530  ;;  %4540 = vtanh.f32 %v1576_v43  ;;  %v1578_v57 = vadd.f32 %v1546_v32, %v1516_v39  ;;  %v1579_v47 = vadd.f32 %v1547_v56, %v1516_v39  ;;  %v1461_v4 = vmul.f32 %v4529_v50, %v864_v19 }
 0x376   : > { %4542 = vtanh.f32 %v1577_v33  ;;  %v1494_v52 = vmul.f32 %v8560_v27, %v1462_v45  ;;  %v1460_v16 = vmul.f32 %v4531_v61, %v861_v31  ;;  %v1575_v6 = vadd.f32 %v1543_v55, %v1514_v10  ;;  %v6096_v56 = vpop.eup %4532 }
 0x377   : > { %4544 = vtanh.f32 %v1578_v57  ;;  %v1541_v43 = vmul.f32 %v6022_v8, %v8561_v44  ;;  %v1536_v19 = vmul.f32 %v6043_v5, %v8562_v26  ;;  %v8563_v22 = vsub.f32 %v5442_v53, %v5936_v23  ;;  %v8566_v23 = vld [vmem:[#allocation22_spill] sm:$0xff] }
 0x378   : > { %4546 = vtanh.f32 %v1579_v47  ;;  %v925_v40 = vpop.xlane.xlu1 %924  ;;  %v1459_v54 = vmul.f32 %v4525_v7, %v858_v63  ;;  %v1537_v31 = vmul.f32 %v6043_v5, %v8564_v37  ;;  %v1510_v8 = vadd.f32 %v1494_v52, %v6050_v12  ;;  %v8567_v5 = vld [vmem:[#allocation23_spill] sm:$0xff]  ;;  %v4535_v41 = vpop.eup %4534 }
 0x379   : > { %v855_v59 = vpop.xlane.xlu0 %854  ;;  %4548 = vtanh.f32 %v1570_v14  ;;  %v1493_v20 = vmul.f32 %v8563_v22, %v1461_v4  ;;  %v1573_v58 = vadd.f32 %v1541_v43, %v1513_v24  ;;  %v1475_v33 = vsub.f32 %v5451_v35, %v5934_v60  ;;  %v8568_v14 = vld [vmem:[#allocation20_spill] sm:$0xff] }
 0x37a   : > { %4550 = vtanh.f32 %v1571_v0  ;;  %v1568_v10 = vadd.f32 %v1536_v19, %v1511_v3  ;;  %v8565_v1 = vsub.f32 %v5449_v34, %v5940_v49  ;;  %v1569_v53 = vadd.f32 %v1537_v31, %v1511_v3  ;;  %v8570_v0 = vld [vmem:[#allocation18_spill] sm:$0xff]  ;;  %v8571_v3 = vld [vmem:[#allocation19_spill] sm:$0xff]  ;;  %v8573_v43 = vld [vmem:[#allocation16_spill] sm:$0xff] }
 0x37b   : > { %4552 = vtanh.f32 %v1574_v2  ;;  %v1534_v7 = vmul.f32 %v1462_v45, %v8566_v23  ;;  %v1458_v48 = vmul.f32 %v4527_v36, %v855_v59  ;;  %v1535_v12 = vmul.f32 %v1462_v45, %v8567_v5  ;;  %v8574_v59 = vld [vmem:[#allocation17_spill] sm:$0xff] }
 0x37c   : > { %v1492_v39 = vmul.f32 %v8565_v1, %v1460_v16  ;;  %4554 = vtanh.f32 %v1575_v6  ;;  %v922_v32 = vpop.xlane.xlu1 %921  ;;  %v1509_v35 = vadd.f32 %v1493_v20, %v6066_v29  ;;  %v1491_v60 = vmul.f32 %v1475_v33, %v1459_v54  ;;  %v8569_v29 = vld [vmem:[#allocation21_spill] sm:$0xff] }
 0x37d   : > { %v852_v9 = vpop.xlane.xlu0 %851  ;;  %4556 = vtanh.f32 %v1572_v13  ;;  %v1474_v50 = vsub.f32 %v5454_v38, %v5932_v25  ;;  %v1566_v34 = vadd.f32 %v1534_v7, %v1510_v8  ;;  %v1567_v36 = vadd.f32 %v1535_v12, %v1510_v8  ;;  %v8575_v8 = vld [vmem:[#allocation15_spill] sm:$0xff] }
 0x37e   : > { %4558 = vtanh.f32 %v1573_v58  ;;  %v1457_v49 = vmul.f32 %v6056_v46, %v852_v9  ;;  %v1532_v24 = vmul.f32 %v1461_v4, %v8568_v14  ;;  %v1508_v63 = vadd.f32 %v1492_v39, %v928_v30 }
 0x37f   : > { %4560 = vtanh.f32 %v1568_v10  ;;  %v1472_v45 = vsub.f32 %v5569_v11, %v5928_v28  ;;  %v1533_v57 = vmul.f32 %v1461_v4, %v8569_v29  ;;  %v1490_v47 = vmul.f32 %v1474_v50, %v1458_v48  ;;  %v8579_v50 = vld [vmem:[#allocation12_spill] sm:$0xff] }
 0x380   : > { %v4537_v61 = vpop.eup %4536  ;;  %4562 = vtanh.f32 %v1569_v53  ;;  %v919_v15 = vpop.xlane.xlu1 %918  ;;  %v1564_v55 = vadd.f32 %v1532_v24, %v1509_v35  ;;  %v1530_v46 = vmul.f32 %v1460_v16, %v8570_v0  ;;  %v1507_v27 = vadd.f32 %v1491_v60, %v925_v40  ;;  %v8577_v53 = vld [vmem:[#allocation14_spill] sm:$0xff] }
 0x381   : > { %v849_v38 = vpop.xlane.xlu0 %848  ;;  %v4539_v25 = vpop.eup %4538  ;;  %4564 = vtanh.f32 %v1566_v34  ;;  %v1565_v30 = vadd.f32 %v1533_v57, %v1509_v35  ;;  %v1531_v6 = vmul.f32 %v1460_v16, %v8571_v3  ;;  %v8572_v11 = vsub.f32 %v5512_v18, %v5924_v62 }
 0x382   : > { %v1456_v52 = vmul.f32 %v6062_v21, %v849_v38  ;;  %v4541_v2 = vpop.eup %4540  ;;  %1630 = vmatprep.subr.mxu1 %v4539_v25  ;;  %4566 = vtanh.f32 %v1567_v36  ;;  %v1562_v44 = vadd.f32 %v1530_v46, %v1508_v63  ;;  %v1528_v26 = vmul.f32 %v1459_v54, %v8573_v43 }
 0x383   : > { %v1489_v28 = vmul.f32 %v8572_v11, %v1457_v49  ;;  %v4543_v4 = vpop.eup %4542  ;;  %1631 = vmatpush1.msra.mxu1 %v4537_v61  ;;  %v1563_v40 = vadd.f32 %v1531_v6, %v1508_v63  ;;  %v1529_v21 = vmul.f32 %v1459_v54, %v8574_v59  ;;  %v1506_v13 = vadd.f32 %v1490_v47, %v922_v32  ;;  %v8576_v54 = vld [vmem:[#allocation48_spill] sm:$0xff]  ;;  %v8578_v32 = vld [vmem:[#allocation13_spill] sm:$0xff]  ;;  %v8581_v61 = vld [vmem:[#allocation10_spill] sm:$0xff] }
 0x384   : > { %v4545_v19 = vpop.eup %4544  ;;  %v1488_v22 = vmul.f32 %v1472_v45, %v1456_v52  ;;  %v1471_v16 = vsub.f32 %v5567_v51, %v5922_v42  ;;  %4568 = vtanh.f32 %v1564_v55  ;;  %v1560_v18 = vadd.f32 %v1528_v26, %v1507_v27  ;;  %v916_v62 = vpop.xlane.xlu1 %915  ;;  %v8582_v55 = vld [vmem:[#allocation8_spill] sm:$0xff]  ;;  %v8584_v11 = vld [vmem:[#allocation7_spill] sm:$0xff] }
 0x385   : > { %v846_v20 = vpop.xlane.xlu0 %845  ;;  %v4547_v58 = vpop.eup %4546  ;;  %4570 = vtanh.f32 %v1565_v30  ;;  %v1561_v31 = vadd.f32 %v1529_v21, %v1507_v27  ;;  %v1527_v33 = vmul.f32 %v1458_v48, %v8575_v8  ;;  %v1505_v10 = vadd.f32 %v1489_v28, %v919_v15 }
 0x386   : > { %v4549_v37 = vpop.eup %4548  ;;  %1632 = vmatprep.subr.mxu1 %v4547_v58  ;;  %v1470_v39 = vsub.f32 %v8576_v54, %v5982_v17  ;;  %4572 = vtanh.f32 %v1562_v44  ;;  %v1526_v23 = vmul.f32 %v1458_v48, %v8577_v53  ;;  %v1455_v7 = vmul.f32 %v4535_v41, %v846_v20  ;;  %v8580_v41 = vld [vmem:[#allocation11_spill] sm:$0xff]  ;;  %v8585_v44 = vld [vmem:[#allocation6_spill] sm:$0xff] }
 0x387   : > { %v4551_v1 = vpop.eup %4550  ;;  %1633 = vmatpush1.msra.mxu1 %v4545_v19  ;;  %4574 = vtanh.f32 %v1563_v40  ;;  %v1559_v42 = vadd.f32 %v1527_v33, %v1506_v13  ;;  %v1525_v9 = vmul.f32 %v1457_v49, %v8578_v32  ;;  %v1504_v5 = vadd.f32 %v1488_v22, %v916_v62  ;;  %v1615_v53 = vld [vmem:[%s8337_s3 + $0x8] sm:$0xff]  ;;  %v1620_v32 = vld [vmem:[%s8337_s3 + $0x30] sm:$0xff] }
 0x388   : > { %v4553_v51 = vpop.eup %4552  ;;  %1634 = vmatprep.subr.mxu1 %v4543_v4  ;;  %4576 = vtanh.f32 %v1560_v18  ;;  %v1558_v60 = vadd.f32 %v1526_v23, %v1506_v13  ;;  %v1524_v34 = vmul.f32 %v1457_v49, %v8579_v50  ;;  %v1523_v14 = vmul.f32 %v1456_v52, %v8580_v41  ;;  %v910_v29 = vpop.xlane.xlu1 %909  ;;  %v1616_v23 = vld [vmem:[%s8337_s3 + $0x10] sm:$0xff]  ;;  %v1626_v50 = vld [vmem:[%s8337_s3 + $0x60] sm:$0xff] }
 0x389   : > { %v843_v12 = vpop.xlane.xlu0 %842  ;;  %v4555_v35 = vpop.eup %4554  ;;  %1635 = vmatpush1.msra.mxu1 %v4541_v2  ;;  %4578 = vtanh.f32 %v1561_v31  ;;  %v1557_v48 = vadd.f32 %v1525_v9, %v1505_v10  ;;  %v1522_v45 = vmul.f32 %v1456_v52, %v8581_v61  ;;  %v1487_v47 = vmul.f32 %v1471_v16, %v1455_v7  ;;  %v8583_v2 = vld [vmem:[#allocation9_spill] sm:$0xff]  ;;  %v1621_v9 = vld [vmem:[%s8337_s3 + $0x38] sm:$0xff]  ;;  %v6199_v41 = vld [vmem:[%s8338_s4 + $0x70] sm:$0xff] }
 0x38a   : > { %v1454_v17 = vmul.f32 %v6096_v56, %v843_v12  ;;  %v4557_v36 = vpop.eup %4556  ;;  %1636 = vmatprep.subr.mxu1 %v4555_v35  ;;  %v1556_v63 = vadd.f32 %v1524_v34, %v1505_v10  ;;  %4580 = vtanh.f32 %v1559_v42  ;;  %v1555_v49 = vadd.f32 %v1523_v14, %v1504_v5  ;;  %v1619_v42 = vld [vmem:[%s8337_s3 + $0x28] sm:$0xff]  ;;  %v1624_v35 = vld [vmem:[%s8337_s3 + $0x50] sm:$0xff]  ;;  %v6208_v61 = vld [vmem:[%s8338_s4 + $0x60] sm:$0xff] }
 0x38b   : > { %v4559_v24 = vpop.eup %4558  ;;  %1637 = vmatpush1.msra.mxu1 %v4553_v51  ;;  %4582 = vtanh.f32 %v1558_v60  ;;  %v1554_v25 = vadd.f32 %v1522_v45, %v1504_v5  ;;  %v1520_v0 = vmul.f32 %v1455_v7, %v8582_v55  ;;  %v1521_v52 = vmul.f32 %v1455_v7, %v8583_v2  ;;  %v1617_v7 = vld [vmem:[%s8337_s3 + $0x18] sm:$0xff]  ;;  %v1618_v51 = vld [vmem:[%s8337_s3 + $0x20] sm:$0xff]  ;;  %v1623_v12 = vld [vmem:[%s8337_s3 + $0x48] sm:$0xff] }
 0x38c   : > { %v1486_v57 = vmul.f32 %v1470_v39, %v1454_v17  ;;  %v4561_v15 = vpop.eup %4560  ;;  %1638 = vmatprep.subr.mxu1 %v4559_v24  ;;  %4584 = vtanh.f32 %v1557_v48  ;;  %v1519_v28 = vmul.f32 %v1454_v17, %v8584_v11  ;;  %v1518_v43 = vmul.f32 %v1454_v17, %v8585_v44  ;;  %v1622_v5 = vld [vmem:[%s8337_s3 + $0x40] sm:$0xff]  ;;  %v1625_v60 = vld [vmem:[%s8337_s3 + $0x58] sm:$0xff]  ;;  %v1627_v34 = vld [vmem:[%s8337_s3 + $0x68] sm:$0xff] }
 0x38d   : > { %v913_v38 = vpop.xlane.xlu0 %912  ;;  %v4563_v56 = vpop.eup %4562  ;;  %1639 = vmatpush1.msra.mxu1 %v4557_v36  ;;  %4586 = vtanh.f32 %v1556_v63  ;;  %v8586_v39 = vmov 0.0   ;;  %v1628_v17 = vld [vmem:[%s8337_s3 + $0x70] sm:$0xff]  ;;  %v1629_v36 = vld [vmem:[%s8337_s3 + $0x78] sm:$0xff]  ;;  %v4812_v48 = vld [vmem:[%s8343_s9] sm:$0xff]  ;;  %v1949_v24 = vsel %vm754_vm0, %v6199_v41, 0.0  ;;  %v1947_v45 = vsel %vm754_vm0, %v6208_v61, 0.0 }
 0x38e   : > { %v1503_v46 = vadd.f32 %v1487_v47, %v913_v38  ;;  %v1502_v27 = vadd.f32 %v1486_v57, %v910_v29  ;;  %1640 = vmatprep.subr.mxu1 %v4551_v1  ;;  %v4565_v30 = vpop.eup %4564  ;;  %4588 = vtanh.f32 %v1555_v49  ;;  %v1614_v1 = vld [vmem:[%s8337_s3] sm:$0xff]  ;;  %v1993_v63 = vsel %vm773_vm1, %v1949_v24, 0.0  ;;  %v6217_v57 = vld [vmem:[%s8338_s4 + $0x68] sm:$0xff]  ;;  %v6226_v49 = vld [vmem:[%s8338_s4 + $0x50] sm:$0xff] }
 0x38f   : > { %1641 = vmatpush1.msra.mxu1 %v4549_v37  ;;  %v4567_v6 = vpop.eup %4566  ;;  %4590 = vtanh.f32 %v1554_v25  ;;  %1994 = vadd.xlane.f32.xlu0 %v1993_v63  ;;  %v1987_v29 = vsel %vm773_vm1, %v1947_v45, 0.0  ;;  %v1948_v47 = vsel %vm754_vm0, %v6217_v57, 0.0  ;;  %v1945_v38 = vsel %vm754_vm0, %v6226_v49, 0.0  ;;  %v6235_v25 = vld [vmem:[%s8338_s4 + $0x58] sm:$0xff] }
 0x390   : > { %v1552_v3 = vadd.f32 %v1520_v0, %v1503_v46  ;;  %v1553_v4 = vadd.f32 %v1521_v52, %v1503_v46  ;;  %1642 = vmatprep.subr.mxu1 %v4563_v56  ;;  %v1551_v19 = vadd.f32 %v1519_v28, %v1502_v27  ;;  %v1550_v59 = vadd.f32 %v1518_v43, %v1502_v27  ;;  %v1927_v46 = vld [vmem:[%s8338_s4 + $0x40] sm:$0xff]  ;;  %v1928_v52 = vld [vmem:[%s8338_s4 + $0x48] sm:$0xff] }
 0x391   : > { %1643 = vmatpush1.msra.mxu1 %v4561_v15  ;;  %v4569_v26 = vpop.eup %4568  ;;  %v1990_v15 = vsel %vm773_vm1, %v1948_v47, 0.0  ;;  %v1981_v56 = vsel %vm773_vm1, %v1945_v38, 0.0  ;;  %v1946_v55 = vsel %vm754_vm0, %v6235_v25, 0.0  ;;  %v1943_v27 = vsel %vm754_vm0, %v1927_v46, 0.0 }
 0x392   : > { %1644 = vmatprep.subr.mxu1 %v4567_v6  ;;  %v4571_v40 = vpop.eup %4570  ;;  %4592 = vtanh.f32 %v1552_v3  ;;  %1991 = vadd.xlane.f32.xlu1 %v1990_v15  ;;  %v1984_v0 = vsel %vm773_vm1, %v1946_v55, 0.0  ;;  %v1975_v2 = vsel %vm773_vm1, %v1943_v27, 0.0  ;;  %v1925_v6 = vld [vmem:[%s8338_s4 + $0x30] sm:$0xff] }
 0x393   : > { %1645 = vmatpush1.msra.mxu1 %v4565_v30  ;;  %v4573_v21 = vpop.eup %4572  ;;  %4594 = vtanh.f32 %v1553_v4  ;;  %1988 = vadd.xlane.f32.xlu0 %v1987_v29  ;;  %v1944_v30 = vsel %vm754_vm0, %v1928_v52, 0.0  ;;  %v1941_v11 = vsel %vm754_vm0, %v1925_v6, 0.0  ;;  %v1926_v4 = vld [vmem:[%s8338_s4 + $0x38] sm:$0xff] }
 0x394   : > { %1646 = vmatprep.subr.mxu1 %v4571_v40  ;;  %v4575_v13 = vpop.eup %4574  ;;  %4596 = vtanh.f32 %v1551_v19  ;;  %v1978_v3 = vsel %vm773_vm1, %v1944_v30, 0.0  ;;  %v1969_v28 = vsel %vm773_vm1, %v1941_v11, 0.0  ;;  %v1942_v44 = vsel %vm754_vm0, %v1926_v4, 0.0 }
 0x395   : > { %1647 = vmatpush1.msra.mxu1 %v4569_v26  ;;  %v4577_v22 = vpop.eup %4576  ;;  %4598 = vtanh.f32 %v1550_v59  ;;  %v1972_v43 = vsel %vm773_vm1, %v1942_v44, 0.0  ;;  %v1923_v26 = vld [vmem:[%s8338_s4 + $0x20] sm:$0xff]  ;;  %v1924_v59 = vld [vmem:[%s8338_s4 + $0x28] sm:$0xff] }
 0x396   : > { %1648 = vmatprep.subr.mxu1 %v4575_v13  ;;  %v4579_v20 = vpop.eup %4578  ;;  %1985 = vadd.xlane.f32.xlu1 %v1984_v0  ;;  %v1939_v19 = vsel %vm754_vm0, %v1923_v26, 0.0 }
 0x397   : > { %1649 = vmatpush1.msra.mxu1 %v4573_v21  ;;  %v4581_v58 = vpop.eup %4580  ;;  %1982 = vadd.xlane.f32.xlu0 %v1981_v56  ;;  %v1963_v40 = vsel %vm773_vm1, %v1939_v19, 0.0  ;;  %v1940_v21 = vsel %vm754_vm0, %v1924_v59, 0.0 }
 0x398   : > { %1650 = vmatprep.subr.mxu1 %v4579_v20  ;;  %v4583_v16 = vpop.eup %4582  ;;  %v1966_v13 = vsel %vm773_vm1, %v1940_v21, 0.0 }
 0x399   : > { %1651 = vmatpush1.msra.mxu1 %v4577_v22  ;;  %v4585_v18 = vpop.eup %4584 }
 0x39a   : > { %1652 = vmatprep.subr.mxu1 %v4581_v58  ;;  %v4587_v62 = vpop.eup %4586  ;;  %1979 = vadd.xlane.f32.xlu1 %v1978_v3 }
 0x39b   : > { %1653 = vmatpush1.msra.mxu1 %v4583_v16  ;;  %v4589_v37 = vpop.eup %4588  ;;  %1976 = vadd.xlane.f32.xlu0 %v1975_v2 }
 0x39c   : > { %1654 = vmatprep.subr.mxu1 %v4585_v18  ;;  %v4591_v31 = vpop.eup %4590 }
 0x39d   : > { %1655 = vmatpush1.msra.mxu1 %v4587_v62 }
 0x39e   : > { %1656 = vmatprep.subr.mxu1 %v4589_v37  ;;  %1973 = vadd.xlane.f32.xlu1 %v1972_v43 }
 0x39f   : > { %1657 = vmatpush1.msra.mxu1 %v4591_v31  ;;  %v4593_v8 = vpop.eup %4592  ;;  %1970 = vadd.xlane.f32.xlu0 %v1969_v28 }
 0x3a0   : > { %v4595_v33 = vpop.eup %4594 }
 0x3a1   : > { %1658 = vmatprep.subr.mxu1 %v4595_v33  ;;  %v4597_v10 = vpop.eup %4596 }
 0x3a2   : > { %1659 = vmatpush1.msra.mxu1 %v4593_v8  ;;  %v4599_v54 = vpop.eup %4598  ;;  %1967 = vadd.xlane.f32.xlu1 %v1966_v13 }
 0x3a3   : > { %1660 = vmatprep.subr.mxu1 %v4597_v10  ;;  %1964 = vadd.xlane.f32.xlu0 %v1963_v40 }
 0x3a4   : > { %1661 = vmatpush1.msra.mxu1 %v4599_v54 }
 0x3a5   : > { %1695 = vmatmul.mubr.f32.vlgmr.msra.gmra.mxu1 %v1614_v1 }
 0x3a6   : > { %1700 = vmatprep.mubr.f32.mxu1 %v8586_v39 }
 0x3a9   : > { %1701 = vmatmul.mubr.f32.gmra.mxu1 %v1615_v53 }
 0x3aa   : > { %1706 = vmatprep.mubr.f32.mxu1 %v8586_v39 }
 0x3ad   : > { %1707 = vmatmul.mubr.f32.gmra.mxu1 %v1616_v23 }
 0x3ae   : > { %1712 = vmatprep.mubr.f32.mxu1 %v8586_v39 }
 0x3b1   : > { %1713 = vmatmul.mubr.f32.gmra.mxu1 %v1617_v7 }
 0x3b2   : > { %1718 = vmatprep.mubr.f32.mxu1 %v8586_v39 }
 0x3b5   : > { %1719 = vmatmul.mubr.f32.gmra.mxu1 %v1618_v51 }
 0x3b6   : > { %1724 = vmatprep.mubr.f32.mxu1 %v8586_v39 }
 0x3b9   : > { %1725 = vmatmul.mubr.f32.gmra.mxu1 %v1619_v42 }
 0x3ba   : > { %1730 = vmatprep.mubr.f32.mxu1 %v8586_v39 }
 0x3bd   : > { %1731 = vmatmul.mubr.f32.gmra.mxu1 %v1620_v32 }
 0x3be   : > { %1736 = vmatprep.mubr.f32.mxu1 %v8586_v39 }
 0x3c1   : > { %1737 = vmatmul.mubr.f32.gmra.mxu1 %v1621_v9 }
 0x3c2   : > { %1742 = vmatprep.mubr.f32.mxu1 %v8586_v39 }
 0x3c5   : > { %1743 = vmatmul.mubr.f32.gmra.mxu1 %v1622_v5 }
 0x3c6   : > { %1748 = vmatprep.mubr.f32.mxu1 %v8586_v39 }
 0x3c9   : > { %1749 = vmatmul.mubr.f32.gmra.mxu1 %v1623_v12 }
 0x3ca   : > { %1754 = vmatprep.mubr.f32.mxu1 %v8586_v39 }
 0x3cd   : > { %1755 = vmatmul.mubr.f32.gmra.mxu1 %v1624_v35 }
 0x3ce   : > { %1760 = vmatprep.mubr.f32.mxu1 %v8586_v39 }
 0x3d1   : > { %1761 = vmatmul.mubr.f32.gmra.mxu1 %v1625_v60 }
 0x3d2   : > { %1766 = vmatprep.mubr.f32.mxu1 %v8586_v39 }
 0x3d5   : > { %1767 = vmatmul.mubr.f32.gmra.mxu1 %v1626_v50 }
 0x3d6   : > { %1772 = vmatprep.mubr.f32.mxu1 %v8586_v39 }
 0x3d9   : > { %1773 = vmatmul.mubr.f32.gmra.mxu1 %v1627_v34 }
 0x3da   : > { %1778 = vmatprep.mubr.f32.mxu1 %v8586_v39 }
 0x3dd   : > { %1779 = vmatmul.mubr.f32.gmra.mxu1 %v1628_v17 }
 0x3de   : > { %1784 = vmatprep.mubr.f32.mxu1 %v8586_v39 }
 0x3e1   : > { %1785 = vmatmul.mubr.f32.gmra.mxu1 %v1629_v36 }
 0x3e2   : > { %4439 = vmatprep.mubr.f32.mxu1 %v4812_v48 }
 0x465   : > { %v6277_v22 = vpop.f32.mrf.mxu1 }
 0x466   : > { %8588 = vst [vmem:[#allocation39_spill] sm:$0xff] %v6277_v22 }
 0x467   : > { %v6279_v20 = vpop.f32.mrf.mxu1 }
 0x468   : > { %8589 = vst [vmem:[#allocation38_spill] sm:$0xff] %v6279_v20 }
 0x469   : > { %v6281_v58 = vpop.f32.mrf.mxu1 }
 0x46a   : > { %8590 = vst [vmem:[#allocation40_spill] sm:$0xff] %v6281_v58 }
 0x46b   : > { %v6283_v16 = vpop.f32.mrf.mxu1 }
 0x46c   : > { %8591 = vst [vmem:[#allocation43_spill] sm:$0xff] %v6283_v16 }
 0x46d   : > { %v6285_v18 = vpop.f32.mrf.mxu1 }
 0x46e   : > { %8592 = vst [vmem:[#allocation47_spill] sm:$0xff] %v6285_v18 }
 0x46f   : > { %v6287_v62 = vpop.f32.mrf.mxu1 }
 0x470   : > { %8593 = vst [vmem:[#allocation45_spill] sm:$0xff] %v6287_v62 }
 0x471   : > { %v6289_v37 = vpop.f32.mrf.mxu1 }
 0x472   : > { %8594 = vst [vmem:[#allocation46_spill] sm:$0xff] %v6289_v37 }
 0x473   : > { %v6291_v31 = vpop.f32.mrf.mxu1 }
 0x474   : > { %8595 = vst [vmem:[#allocation44_spill] sm:$0xff] %v6291_v31 }
 0x475   : > { %v6293_v8 = vpop.f32.mrf.mxu1 }
 0x476   : > { %8596 = vst [vmem:[#allocation41_spill] sm:$0xff] %v6293_v8 }
 0x477   : > { %v6295_v33 = vpop.f32.mrf.mxu1 }
 0x478   : > { %8597 = vst [vmem:[#allocation42_spill] sm:$0xff] %v6295_v33 }
 0x479   : > { %v6297_v10 = vpop.f32.mrf.mxu1 }
 0x47a   : > { %8598 = vst [vmem:[#allocation28_spill] sm:$0xff] %v6297_v10 }
 0x47b   : > { %v6299_v1 = vpop.f32.mrf.mxu1 }
 0x47c   : > { %8599 = vst [vmem:[#allocation26_spill] sm:$0xff] %v6299_v1  ;;  %v1806_v54 = vadd.f32 %v6299_v1, %v6297_v10 }
 0x47d   : > { %v6303_v53 = vpop.f32.mrf.mxu1 }
 0x47e   : > { %8600 = vst [vmem:[#allocation32_spill] sm:$0xff] %v6303_v53  ;;  %1807 = vadd.xlane.f32.xlu0 %v1806_v54  ;;  %v1851_v32 = vmul.f32 %v6303_v53, %v6303_v53 }
 0x47f   : > { %v6305_v23 = vpop.f32.mrf.mxu1 }
 0x480   : > { %8601 = vst [vmem:[#allocation27_spill] sm:$0xff] %v6305_v23  ;;  %v1809_v7 = vadd.f32 %v6305_v23, %v6303_v53  ;;  %v1852_v51 = vmul.f32 %v6305_v23, %v6305_v23 }
 0x481   : > { %v6311_v42 = vpop.f32.mrf.mxu1 }
 0x482   : > { %8602 = vst [vmem:[#allocation36_spill] sm:$0xff] %v6311_v42  ;;  %1810 = vadd.xlane.f32.xlu1 %v1809_v7  ;;  %v1889_v35 = vadd.f32 %v1852_v51, %v1851_v32  ;;  %v1853_v50 = vmul.f32 %v6311_v42, %v6311_v42 }
 0x483   : > { %v6315_v9 = vpop.f32.mrf.mxu1 }
 0x484   : > { %8603 = vst [vmem:[#allocation37_spill] sm:$0xff] %v6315_v9  ;;  %v1812_v5 = vadd.f32 %v6315_v9, %v6311_v42  ;;  %v1854_v12 = vmul.f32 %v6315_v9, %v6315_v9 }
 0x485   : > { %v6321_v60 = vpop.f32.mrf.mxu1 }
 0x486   : > { %8604 = vst [vmem:[#allocation33_spill] sm:$0xff] %v6321_v60  ;;  %1890 = vadd.xlane.f32.xlu1 %v1889_v35  ;;  %1813 = vadd.xlane.f32.xlu0 %v1812_v5  ;;  %v1892_v48 = vadd.f32 %v1854_v12, %v1853_v50  ;;  %v1855_v63 = vmul.f32 %v6321_v60, %v6321_v60 }
 0x487   : > { %v6325_v34 = vpop.f32.mrf.mxu1 }
 0x488   : > { %8605 = vst [vmem:[#allocation34_spill] sm:$0xff] %v6325_v34  ;;  %v1815_v17 = vadd.f32 %v6325_v34, %v6321_v60  ;;  %v1856_v36 = vmul.f32 %v6325_v34, %v6325_v34 }
 0x489   : > { %v6331_v24 = vpop.f32.mrf.mxu1 }
 0x48a   : > { %8606 = vst [vmem:[#allocation35_spill] sm:$0xff] %v6331_v24  ;;  %1893 = vadd.xlane.f32.xlu0 %v1892_v48  ;;  %1816 = vadd.xlane.f32.xlu1 %v1815_v17  ;;  %v1895_v15 = vadd.f32 %v1856_v36, %v1855_v63  ;;  %v1857_v56 = vmul.f32 %v6331_v24, %v6331_v24 }
 0x48b   : > { %v6335_v45 = vpop.f32.mrf.mxu1 }
 0x48c   : > { %8607 = vst [vmem:[#allocation30_spill] sm:$0xff] %v6335_v45  ;;  %v1818_v29 = vadd.f32 %v6335_v45, %v6331_v24  ;;  %v1858_v47 = vmul.f32 %v6335_v45, %v6335_v45 }
 0x48d   : > { %v6341_v38 = vpop.f32.mrf.mxu1 }
 0x48e   : > { %8608 = vst [vmem:[#allocation31_spill] sm:$0xff] %v6341_v38  ;;  %1896 = vadd.xlane.f32.xlu1 %v1895_v15  ;;  %1819 = vadd.xlane.f32.xlu0 %v1818_v29  ;;  %v1898_v27 = vadd.f32 %v1858_v47, %v1857_v56  ;;  %v1859_v52 = vmul.f32 %v6341_v38, %v6341_v38 }
 0x48f   : > { %v6345_v55 = vpop.f32.mrf.mxu1  ;;  %v1850_v15 = vmul.f32 %v6299_v1, %v6299_v1 }
 0x490   : > { %8609 = vst [vmem:[#allocation29_spill] sm:$0xff] %v6345_v55  ;;  %v1821_v0 = vadd.f32 %v6345_v55, %v6341_v38  ;;  %v1860_v46 = vmul.f32 %v6345_v55, %v6345_v55 }
 0x491   : > { %v6351_v2 = vpop.f32.mrf.mxu1 }
 0x492   : > { %8610 = vst [vmem:[#allocation24_spill] sm:$0xff] %v6351_v2  ;;  %1899 = vadd.xlane.f32.xlu0 %v1898_v27  ;;  %1822 = vadd.xlane.f32.xlu1 %v1821_v0  ;;  %v1901_v11 = vadd.f32 %v1860_v46, %v1859_v52  ;;  %v1861_v4 = vmul.f32 %v6351_v2, %v6351_v2  ;;  %v6410_v27 = vld [vmem:[%s8338_s4 + $0x18] sm:$0xff] }
 0x493   : > { %v6355_v30 = vpop.f32.mrf.mxu1  ;;  %v1849_v0 = vmul.f32 %v6297_v10, %v6297_v10  ;;  %8620 = vst [vmem:[#allocation15_spill] sm:$0xff] %v6410_v27 }
 0x494   : > { %8611 = vst [vmem:[#allocation25_spill] sm:$0xff] %v6355_v30  ;;  %v1824_v3 = vadd.f32 %v6355_v30, %v6351_v2  ;;  %v1862_v6 = vmul.f32 %v6355_v30, %v6355_v30 }
 0x495   : > { %v6361_v28 = vpop.f32.mrf.mxu1  ;;  %v1886_v52 = vadd.f32 %v1850_v15, %v1849_v0 }
 0x496   : > { %8612 = vst [vmem:[#allocation22_spill] sm:$0xff] %v6361_v28  ;;  %1902 = vadd.xlane.f32.xlu1 %v1901_v11  ;;  %1825 = vadd.xlane.f32.xlu0 %v1824_v3  ;;  %v1904_v19 = vadd.f32 %v1862_v6, %v1861_v4  ;;  %v1863_v59 = vmul.f32 %v6361_v28, %v6361_v28  ;;  %v6415_v3 = vld [vmem:[%s8338_s4 + $0x10] sm:$0xff]  ;;  %v1938_v11 = vsel %vm754_vm0, %v6410_v27, 0.0 }
 0x497   : > { %v6365_v44 = vpop.f32.mrf.mxu1  ;;  %8621 = vst [vmem:[#allocation48_spill] sm:$0xff] %v6415_v3  ;;  %v1803_v6 = vadd.f32 %v6295_v33, %v6293_v8  ;;  %v1800_v4 = vadd.f32 %v6291_v31, %v6289_v37 }
 0x498   : > { %8613 = vst [vmem:[#allocation23_spill] sm:$0xff] %v6365_v44  ;;  %v1827_v43 = vadd.f32 %v6365_v44, %v6361_v28  ;;  %v1864_v26 = vmul.f32 %v6365_v44, %v6365_v44 }
 0x499   : > { %v6371_v40 = vpop.f32.mrf.mxu1 }
 0x49a   : > { %8614 = vst [vmem:[#allocation20_spill] sm:$0xff] %v6371_v40  ;;  %1905 = vadd.xlane.f32.xlu0 %v1904_v19  ;;  %1828 = vadd.xlane.f32.xlu1 %v1827_v43  ;;  %v1907_v7 = vadd.f32 %v1864_v26, %v1863_v59  ;;  %v1865_v32 = vmul.f32 %v6371_v40, %v6371_v40  ;;  %v1937_v43 = vsel %vm754_vm0, %v6415_v3, 0.0  ;;  %v1960_v26 = vsel %vm773_vm1, %v1938_v11, 0.0 }
 0x49b   : > { %v6375_v21 = vpop.f32.mrf.mxu1  ;;  %v1848_v19 = vmul.f32 %v6295_v33, %v6295_v33  ;;  %v1957_v59 = vsel %vm773_vm1, %v1937_v43, 0.0  ;;  %v1791_v43 = vadd.f32 %v6279_v20, %v6277_v22 }
 0x49c   : > { %8615 = vst [vmem:[#allocation21_spill] sm:$0xff] %v6375_v21  ;;  %v1830_v13 = vadd.f32 %v6375_v21, %v6371_v40  ;;  %v1866_v54 = vmul.f32 %v6375_v21, %v6375_v21 }
 0x49d   : > { %v6381_v51 = vpop.f32.mrf.mxu1 }
 0x49e   : > { %8616 = vst [vmem:[#allocation18_spill] sm:$0xff] %v6381_v51  ;;  %1908 = vadd.xlane.f32.xlu1 %v1907_v7  ;;  %1831 = vadd.xlane.f32.xlu0 %v1830_v13  ;;  %v1910_v50 = vadd.f32 %v1866_v54, %v1865_v32  ;;  %v1867_v36 = vmul.f32 %v6381_v51, %v6381_v51 }
 0x49f   : > { %v6385_v5 = vpop.f32.mrf.mxu1  ;;  %v1846_v13 = vmul.f32 %v6291_v31, %v6291_v31  ;;  %v1847_v54 = vmul.f32 %v6293_v8, %v6293_v8  ;;  %v1845_v7 = vmul.f32 %v6289_v37, %v6289_v37 }
 0x4a0   : > { %8617 = vst [vmem:[#allocation19_spill] sm:$0xff] %v6385_v5  ;;  %v1833_v12 = vadd.f32 %v6385_v5, %v6381_v51  ;;  %v1868_v35 = vmul.f32 %v6385_v5, %v6385_v5 }
 0x4a1   : > { %v6391_v17 = vpop.f32.mrf.mxu1  ;;  %v1883_v32 = vadd.f32 %v1848_v19, %v1847_v54  ;;  %v1839_v19 = vmul.f32 %v6277_v22, %v6277_v22 }
 0x4a2   : > { %8618 = vst [vmem:[#allocation16_spill] sm:$0xff] %v6391_v17  ;;  %v1869_v48 = vmul.f32 %v6391_v17, %v6391_v17  ;;  %1911 = vadd.xlane.f32.xlu0 %v1910_v50  ;;  %1834 = vadd.xlane.f32.xlu1 %v1833_v12  ;;  %v1913_v47 = vadd.f32 %v1868_v35, %v1867_v36  ;;  %v6440_v12 = vld [vmem:[%s8338_s4 + $0x8] sm:$0xff]  ;;  %v6445_v50 = vld [vmem:[%s8338_s4] sm:$0xff] }
 0x4a3   : > { %v6397_v63 = vpop.f32.mrf.mxu1  ;;  %8622 = vst [vmem:[#allocation14_spill] sm:$0xff] %v6440_v12  ;;  %v1880_v35 = vadd.f32 %v1846_v13, %v1845_v7  ;;  %8623 = vst [vmem:[#allocation13_spill] sm:$0xff] %v6445_v50  ;;  %v1797_v36 = vadd.f32 %v6287_v62, %v6285_v18  ;;  %v6473_v13 = vpop.xlane.xlu0 %1997 }
 0x4a4   : > { %8619 = vst [vmem:[#allocation17_spill] sm:$0xff] %v6397_v63  ;;  %v1870_v29 = vmul.f32 %v6397_v63, %v6397_v63  ;;  %v1836_v46 = vadd.f32 %v6397_v63, %v6391_v17  ;;  %8624 = vst [vmem:[#allocation12_spill] sm:$0xff] %v6473_v13  ;;  %v2222_v37 = vmul.f32 %v6473_v13, %v6473_v13  ;;  %v2142_v23 = vmul.f32 256.0, %v6473_v13 }
 0x4a5   : > { %v2174_v53 = vmul.f32 2.0, %v6473_v13 }
 0x4a6   : > { %1914 = vadd.xlane.f32.xlu1 %v1913_v47  ;;  %v1916_v56 = vadd.f32 %v1870_v29, %v1869_v48  ;;  %v1936_v48 = vsel %vm754_vm0, %v6440_v12, 0.0  ;;  %v1794_v29 = vadd.f32 %v6283_v16, %v6281_v58  ;;  %v1935_v47 = vsel %vm754_vm0, %v6445_v50, 0.0 }
 0x4a7   : > { %v1954_v15 = vsel %vm773_vm1, %v1936_v48, 0.0  ;;  %v1951_v0 = vsel %vm773_vm1, %v1935_v47, 0.0  ;;  %v6475_v54 = vpop.xlane.xlu0 %1994  ;;  %v4813_v48 = vld [vmem:[%s8338_s4 + $0x78] sm:$0xff]  ;;  %v2013_v47 = vsel %vm822_vm4, %v6199_v41, 0.0  ;;  %v2238_v45 = vmul.f32 256.0, %v2222_v37 }
 0x4a8   : > { %1917 = vadd.xlane.f32.xlu0 %v1916_v56  ;;  %v1844_v56 = vmul.f32 %v6287_v62, %v6287_v62  ;;  %8625 = vst [vmem:[#allocation11_spill] sm:$0xff] %v6475_v54  ;;  %v2221_v1 = vmul.f32 %v6475_v54, %v6475_v54  ;;  %v2173_v10 = vmul.f32 2.0, %v6475_v54  ;;  %v2141_v30 = vmul.f32 256.0, %v6475_v54 }
 0x4aa   : > { %1837 = vadd.xlane.f32.xlu1 %v1836_v46  ;;  %v1842_v46 = vmul.f32 %v6283_v16, %v6283_v16  ;;  %v2237_v63 = vmul.f32 256.0, %v2221_v1 }
 0x4ab   : > { %v6477_v7 = vpop.xlane.xlu0 %1988 }
 0x4ac   : > { %1887 = vadd.xlane.f32.xlu0 %v1886_v52  ;;  %v1843_v52 = vmul.f32 %v6285_v18, %v6285_v18  ;;  %8626 = vst [vmem:[#allocation10_spill] sm:$0xff] %v6477_v7  ;;  %v2219_v24 = vmul.f32 %v6477_v7, %v6477_v7  ;;  %v2171_v55 = vmul.f32 2.0, %v6477_v7 }
 0x4ae   : > { %1804 = vadd.xlane.f32.xlu1 %v1803_v6  ;;  %v1841_v6 = vmul.f32 %v6281_v58, %v6281_v58  ;;  %v1877_v11 = vadd.f32 %v1844_v56, %v1843_v52  ;;  %v2078_v56 = vsel %vm889_vm5, %v4813_v48, 0.0  ;;  %v2235_v1 = vmul.f32 256.0, %v2219_v24 }
 0x4b0   : > { %1801 = vadd.xlane.f32.xlu0 %v1800_v4  ;;  %v1874_v4 = vadd.f32 %v1842_v46, %v1841_v6  ;;  %v2057_v46 = vsel %vm773_vm1, %v2013_v47, 0.0 }
 0x4b2   : > { %1961 = vadd.xlane.f32.xlu1 %v1960_v26  ;;  %v1840_v26 = vmul.f32 %v6279_v20, %v6279_v20 }
 0x4b4   : > { %1958 = vadd.xlane.f32.xlu0 %v1957_v59  ;;  %v1871_v59 = vadd.f32 %v1840_v26, %v1839_v19  ;;  %v2077_v26 = vsel %vm889_vm5, %v6199_v41, 0.0 }
 0x4b6   : > { %1884 = vadd.xlane.f32.xlu1 %v1883_v32  ;;  %v6479_v32 = vpop.xlane.xlu1 %1991 }
 0x4b7   : > { %8627 = vst [vmem:[#allocation8_spill] sm:$0xff] %v6479_v32  ;;  %v2220_v8 = vmul.f32 %v6479_v32, %v6479_v32  ;;  %v2140_v42 = vmul.f32 256.0, %v6479_v32  ;;  %v2172_v34 = vmul.f32 2.0, %v6479_v32 }
 0x4b8   : > { %1881 = vadd.xlane.f32.xlu0 %v1880_v35  ;;  %v6481_v35 = vpop.xlane.xlu0 %1982 }
 0x4b9   : > { %v2236_v28 = vmul.f32 256.0, %v2220_v8  ;;  %v2137_v12 = vmul.f32 256.0, %v6481_v35 }
 0x4ba   : > { %1798 = vadd.xlane.f32.xlu1 %v1797_v36  ;;  %v6483_v36 = vpop.xlane.xlu1 %1985 }
 0x4bb   : > { %8628 = vst [vmem:[#allocation9_spill] sm:$0xff] %v6483_v36  ;;  %v2218_v9 = vmul.f32 %v6483_v36, %v6483_v36  ;;  %v6573_v51 = vmul.f32 256.0, %v6483_v36  ;;  %v2170_v21 = vmul.f32 2.0, %v6483_v36 }
 0x4bc   : > { %1795 = vadd.xlane.f32.xlu0 %v1794_v29  ;;  %v2014_v29 = vsel %vm822_vm4, %v4813_v48, 0.0  ;;  %v6500_v52 = vpop.xlane.xlu0 %1976 }
 0x4bd   : > { %v2234_v13 = vmul.f32 256.0, %v2218_v9 }
 0x4be   : > { %1955 = vadd.xlane.f32.xlu1 %v1954_v15  ;;  %v2012_v15 = vsel %vm822_vm4, %v6217_v57, 0.0 }
 0x4bf   : > { %v2054_v6 = vsel %vm773_vm1, %v2012_v15, 0.0 }
 0x4c0   : > { %1952 = vadd.xlane.f32.xlu0 %v1951_v0  ;;  %v2060_v0 = vsel %vm773_vm1, %v2014_v29, 0.0  ;;  %v6514_v48 = vpop.xlane.xlu0 %1970  ;;  %v2010_v29 = vsel %vm822_vm4, %v6235_v25, 0.0 }
 0x4c1   : > { %v2048_v15 = vsel %vm773_vm1, %v2010_v29, 0.0 }
 0x4c2   : > { %1878 = vadd.xlane.f32.xlu1 %v1877_v11  ;;  %v2124_v11 = vsel %vm773_vm1, %v2078_v56, 0.0 }
 0x4c4   : > { %1875 = vadd.xlane.f32.xlu0 %v1874_v4  ;;  %v6504_v4 = vpop.xlane.xlu1 %1979  ;;  %v6522_v56 = vpop.xlane.xlu0 %1964 }
 0x4c5   : > { %8629 = vst [vmem:[#allocation7_spill] sm:$0xff] %v6504_v4  ;;  %v2216_v5 = vmul.f32 %v6504_v4, %v6504_v4  ;;  %v6579_v2 = vmul.f32 256.0, %v6504_v4  ;;  %v2168_v8 = vmul.f32 2.0, %v6504_v4 }
 0x4c6   : > { %1792 = vadd.xlane.f32.xlu1 %v1791_v43  ;;  %v2011_v43 = vsel %vm822_vm4, %v6208_v61, 0.0 }
 0x4c7   : > { %v2051_v19 = vsel %vm773_vm1, %v2011_v43, 0.0 }
 0x4c8   : > { %2058 = vadd.xlane.f32.xlu0 %v2057_v46  ;;  %v6519_v47 = vpop.xlane.xlu1 %1973 }
 0x4ca   : > { %1872 = vadd.xlane.f32.xlu1 %v1871_v59  ;;  %v2121_v59 = vsel %vm773_vm1, %v2077_v26, 0.0 }
 0x4cc   : > { %2125 = vadd.xlane.f32.xlu0 %v2124_v11  ;;  %v6524_v41 = vpop.xlane.xlu1 %1967 }
 0x4cd   : > { %v6592_v27 = vmul.f32 256.0, %v6524_v41  ;;  %v2164_v24 = vmul.f32 2.0, %v6524_v41 }
 0x4ce   : > { %2061 = vadd.xlane.f32.xlu1 %v2060_v0 }
 0x4d0   : > { %2122 = vadd.xlane.f32.xlu0 %v2121_v59 }
 0x4d2   : > { %2055 = vadd.xlane.f32.xlu1 %v2054_v6 }
 0x4d6   : > { %2052 = vadd.xlane.f32.xlu1 %v2051_v19 }
 0x4da   : > { %2049 = vadd.xlane.f32.xlu1 %v2048_v15 }
 0x507   : > { %v6526_v0 = vpop.xlane.xlu0 %1807 }
 0x50b   : > { %v6528_v46 = vpop.xlane.xlu1 %1810 }
 0x50f   : > { %v6530_v6 = vpop.xlane.xlu1 %1890  ;;  %v6532_v11 = vpop.xlane.xlu0 %1813 }
 0x513   : > { %v6534_v25 = vpop.xlane.xlu1 %1816  ;;  %v6536_v43 = vpop.xlane.xlu0 %1893 }
 0x517   : > { %v6538_v26 = vpop.xlane.xlu1 %1896  ;;  %v6540_v19 = vpop.xlane.xlu0 %1819 }
 0x51b   : > { %v6542_v59 = vpop.xlane.xlu1 %1822  ;;  %v6544_v29 = vpop.xlane.xlu0 %1899 }
 0x51f   : > { %v6546_v15 = vpop.xlane.xlu1 %1902  ;;  %v6548_v22 = vpop.xlane.xlu0 %1825 }
 0x523   : > { %v6550_v20 = vpop.xlane.xlu1 %1828  ;;  %v1906_v16 = vpop.xlane.xlu0 %1905 }
 0x524   : > { %v2187_v36 = vmul.f32 %v2171_v55, %v6550_v20 }
 0x527   : > { %v1909_v58 = vpop.xlane.xlu1 %1908  ;;  %v6552_v18 = vpop.xlane.xlu0 %1831 }
 0x528   : > { %v2188_v37 = vmul.f32 %v2172_v34, %v6552_v18  ;;  %v2186_v34 = vmul.f32 %v2170_v21, %v6548_v22  ;;  %v2203_v4 = vadd.f32 %v2187_v36, %v1909_v58 }
 0x52a   : > { %v2202_v55 = vadd.f32 %v2186_v34, %v1906_v16  ;;  %v2251_v16 = vadd.f32 %v2235_v1, %v2203_v4 }
 0x52b   : > { %v1835_v62 = vpop.xlane.xlu1 %1834  ;;  %v1912_v31 = vpop.xlane.xlu0 %1911 }
 0x52c   : > { %v2189_v44 = vmul.f32 %v2173_v10, %v1835_v62  ;;  %v2139_v10 = vmul.f32 256.0, %v6477_v7  ;;  %v2204_v32 = vadd.f32 %v2188_v37, %v1912_v31  ;;  %v2157_v21 = vadd.f32 %v2141_v30, %v1835_v62 }
 0x52d   : > { %v2156_v62 = vadd.f32 %v2140_v42, %v6552_v18  ;;  %v2250_v18 = vadd.f32 %v2234_v13, %v2202_v55 }
 0x52e   : > { %v2155_v4 = vadd.f32 %v2139_v10, %v6550_v20  ;;  %v2154_v20 = vadd.f32 %v6573_v51, %v6548_v22  ;;  %v2180_v51 = vmul.f32 %v2164_v24, %v6526_v0 }
 0x52f   : > { %v1915_v33 = vpop.xlane.xlu1 %1914 }
 0x530   : > { %v2205_v40 = vadd.f32 %v2189_v44, %v1915_v33  ;;  %v2169_v33 = vmul.f32 2.0, %v6481_v35  ;;  %v2267_v13 = vsel %vm754_vm0, %v2155_v4, %v2251_v16  ;;  %v2266_v22 = vsel %vm754_vm0, %v2154_v20, %v2250_v18 }
 0x531   : > { %v1918_v60 = vpop.xlane.xlu0 %1917  ;;  %v2211_v16 = vmul.f32 %v6522_v56, %v6522_v56 }
 0x532   : > { %v2253_v3 = vadd.f32 %v2237_v63, %v2205_v40  ;;  %v2185_v31 = vmul.f32 %v2169_v33, %v6542_v59  ;;  %v2214_v40 = vmul.f32 %v6519_v47, %v6519_v47  ;;  %v2135_v33 = vmul.f32 256.0, %v6500_v52 }
 0x533   : > { %v1838_v17 = vpop.xlane.xlu1 %1837 }
 0x534   : > { %v2190_v38 = vmul.f32 %v2174_v53, %v1838_v17  ;;  %v2232_v53 = vmul.f32 256.0, %v2216_v5  ;;  %v2158_v7 = vadd.f32 %v2142_v23, %v1838_v17  ;;  %v2252_v5 = vadd.f32 %v2236_v28, %v2204_v32 }
 0x535   : > { %v6583_v54 = vpop.xlane.xlu0 %1887  ;;  %v2166_v23 = vmul.f32 2.0, %v6519_v47  ;;  %v2184_v17 = vmul.f32 %v2168_v8, %v6540_v19  ;;  %v2269_v30 = vsel %vm754_vm0, %v2157_v21, %v2253_v3  ;;  %v2165_v28 = vmul.f32 2.0, %v6514_v48 }
 0x536   : > { %v2206_v50 = vadd.f32 %v2190_v38, %v1918_v60  ;;  %v2217_v60 = vmul.f32 %v6481_v35, %v6481_v35  ;;  %v2215_v32 = vmul.f32 %v6500_v52, %v6500_v52  ;;  %v2268_v42 = vsel %vm754_vm0, %v2156_v62, %v2252_v5 }
 0x537   : > { %v6589_v44 = vpop.xlane.xlu1 %1804  ;;  %v2133_v3 = vmul.f32 256.0, %v6514_v48  ;;  %v2134_v8 = vmul.f32 256.0, %v6519_v47  ;;  %v2182_v1 = vmul.f32 %v2166_v23, %v6532_v11  ;;  %v2181_v10 = vmul.f32 %v2165_v28, %v6528_v46 }
 0x538   : > { %v2254_v9 = vadd.f32 %v2238_v45, %v2206_v50  ;;  %v2167_v45 = vmul.f32 2.0, %v6500_v52  ;;  %v2201_v50 = vadd.f32 %v2185_v31, %v6546_v15  ;;  %v2233_v36 = vmul.f32 256.0, %v2217_v60 }
 0x539   : > { %v6598_v38 = vpop.xlane.xlu0 %1801  ;;  %v2200_v15 = vadd.f32 %v2184_v17, %v6544_v29  ;;  %v2213_v31 = vmul.f32 %v6514_v48, %v6514_v48  ;;  %v2230_v60 = vmul.f32 256.0, %v2214_v40  ;;  %v2231_v55 = vmul.f32 256.0, %v2215_v32 }
 0x53a   : > { %v2270_v58 = vsel %vm754_vm0, %v2158_v7, %v2254_v9  ;;  %v2183_v7 = vmul.f32 %v2167_v45, %v6534_v25  ;;  %v2249_v29 = vadd.f32 %v2233_v36, %v2201_v50  ;;  %v2198_v5 = vadd.f32 %v2182_v1, %v6536_v43 }
 0x53b   : > { %v6607_v63 = vpop.xlane.xlu1 %1961  ;;  %4351 = vmatprep.subr.mxu0 %v2270_v58  ;;  %v2197_v23 = vadd.f32 %v2181_v10, %v6530_v6  ;;  %v2212_v45 = vmul.f32 %v6524_v41, %v6524_v41  ;;  %v2163_v40 = vmul.f32 2.0, %v6522_v56  ;;  %v2229_v24 = vmul.f32 256.0, %v2213_v31 }
 0x53c   : > { %4352 = vmatpush3.msra.mxu0 %v2270_v58  ;;  %v2199_v9 = vadd.f32 %v2183_v7, %v6538_v26  ;;  %v2153_v26 = vadd.f32 %v2137_v12, %v6542_v59  ;;  %v2248_v58 = vadd.f32 %v2232_v53, %v2200_v15  ;;  %v2152_v12 = vadd.f32 %v6579_v2, %v6540_v19 }
 0x53d   : > { %4353 = vmatprep.subr.mxu0 %v2269_v30  ;;  %v6617_v37 = vpop.xlane.xlu0 %1958  ;;  %v2162_v59 = vmul.f32 2.0, %v6607_v63  ;;  %v2196_v6 = vadd.f32 %v2180_v51, %v6583_v54  ;;  %v2179_v50 = vmul.f32 %v2163_v40, %v6589_v44  ;;  %v2246_v2 = vadd.f32 %v2230_v60, %v2198_v5 }
 0x53e   : > { %4354 = vmatpush3.msra.mxu0 %v2269_v30  ;;  %v2247_v43 = vadd.f32 %v2231_v55, %v2199_v9  ;;  %v2265_v53 = vsel %vm754_vm0, %v2153_v26, %v2249_v29  ;;  %v2151_v30 = vadd.f32 %v2135_v33, %v6534_v25  ;;  %v2161_v19 = vmul.f32 2.0, %v6617_v37 }
 0x53f   : > { %v1885_v34 = vpop.xlane.xlu1 %1884  ;;  %4355 = vmatprep.subr.mxu0 %v2268_v42  ;;  %v2264_v28 = vsel %vm754_vm0, %v2152_v12, %v2248_v58  ;;  %v2245_v7 = vadd.f32 %v2229_v24, %v2197_v23  ;;  %v2150_v54 = vadd.f32 %v2134_v8, %v6532_v11  ;;  %v2228_v32 = vmul.f32 256.0, %v2212_v45 }
 0x540   : > { %4356 = vmatpush3.msra.mxu0 %v2268_v42  ;;  %v2195_v36 = vadd.f32 %v2179_v50, %v1885_v34  ;;  %v2178_v4 = vmul.f32 %v2162_v59, %v6598_v38  ;;  %v2210_v25 = vmul.f32 %v6607_v63, %v6607_v63  ;;  %v2263_v18 = vsel %vm754_vm0, %v2151_v30, %v2247_v43 }
 0x541   : > { %4357 = vmatprep.subr.mxu0 %v2267_v13  ;;  %v1882_v21 = vpop.xlane.xlu0 %1881  ;;  %v2149_v1 = vadd.f32 %v2133_v3, %v6528_v46  ;;  %v2244_v33 = vadd.f32 %v2228_v32, %v2196_v6  ;;  %v2131_v11 = vmul.f32 256.0, %v6522_v56  ;;  %v2227_v8 = vmul.f32 256.0, %v2211_v16 }
 0x542   : > { %4358 = vmatpush3.msra.mxu0 %v2267_v13  ;;  %v2194_v9 = vadd.f32 %v2178_v4, %v1882_v21  ;;  %v2209_v20 = vmul.f32 %v6617_v37, %v6617_v37  ;;  %v2262_v13 = vsel %vm754_vm0, %v2150_v54, %v2246_v2  ;;  %v2148_v46 = vadd.f32 %v6592_v27, %v6526_v0 }
 0x543   : > { %v6644_v17 = vpop.xlane.xlu1 %1798  ;;  %4359 = vmatprep.subr.mxu0 %v2266_v22  ;;  %v2243_v3 = vadd.f32 %v2227_v8, %v2195_v36  ;;  %v2261_v31 = vsel %vm754_vm0, %v2149_v1, %v2245_v7  ;;  %v2130_v60 = vmul.f32 256.0, %v6607_v63  ;;  %v2226_v55 = vmul.f32 256.0, %v2210_v25  ;;  %v4817_v1 = vld [vmem:[%s8343_s9 + $0x20] sm:$0xff]  ;;  %v4820_v8 = vld [vmem:[%s8343_s9 + $0x38] sm:$0xff] }
 0x544   : > { %4360 = vmatpush3.msra.mxu0 %v2266_v22  ;;  %v2177_v29 = vmul.f32 %v2161_v19, %v6644_v17  ;;  %v2147_v58 = vadd.f32 %v2131_v11, %v6589_v44  ;;  %v2129_v27 = vmul.f32 256.0, %v6617_v37  ;;  %v2260_v22 = vsel %vm754_vm0, %v2148_v46, %v2244_v33  ;;  %v4818_v33 = vld [vmem:[%s8343_s9 + $0x28] sm:$0xff]  ;;  %v4819_v11 = vld [vmem:[%s8343_s9 + $0x30] sm:$0xff]  ;;  %v4825_v46 = vld [vmem:[%s8343_s9 + $0x60] sm:$0xff] }
 0x545   : > { %4361 = vmatprep.subr.mxu0 %v2265_v53  ;;  %v6655_v62 = vpop.xlane.xlu0 %1795  ;;  %v2242_v51 = vadd.f32 %v2226_v55, %v2194_v9  ;;  %v2225_v23 = vmul.f32 256.0, %v2209_v20  ;;  %v2146_v44 = vadd.f32 %v2130_v60, %v6598_v38  ;;  %v4821_v9 = vld [vmem:[%s8343_s9 + $0x40] sm:$0xff]  ;;  %v4823_v20 = vld [vmem:[%s8343_s9 + $0x50] sm:$0xff]  ;;  %v2076_v60 = vsel %vm889_vm5, %v6217_v57, 0.0 }
 0x546   : > { %4362 = vmatpush3.msra.mxu0 %v2265_v53  ;;  %v2259_v12 = vsel %vm754_vm0, %v2147_v58, %v2243_v3  ;;  %v2145_v50 = vadd.f32 %v2129_v27, %v6644_v17  ;;  %v4826_v3 = vld [vmem:[%s8343_s9 + $0x68] sm:$0xff]  ;;  %v2009_v55 = vsel %vm822_vm4, %v6226_v49, 0.0 }
 0x547   : > { %v6662_v15 = vpop.xlane.xlu1 %1955  ;;  %4363 = vmatprep.subr.mxu0 %v2264_v28  ;;  %v2258_v19 = vsel %vm754_vm0, %v2146_v44, %v2242_v51 }
 0x548   : > { %8630 = vst [vmem:[#allocation6_spill] sm:$0xff] %v6662_v15  ;;  %4364 = vmatpush3.msra.mxu0 %v2264_v28  ;;  %v2160_v42 = vmul.f32 2.0, %v6662_v15  ;;  %v2208_v26 = vmul.f32 %v6662_v15, %v6662_v15  ;;  %v2128_v6 = vmul.f32 256.0, %v6662_v15 }
 0x549   : > { %4365 = vmatprep.subr.mxu0 %v2263_v18  ;;  %v6672_v34 = vpop.xlane.xlu0 %1952 }
 0x54a   : > { %8631 = vst [vmem:[#allocation49_spill] sm:$0xff] %v6672_v34  ;;  %4366 = vmatpush3.msra.mxu0 %v2263_v18  ;;  %v2176_v5 = vmul.f32 %v2160_v42, %v6655_v62  ;;  %v2159_v40 = vmul.f32 2.0, %v6672_v34  ;;  %v2224_v53 = vmul.f32 256.0, %v2208_v26  ;;  %v2207_v24 = vmul.f32 %v6672_v34, %v6672_v34  ;;  %v4814_v18 = vld [vmem:[%s8343_s9 + $0x8] sm:$0xff]  ;;  %v4816_v42 = vld [vmem:[%s8343_s9 + $0x18] sm:$0xff] }
 0x54b   : > { %v1879_v10 = vpop.xlane.xlu1 %1878  ;;  %4367 = vmatprep.subr.mxu0 %v2262_v13  ;;  %v2127_v30 = vmul.f32 256.0, %v6672_v34  ;;  %v2144_v32 = vadd.f32 %v2128_v6, %v6655_v62  ;;  %v4815_v62 = vld [vmem:[%s8343_s9 + $0x10] sm:$0xff]  ;;  %v2075_v26 = vsel %vm889_vm5, %v6208_v61, 0.0 }
 0x54c   : > { %v2193_v21 = vadd.f32 %v2177_v29, %v1879_v10  ;;  %4368 = vmatpush3.msra.mxu0 %v2262_v13  ;;  %v2223_v7 = vmul.f32 256.0, %v2207_v24  ;;  %v4822_v29 = vld [vmem:[%s8343_s9 + $0x48] sm:$0xff]  ;;  %v4824_v13 = vld [vmem:[%s8343_s9 + $0x58] sm:$0xff]  ;;  %v4827_v10 = vld [vmem:[%s8343_s9 + $0x70] sm:$0xff]  ;;  %v2115_v58 = vsel %vm773_vm1, %v2075_v26, 0.0 }
 0x54d   : > { %4369 = vmatprep.subr.mxu0 %v2261_v31  ;;  %v1876_v0 = vpop.xlane.xlu0 %1875 }
 0x54e   : > { %v2192_v45 = vadd.f32 %v2176_v5, %v1876_v0  ;;  %4370 = vmatpush3.msra.mxu0 %v2261_v31  ;;  %v2241_v59 = vadd.f32 %v2225_v23, %v2193_v21  ;;  %v4828_v31 = vld [vmem:[%s8343_s9 + $0x78] sm:$0xff]  ;;  %v2118_v21 = vsel %vm773_vm1, %v2076_v60, 0.0  ;;  %v2045_v5 = vsel %vm773_vm1, %v2009_v55, 0.0 }
 0x54f   : > { %v1793_v43 = vpop.xlane.xlu1 %1792  ;;  %4371 = vmatprep.subr.mxu0 %v2260_v22  ;;  %2119 = vadd.xlane.f32.xlu0 %v2118_v21 }
 0x550   : > { %4372 = vmatpush3.msra.mxu0 %v2260_v22  ;;  %v2240_v16 = vadd.f32 %v2224_v53, %v2192_v45  ;;  %v2175_v2 = vmul.f32 %v2159_v40, %v1793_v43  ;;  %v2257_v54 = vsel %vm754_vm0, %v2145_v50, %v2241_v59  ;;  %v2143_v17 = vadd.f32 %v2127_v30, %v1793_v43 }
 0x551   : > { %4373 = vmatprep.subr.mxu0 %v2259_v12  ;;  %2046 = vadd.xlane.f32.xlu1 %v2045_v5 }
 0x552   : > { %4374 = vmatpush3.msra.mxu0 %v2259_v12  ;;  %v2256_v4 = vsel %vm754_vm0, %v2144_v32, %v2240_v16 }
 0x553   : > { %v1873_v38 = vpop.xlane.xlu1 %1872  ;;  %4375 = vmatprep.subr.mxu0 %v2258_v19  ;;  %2116 = vadd.xlane.f32.xlu0 %v2115_v58 }
 0x554   : > { %v2191_v28 = vadd.f32 %v2175_v2, %v1873_v38  ;;  %4376 = vmatpush3.msra.mxu0 %v2258_v19 }
 0x555   : > { %4377 = vmatprep.subr.mxu0 %v2257_v54 }
 0x556   : > { %v2239_v36 = vadd.f32 %v2223_v7, %v2191_v28  ;;  %4378 = vmatpush3.msra.mxu0 %v2257_v54 }
 0x557   : > { %4379 = vmatprep.subr.mxu0 %v2256_v4 }
 0x558   : > { %4380 = vmatpush3.msra.mxu0 %v2256_v4  ;;  %v2255_v25 = vsel %vm754_vm0, %v2143_v17, %v2239_v36 }
 0x559   : > { %4381 = vmatprep.subr.mxu0 %v2255_v25 }
 0x55a   : > { %4382 = vmatpush3.msra.mxu0 %v2255_v25 }
 0x55b   : > { %4384 = vmatmul.mubr.f32.vlgmr.msra.gmra.mxu0 %v4814_v18 }
 0x55c   : > { %4386 = vmatprep.mubr.f32.mxu0 %v4815_v62 }
 0x55f   : > { %4387 = vmatmul.mubr.f32.gmra.mxu0 %v4816_v42 }
 0x560   : > { %4389 = vmatprep.mubr.f32.mxu0 %v4817_v1 }
 0x563   : > { %4390 = vmatmul.mubr.f32.gmra.mxu0 %v4818_v33 }
 0x564   : > { %4392 = vmatprep.mubr.f32.mxu0 %v4819_v11 }
 0x567   : > { %4393 = vmatmul.mubr.f32.gmra.mxu0 %v4820_v8 }
 0x568   : > { %4395 = vmatprep.mubr.f32.mxu0 %v4821_v9 }
 0x56b   : > { %4396 = vmatmul.mubr.f32.gmra.mxu0 %v4822_v29 }
 0x56c   : > { %4398 = vmatprep.mubr.f32.mxu0 %v4823_v20 }
 0x56f   : > { %4399 = vmatmul.mubr.f32.gmra.mxu0 %v4824_v13 }
 0x570   : > { %4401 = vmatprep.mubr.f32.mxu0 %v4825_v46 }
 0x573   : > { %4402 = vmatmul.mubr.f32.gmra.mxu0 %v4826_v3 }
 0x574   : > { %4404 = vmatprep.mubr.f32.mxu0 %v4827_v10 }
 0x577   : > { %4405 = vmatmul.mubr.f32.gmra.mxu0 %v4828_v31 }
 0x578   : > { %2864 = vmatprep.mubr.f32.mxu0 %v8586_v39 }
 0x61b   : > { %v4385_v27 = vpop.f32.mrf.mxu0 }
 0x61c   : > { %v6767_v0 = vmul.f32 0.0009765625, %v4385_v27 }
 0x61d   : > { %v6769_v57 = vpop.f32.mrf.mxu0 }
 0x61e   : > { %v2433_v49 = vsel %vm754_vm0, %v6767_v0, 0.0 }
 0x61f   : > { %v4388_v22 = vpop.f32.mrf.mxu0  ;;  %v2451_v51 = vsel %vm1277_vm6, %v2433_v49, 0.0 }
 0x620   : > { %v2419_v23 = vmul.f32 0.0009765625, %v4388_v22  ;;  %2452 = vadd.xlane.f32.xlu1 %v2451_v51 }
 0x621   : > { %v2347_v45 = vpop.f32.mrf.mxu0 }
 0x622   : > { %v2435_v61 = vsel %vm754_vm0, %v2419_v23, 0.0  ;;  %v2499_v40 = vsel %vm822_vm4, %v2419_v23, 0.0  ;;  %v2418_v43 = vmul.f32 0.0009765625, %v2347_v45 }
 0x623   : > { %v2521_v12 = vsel %vm1277_vm6, %v2499_v40, 0.0  ;;  %v2457_v44 = vsel %vm1277_vm6, %v2435_v61, 0.0  ;;  %v4391_v59 = vpop.f32.mrf.mxu0 }
 0x624   : > { %v2434_v53 = vsel %vm754_vm0, %v2418_v43, 0.0  ;;  %v2498_v24 = vsel %vm822_vm4, %v2418_v43, 0.0  ;;  %2522 = vadd.xlane.f32.xlu0 %v2521_v12  ;;  %2458 = vadd.xlane.f32.xlu1 %v2457_v44  ;;  %v2421_v6 = vmul.f32 0.0009765625, %v4391_v59 }
 0x625   : > { %v2357_v50 = vpop.f32.mrf.mxu0  ;;  %v2518_v2 = vsel %vm1277_vm6, %v2498_v24, 0.0  ;;  %v2454_v19 = vsel %vm1277_vm6, %v2434_v53, 0.0 }
 0x626   : > { %v2437_v16 = vsel %vm754_vm0, %v2421_v6, 0.0  ;;  %v2420_v30 = vmul.f32 0.0009765625, %v2357_v50  ;;  %v2501_v25 = vsel %vm822_vm4, %v2421_v6, 0.0 }
 0x627   : > { %v4394_v38 = vpop.f32.mrf.mxu0  ;;  %v2463_v54 = vsel %vm1277_vm6, %v2437_v16, 0.0  ;;  %v2527_v42 = vsel %vm1277_vm6, %v2501_v25, 0.0 }
 0x628   : > { %v2436_v28 = vsel %vm754_vm0, %v2420_v30, 0.0  ;;  %2519 = vadd.xlane.f32.xlu0 %v2518_v2  ;;  %2455 = vadd.xlane.f32.xlu1 %v2454_v19  ;;  %v2423_v7 = vmul.f32 0.0009765625, %v4394_v38  ;;  %v2500_v1 = vsel %vm822_vm4, %v2420_v30, 0.0 }
 0x629   : > { %v2460_v32 = vsel %vm1277_vm6, %v2436_v28, 0.0  ;;  %v2367_v17 = vpop.f32.mrf.mxu0  ;;  %v2524_v9 = vsel %vm1277_vm6, %v2500_v1, 0.0 }
 0x62a   : > { %v2439_v36 = vsel %vm754_vm0, %v2423_v7, 0.0  ;;  %v2422_v4 = vmul.f32 0.0009765625, %v2367_v17  ;;  %v2503_v29 = vsel %vm822_vm4, %v2423_v7, 0.0 }
 0x62b   : > { %v2469_v18 = vsel %vm1277_vm6, %v2439_v36, 0.0  ;;  %v4397_v11 = vpop.f32.mrf.mxu0  ;;  %v2533_v10 = vsel %vm1277_vm6, %v2503_v29, 0.0 }
 0x62c   : > { %2464 = vadd.xlane.f32.xlu0 %v2463_v54  ;;  %2461 = vadd.xlane.f32.xlu1 %v2460_v32  ;;  %v2438_v62 = vsel %vm754_vm0, %v2422_v4, 0.0  ;;  %v2425_v8 = vmul.f32 0.0009765625, %v4397_v11  ;;  %v2502_v20 = vsel %vm822_vm4, %v2422_v4, 0.0 }
 0x62d   : > { %v2466_v33 = vsel %vm1277_vm6, %v2438_v62, 0.0  ;;  %v2377_v13 = vpop.f32.mrf.mxu0  ;;  %v2530_v31 = vsel %vm1277_vm6, %v2502_v20, 0.0 }
 0x62e   : > { %v2441_v46 = vsel %vm754_vm0, %v2425_v8, 0.0  ;;  %v2505_v3 = vsel %vm822_vm4, %v2425_v8, 0.0  ;;  %v2424_v55 = vmul.f32 0.0009765625, %v2377_v13 }
 0x62f   : > { %v4400_v60 = vpop.f32.mrf.mxu0  ;;  %v2539_v21 = vsel %vm1277_vm6, %v2505_v3, 0.0  ;;  %v2475_v5 = vsel %vm1277_vm6, %v2441_v46, 0.0 }
 0x630   : > { %2528 = vadd.xlane.f32.xlu0 %v2527_v42  ;;  %2470 = vadd.xlane.f32.xlu1 %v2469_v18  ;;  %v2427_v26 = vmul.f32 0.0009765625, %v4400_v60  ;;  %v2440_v27 = vsel %vm754_vm0, %v2424_v55, 0.0  ;;  %v2504_v49 = vsel %vm822_vm4, %v2424_v55, 0.0  ;;  %v2416_v42 = vmul.f32 0.0009765625, %v6769_v57  ;;  %v4830_v60 = vld [vmem:[%s8338_s4 + $0x58] sm:$0xff] }
 0x631   : > { %v2387_v58 = vpop.f32.mrf.mxu0  ;;  %v2536_v45 = vsel %vm1277_vm6, %v2504_v49, 0.0  ;;  %v2472_v61 = vsel %vm1277_vm6, %v2440_v27, 0.0  ;;  %v2074_v55 = vsel %vm889_vm5, %v4830_v60, 0.0  ;;  %v4832_v49 = vld [vmem:[%s8338_s4 + $0x40] sm:$0xff] }
 0x632   : > { %v2443_v51 = vsel %vm754_vm0, %v2427_v26, 0.0  ;;  %v2507_v23 = vsel %vm822_vm4, %v2427_v26, 0.0  ;;  %v2426_v40 = vmul.f32 0.0009765625, %v2387_v58  ;;  %v2432_v11 = vsel %vm754_vm0, %v2416_v42, 0.0 }
 0x633   : > { %v4403_v22 = vpop.f32.mrf.mxu0  ;;  %v2545_v43 = vsel %vm1277_vm6, %v2507_v23, 0.0  ;;  %v2481_v12 = vsel %vm1277_vm6, %v2443_v51, 0.0  ;;  %v2448_v20 = vsel %vm1277_vm6, %v2432_v11, 0.0  ;;  %v2112_v58 = vsel %vm773_vm1, %v2074_v55, 0.0 }
 0x634   : > { %2525 = vadd.xlane.f32.xlu0 %v2524_v9  ;;  %2467 = vadd.xlane.f32.xlu1 %v2466_v33  ;;  %v2429_v59 = vmul.f32 0.0009765625, %v4403_v22  ;;  %v2442_v24 = vsel %vm754_vm0, %v2426_v40, 0.0  ;;  %v2506_v6 = vsel %vm822_vm4, %v2426_v40, 0.0  ;;  %v4829_v9 = vld [vmem:[%s8338_s4 + $0x48] sm:$0xff]  ;;  %v2007_v22 = vsel %vm822_vm4, %v4832_v49, 0.0 }
 0x635   : > { %v2397_v44 = vpop.f32.mrf.mxu0  ;;  %v2542_v30 = vsel %vm1277_vm6, %v2506_v6, 0.0  ;;  %v2478_v2 = vsel %vm1277_vm6, %v2442_v24, 0.0  ;;  %v2008_v57 = vsel %vm822_vm4, %v4829_v9, 0.0  ;;  %v2072_v51 = vsel %vm889_vm5, %v4829_v9, 0.0  ;;  %v8634_v9 = vld [vmem:[#allocation14_spill] sm:$0xff] }
 0x636   : > { %v2445_v50 = vsel %vm754_vm0, %v2429_v59, 0.0  ;;  %v2509_v16 = vsel %vm822_vm4, %v2429_v59, 0.0  ;;  %v2428_v38 = vmul.f32 0.0009765625, %v2397_v44  ;;  %v2042_v46 = vsel %vm773_vm1, %v2008_v57, 0.0  ;;  %v4834_v59 = vld [vmem:[%s8338_s4 + $0x30] sm:$0xff] }
 0x637   : > { %v4406_v53 = vpop.f32.mrf.mxu0  ;;  %v2551_v28 = vsel %vm1277_vm6, %v2509_v16, 0.0  ;;  %v2487_v7 = vsel %vm1277_vm6, %v2445_v50, 0.0  ;;  %v2039_v23 = vsel %vm773_vm1, %v2007_v22, 0.0  ;;  %v4835_v16 = vld [vmem:[%s8338_s4 + $0x28] sm:$0xff]  ;;  %v2000_v57 = vsel %vm822_vm4, %v8634_v9, 0.0 }
 0x638   : > { %2534 = vadd.xlane.f32.xlu0 %v2533_v10  ;;  %2531 = vadd.xlane.f32.xlu1 %v2530_v31  ;;  %v2431_v54 = vmul.f32 0.0009765625, %v4406_v53  ;;  %v2444_v17 = vsel %vm754_vm0, %v2428_v38, 0.0  ;;  %v2508_v36 = vsel %vm822_vm4, %v2428_v38, 0.0  ;;  %v2497_v10 = vsel %vm822_vm4, %v6767_v0, 0.0 }
 0x639   : > { %v2407_v19 = vpop.f32.mrf.mxu0  ;;  %v2548_v18 = vsel %vm1277_vm6, %v2508_v36, 0.0  ;;  %v2484_v62 = vsel %vm1277_vm6, %v2444_v17, 0.0  ;;  %v2496_v31 = vsel %vm822_vm4, %v2416_v42, 0.0  ;;  %v2515_v0 = vsel %vm1277_vm6, %v2497_v10, 0.0  ;;  %v8632_v36 = vld [vmem:[#allocation15_spill] sm:$0xff]  ;;  %v8633_v42 = vld [vmem:[#allocation48_spill] sm:$0xff] }
 0x63a   : > { %v2430_v32 = vmul.f32 0.0009765625, %v2407_v19  ;;  %v2447_v4 = vsel %vm754_vm0, %v2431_v54, 0.0  ;;  %v2511_v8 = vsel %vm822_vm4, %v2431_v54, 0.0  ;;  %v2512_v26 = vsel %vm1277_vm6, %v2496_v31, 0.0 }
 0x63b   : > { %v2493_v1 = vsel %vm1277_vm6, %v2447_v4, 0.0  ;;  %v2557_v29 = vsel %vm1277_vm6, %v2511_v8, 0.0  ;;  %v2005_v53 = vsel %vm822_vm4, %v4834_v59, 0.0  ;;  %v2068_v54 = vsel %vm889_vm5, %v4835_v16, 0.0 }
 0x63c   : > { %2540 = vadd.xlane.f32.xlu0 %v2539_v21  ;;  %2476 = vadd.xlane.f32.xlu1 %v2475_v5  ;;  %v2446_v25 = vsel %vm754_vm0, %v2430_v32, 0.0  ;;  %v2510_v13 = vsel %vm822_vm4, %v2430_v32, 0.0  ;;  %v4831_v21 = vld [vmem:[%s8338_s4 + $0x50] sm:$0xff]  ;;  %v2033_v6 = vsel %vm773_vm1, %v2005_v53, 0.0  ;;  %v2094_v17 = vsel %vm773_vm1, %v2068_v54, 0.0 }
 0x63d   : > { %v2490_v33 = vsel %vm1277_vm6, %v2446_v25, 0.0  ;;  %v2554_v3 = vsel %vm1277_vm6, %v2510_v13, 0.0  ;;  %v2073_v5 = vsel %vm889_vm5, %v4831_v21, 0.0  ;;  %v2002_v4 = vsel %vm822_vm4, %v8632_v36, 0.0 }
 0x63e   : > { %v2109_v27 = vsel %vm773_vm1, %v2073_v5, 0.0  ;;  %v2064_v55 = vsel %vm889_vm5, %v8634_v9, 0.0  ;;  %v6968_v5 = vpop.xlane.xlu1 %2061 }
 0x63f   : > { %v2082_v21 = vsel %vm773_vm1, %v2064_v55, 0.0 }
 0x640   : > { %2537 = vadd.xlane.f32.xlu0 %v2536_v45  ;;  %2473 = vadd.xlane.f32.xlu1 %v2472_v61  ;;  %v2106_v45 = vsel %vm773_vm1, %v2072_v51, 0.0  ;;  %v4833_v61 = vld [vmem:[%s8338_s4 + $0x38] sm:$0xff] }
 0x641   : > { %v2006_v40 = vsel %vm822_vm4, %v4833_v61, 0.0  ;;  %v2070_v24 = vsel %vm889_vm5, %v4833_v61, 0.0 }
 0x642   : > { %v2100_v50 = vsel %vm773_vm1, %v2070_v24, 0.0 }
 0x644   : > { %2546 = vadd.xlane.f32.xlu0 %v2545_v43  ;;  %2482 = vadd.xlane.f32.xlu1 %v2481_v12  ;;  %v2071_v43 = vsel %vm889_vm5, %v4832_v49, 0.0  ;;  %v2036_v12 = vsel %vm773_vm1, %v2006_v40, 0.0 }
 0x645   : > { %v2103_v44 = vsel %vm773_vm1, %v2071_v43, 0.0 }
 0x648   : > { %2543 = vadd.xlane.f32.xlu0 %v2542_v30  ;;  %2479 = vadd.xlane.f32.xlu1 %v2478_v2  ;;  %v2004_v30 = vsel %vm822_vm4, %v4835_v16, 0.0  ;;  %v2069_v2 = vsel %vm889_vm5, %v4834_v59, 0.0 }
 0x649   : > { %v2030_v19 = vsel %vm773_vm1, %v2004_v30, 0.0  ;;  %v2097_v38 = vsel %vm773_vm1, %v2069_v2, 0.0 }
 0x64c   : > { %2552 = vadd.xlane.f32.xlu0 %v2551_v28  ;;  %2488 = vadd.xlane.f32.xlu1 %v2487_v7  ;;  %v4836_v28 = vld [vmem:[%s8338_s4 + $0x20] sm:$0xff] }
 0x64d   : > { %v2003_v7 = vsel %vm822_vm4, %v4836_v28, 0.0  ;;  %v2067_v25 = vsel %vm889_vm5, %v4836_v28, 0.0 }
 0x64e   : > { %v2027_v32 = vsel %vm773_vm1, %v2003_v7, 0.0 }
 0x650   : > { %2549 = vadd.xlane.f32.xlu0 %v2548_v18  ;;  %2485 = vadd.xlane.f32.xlu1 %v2484_v62  ;;  %v2024_v18 = vsel %vm773_vm1, %v2002_v4, 0.0  ;;  %v2091_v62 = vsel %vm773_vm1, %v2067_v25, 0.0 }
 0x654   : > { %2494 = vadd.xlane.f32.xlu0 %v2493_v1  ;;  %2491 = vadd.xlane.f32.xlu1 %v2490_v33  ;;  %v2001_v1 = vsel %vm822_vm4, %v8633_v42, 0.0  ;;  %v2066_v33 = vsel %vm889_vm5, %v8632_v36, 0.0 }
 0x655   : > { %v2021_v11 = vsel %vm773_vm1, %v2001_v1, 0.0  ;;  %v2088_v8 = vsel %vm773_vm1, %v2066_v33, 0.0 }
 0x658   : > { %2558 = vadd.xlane.f32.xlu0 %v2557_v29  ;;  %2449 = vadd.xlane.f32.xlu1 %v2448_v20  ;;  %v2065_v29 = vsel %vm889_vm5, %v8633_v42, 0.0  ;;  %v2018_v20 = vsel %vm773_vm1, %v2000_v57, 0.0 }
 0x659   : > { %v2085_v13 = vsel %vm773_vm1, %v2065_v29, 0.0 }
 0x65c   : > { %2555 = vadd.xlane.f32.xlu0 %v2554_v3  ;;  %2043 = vadd.xlane.f32.xlu1 %v2042_v46  ;;  %v8635_v46 = vld [vmem:[#allocation13_spill] sm:$0xff] }
 0x65d   : > { %v1999_v3 = vsel %vm822_vm4, %v8635_v46, 0.0  ;;  %v2063_v10 = vsel %vm889_vm5, %v8635_v46, 0.0 }
 0x65e   : > { %v2015_v31 = vsel %vm773_vm1, %v1999_v3, 0.0  ;;  %v2079_v60 = vsel %vm773_vm1, %v2063_v10, 0.0 }
 0x660   : > { %2516 = vadd.xlane.f32.xlu0 %v2515_v0  ;;  %2513 = vadd.xlane.f32.xlu1 %v2512_v26  ;;  %v6970_v0 = vpop.xlane.xlu0 %2058  ;;  %v6972_v26 = vpop.xlane.xlu1 %2055 }
 0x664   : > { %2113 = vadd.xlane.f32.xlu0 %v2112_v58  ;;  %2110 = vadd.xlane.f32.xlu1 %v2109_v27  ;;  %v6974_v58 = vpop.xlane.xlu0 %2125  ;;  %v6976_v27 = vpop.xlane.xlu1 %2052 }
 0x668   : > { %2040 = vadd.xlane.f32.xlu0 %v2039_v23  ;;  %2107 = vadd.xlane.f32.xlu1 %v2106_v45  ;;  %v6978_v49 = vpop.xlane.xlu0 %2122  ;;  %v6980_v22 = vpop.xlane.xlu1 %2049 }
 0x66c   : > { %2037 = vadd.xlane.f32.xlu0 %v2036_v12  ;;  %2104 = vadd.xlane.f32.xlu1 %v2103_v44  ;;  %v6982_v51 = vpop.xlane.xlu0 %2119  ;;  %v6984_v23 = vpop.xlane.xlu1 %2046 }
 0x670   : > { %2034 = vadd.xlane.f32.xlu0 %v2033_v6  ;;  %2101 = vadd.xlane.f32.xlu1 %v2100_v50  ;;  %v6986_v45 = vpop.xlane.xlu0 %2116 }
 0x674   : > { %2031 = vadd.xlane.f32.xlu0 %v2030_v19  ;;  %2098 = vadd.xlane.f32.xlu1 %v2097_v38 }
 0x678   : > { %2028 = vadd.xlane.f32.xlu0 %v2027_v32  ;;  %2095 = vadd.xlane.f32.xlu1 %v2094_v17 }
 0x67c   : > { %2025 = vadd.xlane.f32.xlu0 %v2024_v18  ;;  %2092 = vadd.xlane.f32.xlu1 %v2091_v62 }
 0x680   : > { %2022 = vadd.xlane.f32.xlu0 %v2021_v11  ;;  %2089 = vadd.xlane.f32.xlu1 %v2088_v8 }
 0x684   : > { %2019 = vadd.xlane.f32.xlu0 %v2018_v20  ;;  %2086 = vadd.xlane.f32.xlu1 %v2085_v13 }
 0x688   : > { %2016 = vadd.xlane.f32.xlu0 %v2015_v31  ;;  %2080 = vadd.xlane.f32.xlu1 %v2079_v60 }
 0x68c   : > { %2083 = vadd.xlane.f32.xlu0 %v2082_v21 }
 0x6a9   : > { %v6988_v61 = vpop.xlane.xlu1 %2452 }
 0x6ad   : > { %v6990_v40 = vpop.xlane.xlu1 %2458  ;;  %v6992_v43 = vpop.xlane.xlu0 %2522 }
 0x6ae   : > { %v2563_v60 = vmul.f32 %v6990_v40, %v6990_v40 }
 0x6b1   : > { %v6994_v12 = vpop.xlane.xlu1 %2455  ;;  %v6996_v44 = vpop.xlane.xlu0 %2519 }
 0x6b2   : > { %v2562_v55 = vmul.f32 %v6994_v12, %v6994_v12 }
 0x6b5   : > { %v6998_v59 = vpop.xlane.xlu1 %2461  ;;  %v7000_v53 = vpop.xlane.xlu0 %2464 }
 0x6b9   : > { %v7002_v24 = vpop.xlane.xlu1 %2470  ;;  %v7004_v6 = vpop.xlane.xlu0 %2528 }
 0x6bd   : > { %v7006_v50 = vpop.xlane.xlu1 %2467  ;;  %v7008_v16 = vpop.xlane.xlu0 %2525 }
 0x6c1   : > { %v7010_v30 = vpop.xlane.xlu1 %2531  ;;  %v7012_v2 = vpop.xlane.xlu0 %2534 }
 0x6c5   : > { %v7014_v19 = vpop.xlane.xlu1 %2476  ;;  %v2541_v38 = vpop.xlane.xlu0 %2540 }
 0x6c6   : > { %v2569_v20 = vmul.f32 %v7014_v19, %v7014_v19 }
 0x6c8   : > { %v2585_v21 = vsub.f32 %v2541_v38, %v2569_v20  ;;  %v2565_v38 = vmul.f32 %v7000_v53, %v7000_v53  ;;  %v2564_v20 = vmul.f32 %v6998_v59, %v6998_v59 }
 0x6c9   : > { %v7016_v28 = vpop.xlane.xlu1 %2473  ;;  %v2538_v7 = vpop.xlane.xlu0 %2537 }
 0x6cd   : > { %v7018_v54 = vpop.xlane.xlu1 %2482  ;;  %v2547_v32 = vpop.xlane.xlu0 %2546 }
 0x6ce   : > { %v2571_v4 = vmul.f32 %v7018_v54, %v7018_v54 }
 0x6d0   : > { %v2587_v33 = vsub.f32 %v2547_v32, %v2571_v4  ;;  %v2568_v4 = vmul.f32 %v7016_v28, %v7016_v28 }
 0x6d1   : > { %v7020_v17 = vpop.xlane.xlu1 %2479  ;;  %v2544_v36 = vpop.xlane.xlu0 %2543 }
 0x6d2   : > { %v2570_v62 = vmul.f32 %v7020_v17, %v7020_v17  ;;  %v2603_v46 = vadd.f32 1e-05, %v2587_v33  ;;  %v2578_v33 = vsub.f32 %v6996_v44, %v2562_v55 }
 0x6d4   : > { %v2586_v9 = vsub.f32 %v2544_v36, %v2570_v62 }
 0x6d5   : > { %v7024_v25 = vpop.xlane.xlu1 %2488  ;;  %v2553_v18 = vpop.xlane.xlu0 %2552 }
 0x6d6   : > { %v2573_v42 = vmul.f32 %v7024_v25, %v7024_v25  ;;  %v2602_v31 = vadd.f32 1e-05, %v2586_v9  ;;  %v2567_v9 = vmul.f32 %v7002_v24, %v7002_v24 }
 0x6d8   : > { %v2589_v1 = vsub.f32 %v2553_v18, %v2573_v42 }
 0x6d9   : > { %v7030_v11 = vpop.xlane.xlu1 %2485  ;;  %v2550_v8 = vpop.xlane.xlu0 %2549 }
 0x6da   : > { %v2605_v57 = vadd.f32 1e-05, %v2589_v1  ;;  %v2572_v29 = vmul.f32 %v7030_v11, %v7030_v11  ;;  %v2579_v1 = vsub.f32 %v6992_v43, %v2563_v60  ;;  %v2566_v43 = vmul.f32 %v7006_v50, %v7006_v50 }
 0x6dc   : > { %v2588_v13 = vsub.f32 %v2550_v8, %v2572_v29  ;;  %4600 = vrsqrt.f32 %v2605_v57  ;;  %v2601_v8 = vadd.f32 1e-05, %v2585_v21  ;;  %v2595_v55 = vadd.f32 1e-05, %v2579_v1  ;;  %v3104_v1 = vld [vmem:[%s8340_s6 + $0x78] sm:$0xff] }
 0x6dd   : > { %v7036_v3 = vpop.xlane.xlu1 %2491  ;;  %v7038_v10 = vpop.xlane.xlu0 %2494  ;;  %4602 = vrsqrt.f32 %v2603_v46  ;;  %v2580_v21 = vsub.f32 %v7008_v16, %v2564_v20 }
 0x6de   : > { %v2604_v32 = vadd.f32 1e-05, %v2588_v13  ;;  %v2575_v36 = vmul.f32 %v7038_v10, %v7038_v10  ;;  %4604 = vrsqrt.f32 %v2602_v31  ;;  %v2574_v57 = vmul.f32 %v7036_v3, %v7036_v3 }
 0x6df   : > { %v2584_v13 = vsub.f32 %v2538_v7, %v2568_v4  ;;  %v2581_v31 = vsub.f32 %v7004_v6, %v2565_v38  ;;  %v2596_v6 = vadd.f32 1e-05, %v2580_v21 }
 0x6e0   : > { %4606 = vrsqrt.f32 %v2604_v32  ;;  %v2594_v32 = vadd.f32 1e-05, %v2578_v33 }
 0x6e1   : > { %v7048_v18 = vpop.xlane.xlu1 %2449  ;;  %v2559_v62 = vpop.xlane.xlu0 %2558  ;;  %v2600_v39 = vadd.f32 1e-05, %v2584_v13  ;;  %v2597_v7 = vadd.f32 1e-05, %v2581_v31  ;;  %v8647_v13 = vld [vmem:[#allocation17_spill] sm:$0xff] }
 0x6e2   : > { %v2591_v42 = vsub.f32 %v2559_v62, %v2575_v36  ;;  %v2583_v36 = vsub.f32 %v7012_v2, %v2567_v9  ;;  %v2560_v20 = vmul.f32 %v7048_v18, %v7048_v18 }
 0x6e4   : > { %v2607_v29 = vadd.f32 1e-05, %v2591_v42  ;;  %v2582_v42 = vsub.f32 %v7010_v30, %v2566_v43  ;;  %v2599_v16 = vadd.f32 1e-05, %v2583_v36  ;;  %v3120_v30 = vsel %vm754_vm0, %v3104_v1, 0.0  ;;  %v8638_v1 = vld [vmem:[#allocation9_spill] sm:$0xff] }
 0x6e5   : > { %v2044_v44 = vpop.xlane.xlu1 %2043  ;;  %v2556_v46 = vpop.xlane.xlu0 %2555 }
 0x6e6   : > { %4608 = vrsqrt.f32 %v2607_v29  ;;  %v2590_v60 = vsub.f32 %v2556_v46, %v2574_v57  ;;  %v2598_v33 = vadd.f32 1e-05, %v2582_v42  ;;  %v2561_v29 = vmul.f32 %v6988_v61, %v6988_v61 }
 0x6e7   : > { %4610 = vrsqrt.f32 %v2601_v8 }
 0x6e8   : > { %v2606_v62 = vadd.f32 1e-05, %v2590_v60 }
 0x6e9   : > { %v2514_v34 = vpop.xlane.xlu1 %2513  ;;  %v2517_v15 = vpop.xlane.xlu0 %2516 }
 0x6ea   : > { %4612 = vrsqrt.f32 %v2606_v62  ;;  %v4601_v4 = vpop.eup %4600  ;;  %v8637_v62 = vld [vmem:[#allocation7_spill] sm:$0xff] }
 0x6eb   : > { %4614 = vrsqrt.f32 %v2595_v55  ;;  %v4603_v38 = vpop.eup %4602  ;;  %v2637_v9 = vmul.f32 %v4601_v4, %v6972_v26  ;;  %v8636_v26 = vld [vmem:[#allocation8_spill] sm:$0xff]  ;;  %v2576_v55 = vsub.f32 %v2514_v34, %v2560_v20  ;;  %v2649_v42 = vsub.f32 %v8637_v62, %v7014_v19  ;;  %v8640_v20 = vld [vmem:[#allocation11_spill] sm:$0xff] }
 0x6ec   : > { %4616 = vrsqrt.f32 %v2594_v32  ;;  %v4605_v57 = vpop.eup %4604  ;;  %v2653_v31 = vsub.f32 %v8636_v26, %v7024_v25  ;;  %v7088_v21 = vmul.f32 %v4603_v38, %v6980_v22  ;;  %v2650_v34 = vsub.f32 %v6481_v35, %v7020_v17  ;;  %v8639_v38 = vld [vmem:[#allocation10_spill] sm:$0xff]  ;;  %v8641_v26 = vld [vmem:[#allocation12_spill] sm:$0xff]  ;;  %v8643_v62 = vld [vmem:[#allocation31_spill] sm:$0xff] }
 0x6ed   : > { %4618 = vrsqrt.f32 %v2600_v39  ;;  %v2111_v2 = vpop.xlane.xlu1 %2110  ;;  %v7069_v8 = vpop.xlane.xlu0 %2113  ;;  %v3166_v39 = vsel %vm773_vm1, %v3120_v30, 0.0  ;;  %v2634_v25 = vmul.f32 %v4605_v57, %v6984_v23  ;;  %v2652_v19 = vsub.f32 %v8639_v38, %v7030_v11  ;;  %v8642_v17 = vld [vmem:[#allocation24_spill] sm:$0xff] }
 0x6ee   : > { %4620 = vrsqrt.f32 %v2597_v7  ;;  %v4607_v43 = vpop.eup %4606  ;;  %3167 = vadd.xlane.f32.xlu0 %v3166_v39  ;;  %v2669_v4 = vmul.f32 %v2653_v31, %v2637_v9  ;;  %v2654_v39 = vsub.f32 %v8640_v20, %v7036_v3  ;;  %v2655_v23 = vsub.f32 %v8641_v26, %v7038_v10  ;;  %v8646_v26 = vld [vmem:[#allocation16_spill] sm:$0xff]  ;;  %v8651_v7 = vld [vmem:[#allocation22_spill] sm:$0xff] }
 0x6ef   : > { %4622 = vrsqrt.f32 %v2596_v6  ;;  %v2636_v22 = vmul.f32 %v4607_v43, %v6976_v27  ;;  %v2666_v43 = vmul.f32 %v2650_v34, %v2634_v25  ;;  %v2708_v10 = vmul.f32 %v2634_v25, %v8643_v62  ;;  %v8648_v34 = vld [vmem:[#allocation21_spill] sm:$0xff] }
 0x6f0   : > { %4624 = vrsqrt.f32 %v2599_v16  ;;  %v2651_v16 = vsub.f32 %v8638_v1, %v7018_v54  ;;  %v2592_v54 = vadd.f32 1e-05, %v2576_v55 }
 0x6f1   : > { %4626 = vrsqrt.f32 %v2598_v33  ;;  %v7090_v32 = vpop.xlane.xlu1 %2107  ;;  %v2041_v36 = vpop.xlane.xlu0 %2040  ;;  %v2577_v33 = vsub.f32 %v2517_v15, %v2561_v29  ;;  %v7114_v15 = vmul.f32 %v7088_v21, %v8642_v17  ;;  %v2685_v29 = vadd.f32 %v2669_v4, %v6982_v51 }
 0x6f2   : > { %v2667_v35 = vmul.f32 %v2651_v16, %v7088_v21  ;;  %4628 = vrsqrt.f32 %v2592_v54  ;;  %v2682_v62 = vadd.f32 %v2666_v43, %v2111_v2  ;;  %v8650_v54 = vld [vmem:[#allocation19_spill] sm:$0xff] }
 0x6f3   : > { %v4609_v6 = vpop.eup %4608  ;;  %v2593_v55 = vadd.f32 1e-05, %v2577_v33 }
 0x6f4   : > { %v4611_v30 = vpop.eup %4610  ;;  %v2639_v57 = vmul.f32 %v4609_v6, %v6968_v5  ;;  %v8644_v5 = vld [vmem:[#allocation20_spill] sm:$0xff]  ;;  %v2668_v6 = vmul.f32 %v2652_v19, %v2636_v22 }
 0x6f5   : > { %v7109_v31 = vmul.f32 %v4611_v30, %v2044_v44  ;;  %v7116_v27 = vpop.xlane.xlu1 %2104  ;;  %v2038_v11 = vpop.xlane.xlu0 %2037  ;;  %v2714_v44 = vmul.f32 %v2637_v9, %v8644_v5  ;;  %v8645_v30 = vld [vmem:[#allocation29_spill] sm:$0xff]  ;;  %4630 = vrsqrt.f32 %v2593_v55 }
 0x6f6   : > { %v2671_v3 = vmul.f32 %v2655_v23, %v2639_v57  ;;  %v2709_v16 = vmul.f32 %v2634_v25, %v8645_v30  ;;  %v2718_v17 = vmul.f32 %v2639_v57, %v8646_v26  ;;  %v2719_v60 = vmul.f32 %v2639_v57, %v8647_v13 }
 0x6f7   : > { %v4613_v1 = vpop.eup %4612  ;;  %v2715_v23 = vmul.f32 %v2637_v9, %v8648_v34  ;;  %v2665_v33 = vmul.f32 %v2649_v42, %v7109_v31  ;;  %v2746_v30 = vadd.f32 %v2714_v44, %v2685_v29  ;;  %v8649_v9 = vld [vmem:[#allocation18_spill] sm:$0xff]  ;;  %v2712_v44 = vmul.f32 %v2636_v22, %v8651_v7 }
 0x6f8   : > { %v7122_v38 = vpop.eup %4614  ;;  %v2687_v20 = vadd.f32 %v2671_v3, %v6974_v58  ;;  %v2638_v51 = vmul.f32 %v4613_v1, %v6970_v0  ;;  %v2684_v0 = vadd.f32 %v2668_v6, %v6986_v45 }
 0x6f9   : > { %v7128_v4 = vpop.eup %4616  ;;  %v7132_v19 = vpop.xlane.xlu1 %2101  ;;  %v2747_v13 = vadd.f32 %v2715_v23, %v2685_v29  ;;  %v2741_v23 = vadd.f32 %v2709_v16, %v2682_v62 }
 0x6fa   : > { %v2035_v25 = vpop.xlane.xlu0 %2034  ;;  %v4619_v5 = vpop.eup %4618  ;;  %v2750_v58 = vadd.f32 %v2718_v17, %v2687_v20  ;;  %v2751_v3 = vadd.f32 %v2719_v60, %v2687_v20  ;;  %v2670_v26 = vmul.f32 %v2654_v39, %v2638_v51  ;;  %v2716_v42 = vmul.f32 %v2638_v51, %v8649_v9 }
 0x6fb   : > { %v4621_v46 = vpop.eup %4620  ;;  %v2632_v57 = vmul.f32 %v4619_v5, %v2041_v36  ;;  %v2717_v43 = vmul.f32 %v2638_v51, %v8650_v54  ;;  %v2740_v60 = vadd.f32 %v2708_v10, %v2682_v62  ;;  %v2683_v39 = vadd.f32 %v2667_v35, %v7069_v8 }
 0x6fc   : > { %v4623_v1 = vpop.eup %4622  ;;  %4632 = vtanh.f32 %v2750_v58  ;;  %v2686_v2 = vadd.f32 %v2670_v26, %v6978_v49  ;;  %v8652_v49 = vld [vmem:[#allocation23_spill] sm:$0xff]  ;;  %v8653_v51 = vsub.f32 %v6500_v52, %v7016_v28  ;;  %v2744_v7 = vadd.f32 %v2712_v44, %v2684_v0  ;;  %v8654_v58 = vld [vmem:[#allocation25_spill] sm:$0xff] }
 0x6fd   : > { %v4625_v34 = vpop.eup %4624  ;;  %4634 = vtanh.f32 %v2751_v3  ;;  %v2099_v29 = vpop.xlane.xlu1 %2098  ;;  %v2713_v17 = vmul.f32 %v2636_v22, %v8652_v49  ;;  %v2681_v10 = vadd.f32 %v2665_v33, %v7090_v32  ;;  %v8655_v3 = vld [vmem:[#allocation35_spill] sm:$0xff]  ;;  %v2742_v16 = vadd.f32 %v7114_v15, %v2683_v39  ;;  %v8657_v33 = vld [vmem:[#allocation30_spill] sm:$0xff] }
 0x6fe   : > { %v2032_v20 = vpop.xlane.xlu0 %2031  ;;  %v4627_v45 = vpop.eup %4626  ;;  %4636 = vtanh.f32 %v2746_v30  ;;  %v2748_v36 = vadd.f32 %v2716_v42, %v2686_v2  ;;  %v2749_v6 = vadd.f32 %v2717_v43, %v2686_v2  ;;  %v2631_v55 = vmul.f32 %v4625_v34, %v2038_v11 }
 0x6ff   : > { %4638 = vtanh.f32 %v2747_v13  ;;  %v2664_v5 = vmul.f32 %v8653_v51, %v2632_v57  ;;  %v2630_v8 = vmul.f32 %v4627_v45, %v2035_v25  ;;  %v2745_v35 = vadd.f32 %v2713_v17, %v2684_v0  ;;  %v7162_v43 = vpop.eup %4628 }
 0x700   : > { %4640 = vtanh.f32 %v2748_v36  ;;  %v2711_v30 = vmul.f32 %v7088_v21, %v8654_v58  ;;  %v2706_v11 = vmul.f32 %v7109_v31, %v8655_v3  ;;  %v8656_v52 = vsub.f32 %v6519_v47, %v7002_v24  ;;  %v8659_v24 = vld [vmem:[#allocation33_spill] sm:$0xff] }
 0x701   : > { %4642 = vtanh.f32 %v2749_v6  ;;  %v2096_v26 = vpop.xlane.xlu1 %2095  ;;  %v2629_v62 = vmul.f32 %v4621_v46, %v2032_v20  ;;  %v2707_v25 = vmul.f32 %v7109_v31, %v8657_v33  ;;  %v2680_v21 = vadd.f32 %v2664_v5, %v7116_v27  ;;  %v8660_v31 = vld [vmem:[#allocation34_spill] sm:$0xff] }
 0x702   : > { %v2029_v22 = vpop.xlane.xlu0 %2028  ;;  %4644 = vtanh.f32 %v2740_v60  ;;  %v2663_v28 = vmul.f32 %v8656_v52, %v2631_v55  ;;  %v2743_v32 = vadd.f32 %v2711_v30, %v2683_v39  ;;  %v2645_v13 = vsub.f32 %v6524_v41, %v7000_v53  ;;  %v4631_v44 = vpop.eup %4630  ;;  %v8661_v60 = vld [vmem:[#allocation36_spill] sm:$0xff] }
 0x703   : > { %4646 = vtanh.f32 %v2741_v23  ;;  %v2738_v0 = vadd.f32 %v2706_v11, %v2681_v10  ;;  %v8658_v15 = vsub.f32 %v6514_v48, %v7006_v50  ;;  %v2739_v47 = vadd.f32 %v2707_v25, %v2681_v10  ;;  %v8663_v23 = vld [vmem:[#allocation32_spill] sm:$0xff]  ;;  %v8664_v10 = vld [vmem:[#allocation27_spill] sm:$0xff] }
 0x704   : > { %4648 = vtanh.f32 %v2744_v7  ;;  %v2704_v46 = vmul.f32 %v2632_v57, %v8659_v24  ;;  %v2628_v9 = vmul.f32 %v4623_v1, %v2029_v22  ;;  %v2705_v27 = vmul.f32 %v2632_v57, %v8660_v31  ;;  %v8666_v30 = vld [vmem:[#allocation28_spill] sm:$0xff]  ;;  %v8667_v22 = vld [vmem:[#allocation26_spill] sm:$0xff]  ;;  %v8671_v24 = vld [vmem:[#allocation41_spill] sm:$0xff] }
 0x705   : > { %v2662_v2 = vmul.f32 %v8658_v15, %v2630_v8  ;;  %4650 = vtanh.f32 %v2745_v35  ;;  %v2093_v42 = vpop.xlane.xlu1 %2092  ;;  %v2679_v41 = vadd.f32 %v2663_v28, %v7132_v19  ;;  %v2661_v53 = vmul.f32 %v2645_v13, %v2629_v62  ;;  %v8662_v19 = vld [vmem:[#allocation37_spill] sm:$0xff]  ;;  %v8669_v13 = vld [vmem:[#allocation42_spill] sm:$0xff]  ;;  %v8672_v31 = vld [vmem:[#allocation44_spill] sm:$0xff] }
 0x706   : > { %v2026_v54 = vpop.xlane.xlu0 %2025  ;;  %4652 = vtanh.f32 %v2742_v16  ;;  %v2644_v34 = vsub.f32 %v6522_v56, %v6998_v59  ;;  %v2736_v48 = vadd.f32 %v2704_v46, %v2680_v21  ;;  %v2737_v1 = vadd.f32 %v2705_v27, %v2680_v21 }
 0x707   : > { %4654 = vtanh.f32 %v2743_v32  ;;  %v2627_v50 = vmul.f32 %v7122_v38, %v2026_v54  ;;  %v2702_v39 = vmul.f32 %v2631_v55, %v8661_v60  ;;  %v2678_v20 = vadd.f32 %v2662_v2, %v2099_v29 }
 0x708   : > { %4656 = vtanh.f32 %v2738_v0  ;;  %v2642_v57 = vsub.f32 %v6617_v37, %v6994_v12  ;;  %v2703_v36 = vmul.f32 %v2631_v55, %v8662_v19  ;;  %v2660_v6 = vmul.f32 %v2644_v34, %v2628_v9  ;;  %v8675_v19 = vld [vmem:[#allocation47_spill] sm:$0xff] }
 0x709   : > { %v4633_v45 = vpop.eup %4632  ;;  %4658 = vtanh.f32 %v2739_v47  ;;  %v2090_v49 = vpop.xlane.xlu1 %2089  ;;  %v2734_v17 = vadd.f32 %v2702_v39, %v2679_v41  ;;  %v2700_v38 = vmul.f32 %v2630_v8, %v8663_v23  ;;  %v2677_v51 = vadd.f32 %v2661_v53, %v2096_v26 }
 0x70a   : > { %v2023_v56 = vpop.xlane.xlu0 %2022  ;;  %v4635_v59 = vpop.eup %4634  ;;  %4660 = vtanh.f32 %v2736_v48  ;;  %v2735_v29 = vadd.f32 %v2703_v36, %v2679_v41  ;;  %v2701_v35 = vmul.f32 %v2630_v8, %v8664_v10  ;;  %v8665_v37 = vsub.f32 %v6607_v63, %v6990_v40  ;;  %v8668_v8 = vld [vmem:[#allocation6_spill] sm:$0xff]  ;;  %v8677_v10 = vld [vmem:[#allocation43_spill] sm:$0xff] }
 0x70b   : > { %v2626_v5 = vmul.f32 %v7128_v4, %v2023_v56  ;;  %v4637_v7 = vpop.eup %4636  ;;  %2800 = vmatprep.subr.mxu0 %v4635_v59  ;;  %4662 = vtanh.f32 %v2737_v1  ;;  %v2732_v58 = vadd.f32 %v2700_v38, %v2678_v20  ;;  %v2698_v3 = vmul.f32 %v2629_v62, %v8666_v30  ;;  %v8673_v1 = vld [vmem:[#allocation46_spill] sm:$0xff]  ;;  %v8676_v38 = vld [vmem:[#allocation40_spill] sm:$0xff] }
 0x70c   : > { %v2659_v12 = vmul.f32 %v8665_v37, %v2627_v50  ;;  %v4639_v55 = vpop.eup %4638  ;;  %2801 = vmatpush1.msra.mxu0 %v4633_v45  ;;  %v2733_v26 = vadd.f32 %v2701_v35, %v2678_v20  ;;  %v2699_v4 = vmul.f32 %v2629_v62, %v8667_v22  ;;  %v2676_v16 = vadd.f32 %v2660_v6, %v2093_v42  ;;  %v8670_v62 = vld [vmem:[#allocation49_spill] sm:$0xff] }
 0x70d   : > { %v4641_v11 = vpop.eup %4640  ;;  %v2658_v52 = vmul.f32 %v2642_v57, %v2626_v5  ;;  %v2641_v33 = vsub.f32 %v8668_v8, %v6988_v61  ;;  %4664 = vtanh.f32 %v2734_v17  ;;  %v2730_v63 = vadd.f32 %v2698_v3, %v2677_v51  ;;  %v2087_v40 = vpop.xlane.xlu1 %2086  ;;  %v8679_v3 = vld [vmem:[#allocation39_spill] sm:$0xff] }
 0x70e   : > { %v2020_v28 = vpop.xlane.xlu0 %2019  ;;  %v4643_v32 = vpop.eup %4642  ;;  %4666 = vtanh.f32 %v2735_v29  ;;  %v2731_v21 = vadd.f32 %v2699_v4, %v2677_v51  ;;  %v2697_v0 = vmul.f32 %v2628_v9, %v8669_v13  ;;  %v2675_v15 = vadd.f32 %v2659_v12, %v2090_v49 }
 0x70f   : > { %v4645_v25 = vpop.eup %4644  ;;  %2802 = vmatprep.subr.mxu0 %v4643_v32  ;;  %v2640_v47 = vsub.f32 %v8670_v62, %v7048_v18  ;;  %4668 = vtanh.f32 %v2732_v58  ;;  %v2696_v46 = vmul.f32 %v2628_v9, %v8671_v24  ;;  %v2625_v42 = vmul.f32 %v4631_v44, %v2020_v28  ;;  %v8674_v44 = vld [vmem:[#allocation45_spill] sm:$0xff] }
 0x710   : > { %v4647_v2 = vpop.eup %4646  ;;  %2803 = vmatpush1.msra.mxu0 %v4641_v11  ;;  %4670 = vtanh.f32 %v2733_v26  ;;  %v2729_v54 = vadd.f32 %v2697_v0, %v2676_v16  ;;  %v2695_v27 = vmul.f32 %v2627_v50, %v8672_v31  ;;  %v2674_v41 = vadd.f32 %v2658_v52, %v2087_v40  ;;  %v2784_v62 = vld [vmem:[%s8339_s5] sm:$0xff]  ;;  %v2789_v31 = vld [vmem:[%s8339_s5 + $0x28] sm:$0xff] }
 0x711   : > { %v4649_v61 = vpop.eup %4648  ;;  %2804 = vmatprep.subr.mxu0 %v4639_v55  ;;  %4672 = vtanh.f32 %v2730_v63  ;;  %v2728_v48 = vadd.f32 %v2696_v46, %v2676_v16  ;;  %v2694_v60 = vmul.f32 %v2627_v50, %v8673_v1  ;;  %v2693_v20 = vmul.f32 %v2626_v5, %v8674_v44  ;;  %v2081_v6 = vpop.xlane.xlu1 %2080  ;;  %v8678_v55 = vld [vmem:[#allocation38_spill] sm:$0xff]  ;;  %v2795_v1 = vld [vmem:[%s8339_s5 + $0x58] sm:$0xff]  ;;  %v7262_v44 = vld [vmem:[%s8340_s6 + $0x70] sm:$0xff] }
 0x712   : > { %v2017_v53 = vpop.xlane.xlu0 %2016  ;;  %v4651_v34 = vpop.eup %4650  ;;  %2805 = vmatpush1.msra.mxu0 %v4637_v7  ;;  %4674 = vtanh.f32 %v2731_v21  ;;  %v2727_v9 = vadd.f32 %v2695_v27, %v2675_v15  ;;  %v2692_v36 = vmul.f32 %v2626_v5, %v8675_v19  ;;  %v2657_v56 = vmul.f32 %v2641_v33, %v2625_v42  ;;  %v2785_v46 = vld [vmem:[%s8339_s5 + $0x8] sm:$0xff]  ;;  %v2790_v27 = vld [vmem:[%s8339_s5 + $0x30] sm:$0xff] }
 0x713   : > { %v2624_v18 = vmul.f32 %v7162_v43, %v2017_v53  ;;  %v4653_v39 = vpop.eup %4652  ;;  %2806 = vmatprep.subr.mxu0 %v4651_v34  ;;  %v2726_v57 = vadd.f32 %v2694_v60, %v2675_v15  ;;  %4676 = vtanh.f32 %v2729_v54  ;;  %v2725_v50 = vadd.f32 %v2693_v20, %v2674_v41  ;;  %v2788_v54 = vld [vmem:[%s8339_s5 + $0x20] sm:$0xff]  ;;  %v2793_v34 = vld [vmem:[%s8339_s5 + $0x48] sm:$0xff] }
 0x714   : > { %v4655_v45 = vpop.eup %4654  ;;  %2807 = vmatpush1.msra.mxu0 %v4649_v61  ;;  %4678 = vtanh.f32 %v2728_v48  ;;  %v2724_v23 = vadd.f32 %v2692_v36, %v2674_v41  ;;  %v2690_v51 = vmul.f32 %v2625_v42, %v8676_v38  ;;  %v2691_v5 = vmul.f32 %v2625_v42, %v8677_v10  ;;  %v2786_v42 = vld [vmem:[%s8339_s5 + $0x10] sm:$0xff]  ;;  %v2787_v61 = vld [vmem:[%s8339_s5 + $0x18] sm:$0xff]  ;;  %v2792_v53 = vld [vmem:[%s8339_s5 + $0x40] sm:$0xff] }
 0x715   : > { %v2656_v49 = vmul.f32 %v2640_v47, %v2624_v18  ;;  %v4657_v59 = vpop.eup %4656  ;;  %2808 = vmatprep.subr.mxu0 %v4655_v45  ;;  %4680 = vtanh.f32 %v2727_v9  ;;  %v2689_v58 = vmul.f32 %v2624_v18, %v8678_v55  ;;  %v2688_v11 = vmul.f32 %v2624_v18, %v8679_v3  ;;  %v2791_v41 = vld [vmem:[%s8339_s5 + $0x38] sm:$0xff]  ;;  %v2794_v48 = vld [vmem:[%s8339_s5 + $0x50] sm:$0xff]  ;;  %v2796_v60 = vld [vmem:[%s8339_s5 + $0x60] sm:$0xff] }
 0x716   : > { %v2084_v17 = vpop.xlane.xlu0 %2083  ;;  %v4659_v43 = vpop.eup %4658  ;;  %2809 = vmatpush1.msra.mxu0 %v4653_v39  ;;  %4682 = vtanh.f32 %v2726_v57  ;;  %v8680_v24 = vmov 0.0   ;;  %v2797_v18 = vld [vmem:[%s8339_s5 + $0x68] sm:$0xff]  ;;  %v2798_v39 = vld [vmem:[%s8339_s5 + $0x70] sm:$0xff]  ;;  %v2799_v9 = vld [vmem:[%s8339_s5 + $0x78] sm:$0xff]  ;;  %v3119_v20 = vsel %vm754_vm0, %v7262_v44, 0.0 }
 0x717   : > { %v2673_v7 = vadd.f32 %v2657_v56, %v2084_v17  ;;  %v2672_v29 = vadd.f32 %v2656_v49, %v2081_v6  ;;  %2810 = vmatprep.subr.mxu0 %v4647_v2  ;;  %v4661_v35 = vpop.eup %4660  ;;  %4684 = vtanh.f32 %v2725_v50  ;;  %v3163_v45 = vsel %vm773_vm1, %v3119_v20, 0.0  ;;  %v7271_v57 = vld [vmem:[%s8340_s6 + $0x60] sm:$0xff]  ;;  %v7280_v6 = vld [vmem:[%s8340_s6 + $0x68] sm:$0xff] }
 0x718   : > { %2811 = vmatpush1.msra.mxu0 %v4645_v25  ;;  %v4663_v12 = vpop.eup %4662  ;;  %4686 = vtanh.f32 %v2724_v23  ;;  %3164 = vadd.xlane.f32.xlu0 %v3163_v45  ;;  %v3117_v19 = vsel %vm754_vm0, %v7271_v57, 0.0  ;;  %v3118_v49 = vsel %vm754_vm0, %v7280_v6, 0.0  ;;  %v3098_v10 = vld [vmem:[%s8340_s6 + $0x48] sm:$0xff] }
 0x719   : > { %v2722_v37 = vadd.f32 %v2690_v51, %v2673_v7  ;;  %v2723_v30 = vadd.f32 %v2691_v5, %v2673_v7  ;;  %2812 = vmatprep.subr.mxu0 %v4659_v43  ;;  %v2721_v22 = vadd.f32 %v2689_v58, %v2672_v29  ;;  %v2720_v16 = vadd.f32 %v2688_v11, %v2672_v29  ;;  %v7298_v43 = vld [vmem:[%s8340_s6 + $0x58] sm:$0xff]  ;;  %v3097_v51 = vld [vmem:[%s8340_s6 + $0x40] sm:$0xff] }
 0x71a   : > { %2813 = vmatpush1.msra.mxu0 %v4657_v59  ;;  %v4665_v26 = vpop.eup %4664  ;;  %v3157_v36 = vsel %vm773_vm1, %v3117_v19, 0.0  ;;  %v3160_v56 = vsel %vm773_vm1, %v3118_v49, 0.0  ;;  %v7289_v59 = vld [vmem:[%s8340_s6 + $0x50] sm:$0xff]  ;;  %v3116_v23 = vsel %vm754_vm0, %v7298_v43, 0.0  ;;  %v3113_v7 = vsel %vm754_vm0, %v3097_v51, 0.0  ;;  %v3096_v58 = vld [vmem:[%s8340_s6 + $0x38] sm:$0xff] }
 0x71b   : > { %2814 = vmatprep.subr.mxu0 %v4663_v12  ;;  %v4667_v4 = vpop.eup %4666  ;;  %4688 = vtanh.f32 %v2722_v37  ;;  %3161 = vadd.xlane.f32.xlu1 %v3160_v56  ;;  %v3115_v50 = vsel %vm754_vm0, %v7289_v59, 0.0  ;;  %v3154_v38 = vsel %vm773_vm1, %v3116_v23, 0.0  ;;  %v3145_v29 = vsel %vm773_vm1, %v3113_v7, 0.0  ;;  %v3095_v37 = vld [vmem:[%s8340_s6 + $0x30] sm:$0xff]  ;;  %v3093_v11 = vld [vmem:[%s8340_s6 + $0x20] sm:$0xff] }
 0x71c   : > { %2815 = vmatpush1.msra.mxu0 %v4661_v35  ;;  %v4669_v52 = vpop.eup %4668  ;;  %4690 = vtanh.f32 %v2723_v30  ;;  %3158 = vadd.xlane.f32.xlu0 %v3157_v36  ;;  %v3151_v17 = vsel %vm773_vm1, %v3115_v50, 0.0  ;;  %v3114_v5 = vsel %vm754_vm0, %v3098_v10, 0.0  ;;  %v3111_v12 = vsel %vm754_vm0, %v3095_v37, 0.0 }
 0x71d   : > { %2816 = vmatprep.subr.mxu0 %v4667_v4  ;;  %v4671_v28 = vpop.eup %4670  ;;  %4692 = vtanh.f32 %v2721_v22  ;;  %v3148_v35 = vsel %vm773_vm1, %v3114_v5, 0.0  ;;  %v3139_v55 = vsel %vm773_vm1, %v3111_v12, 0.0  ;;  %v3112_v30 = vsel %vm754_vm0, %v3096_v58, 0.0  ;;  %v3094_v4 = vld [vmem:[%s8340_s6 + $0x28] sm:$0xff] }
 0x71e   : > { %2817 = vmatpush1.msra.mxu0 %v4665_v26  ;;  %v4673_v32 = vpop.eup %4672  ;;  %4694 = vtanh.f32 %v2720_v16  ;;  %v3142_v3 = vsel %vm773_vm1, %v3112_v30, 0.0  ;;  %v3109_v26 = vsel %vm754_vm0, %v3093_v11, 0.0  ;;  %v3110_v16 = vsel %vm754_vm0, %v3094_v4, 0.0 }
 0x71f   : > { %2818 = vmatprep.subr.mxu0 %v4671_v28  ;;  %v4675_v8 = vpop.eup %4674  ;;  %3155 = vadd.xlane.f32.xlu1 %v3154_v38  ;;  %v3133_v22 = vsel %vm773_vm1, %v3109_v26, 0.0 }
 0x720   : > { %2819 = vmatpush1.msra.mxu0 %v4669_v52  ;;  %v4677_v33 = vpop.eup %4676  ;;  %3152 = vadd.xlane.f32.xlu0 %v3151_v17  ;;  %v3136_v52 = vsel %vm773_vm1, %v3110_v16, 0.0 }
 0x721   : > { %2820 = vmatprep.subr.mxu0 %v4675_v8  ;;  %v4679_v63 = vpop.eup %4678 }
 0x722   : > { %2821 = vmatpush1.msra.mxu0 %v4673_v32  ;;  %v4681_v40 = vpop.eup %4680 }
 0x723   : > { %2822 = vmatprep.subr.mxu0 %v4677_v33  ;;  %v4683_v25 = vpop.eup %4682  ;;  %3149 = vadd.xlane.f32.xlu1 %v3148_v35 }
 0x724   : > { %2823 = vmatpush1.msra.mxu0 %v4679_v63  ;;  %v4685_v21 = vpop.eup %4684  ;;  %3146 = vadd.xlane.f32.xlu0 %v3145_v29 }
 0x725   : > { %2824 = vmatprep.subr.mxu0 %v4681_v40  ;;  %v4687_v13 = vpop.eup %4686 }
 0x726   : > { %2825 = vmatpush1.msra.mxu0 %v4683_v25 }
 0x727   : > { %2826 = vmatprep.subr.mxu0 %v4685_v21  ;;  %3143 = vadd.xlane.f32.xlu1 %v3142_v3 }
 0x728   : > { %2827 = vmatpush1.msra.mxu0 %v4687_v13  ;;  %v4689_v0 = vpop.eup %4688  ;;  %3140 = vadd.xlane.f32.xlu0 %v3139_v55 }
 0x729   : > { %v4691_v15 = vpop.eup %4690 }
 0x72a   : > { %2828 = vmatprep.subr.mxu0 %v4691_v15  ;;  %v4693_v2 = vpop.eup %4692 }
 0x72b   : > { %2829 = vmatpush1.msra.mxu0 %v4689_v0  ;;  %v4695_v47 = vpop.eup %4694  ;;  %3137 = vadd.xlane.f32.xlu1 %v3136_v52 }
 0x72c   : > { %2830 = vmatprep.subr.mxu0 %v4693_v2  ;;  %3134 = vadd.xlane.f32.xlu0 %v3133_v22 }
 0x72d   : > { %2831 = vmatpush1.msra.mxu0 %v4695_v47 }
 0x72e   : > { %2865 = vmatmul.mubr.f32.vlgmr.msra.gmra.mxu0 %v2784_v62 }
 0x72f   : > { %2870 = vmatprep.mubr.f32.mxu0 %v8680_v24 }
 0x732   : > { %2871 = vmatmul.mubr.f32.gmra.mxu0 %v2785_v46 }
 0x733   : > { %2876 = vmatprep.mubr.f32.mxu0 %v8680_v24 }
 0x736   : > { %2877 = vmatmul.mubr.f32.gmra.mxu0 %v2786_v42 }
 0x737   : > { %2882 = vmatprep.mubr.f32.mxu0 %v8680_v24 }
 0x73a   : > { %2883 = vmatmul.mubr.f32.gmra.mxu0 %v2787_v61 }
 0x73b   : > { %2888 = vmatprep.mubr.f32.mxu0 %v8680_v24 }
 0x73e   : > { %2889 = vmatmul.mubr.f32.gmra.mxu0 %v2788_v54 }
 0x73f   : > { %2894 = vmatprep.mubr.f32.mxu0 %v8680_v24 }
 0x742   : > { %2895 = vmatmul.mubr.f32.gmra.mxu0 %v2789_v31 }
 0x743   : > { %2900 = vmatprep.mubr.f32.mxu0 %v8680_v24 }
 0x746   : > { %2901 = vmatmul.mubr.f32.gmra.mxu0 %v2790_v27 }
 0x747   : > { %2906 = vmatprep.mubr.f32.mxu0 %v8680_v24 }
 0x74a   : > { %2907 = vmatmul.mubr.f32.gmra.mxu0 %v2791_v41 }
 0x74b   : > { %2912 = vmatprep.mubr.f32.mxu0 %v8680_v24 }
 0x74e   : > { %2913 = vmatmul.mubr.f32.gmra.mxu0 %v2792_v53 }
 0x74f   : > { %2918 = vmatprep.mubr.f32.mxu0 %v8680_v24 }
 0x752   : > { %2919 = vmatmul.mubr.f32.gmra.mxu0 %v2793_v34 }
 0x753   : > { %2924 = vmatprep.mubr.f32.mxu0 %v8680_v24 }
 0x756   : > { %2925 = vmatmul.mubr.f32.gmra.mxu0 %v2794_v48 }
 0x757   : > { %2930 = vmatprep.mubr.f32.mxu0 %v8680_v24 }
 0x75a   : > { %2931 = vmatmul.mubr.f32.gmra.mxu0 %v2795_v1 }
 0x75b   : > { %2936 = vmatprep.mubr.f32.mxu0 %v8680_v24 }
 0x75e   : > { %2937 = vmatmul.mubr.f32.gmra.mxu0 %v2796_v60 }
 0x75f   : > { %2942 = vmatprep.mubr.f32.mxu0 %v8680_v24 }
 0x762   : > { %2943 = vmatmul.mubr.f32.gmra.mxu0 %v2797_v18 }
 0x763   : > { %2948 = vmatprep.mubr.f32.mxu0 %v8680_v24 }
 0x766   : > { %2949 = vmatmul.mubr.f32.gmra.mxu0 %v2798_v39 }
 0x767   : > { %2954 = vmatprep.mubr.f32.mxu0 %v8680_v24 }
 0x76a   : > { %2955 = vmatmul.mubr.f32.gmra.mxu0 %v2799_v9 }
 0x7ee   : > { %v7340_v28 = vpop.f32.mrf.mxu0 }
 0x7ef   : > { %8681 = vst [vmem:[#allocation15_spill] sm:$0xff] %v7340_v28 }
 0x7f0   : > { %v7342_v32 = vpop.f32.mrf.mxu0 }
 0x7f1   : > { %8682 = vst [vmem:[#allocation48_spill] sm:$0xff] %v7342_v32 }
 0x7f2   : > { %v7344_v8 = vpop.f32.mrf.mxu0 }
 0x7f3   : > { %8683 = vst [vmem:[#allocation14_spill] sm:$0xff] %v7344_v8 }
 0x7f4   : > { %v7346_v33 = vpop.f32.mrf.mxu0 }
 0x7f5   : > { %8684 = vst [vmem:[#allocation13_spill] sm:$0xff] %v7346_v33 }
 0x7f6   : > { %v7348_v63 = vpop.f32.mrf.mxu0 }
 0x7f7   : > { %8685 = vst [vmem:[#allocation8_spill] sm:$0xff] %v7348_v63 }
 0x7f8   : > { %v7350_v40 = vpop.f32.mrf.mxu0 }
 0x7f9   : > { %8686 = vst [vmem:[#allocation7_spill] sm:$0xff] %v7350_v40 }
 0x7fa   : > { %v7352_v25 = vpop.f32.mrf.mxu0 }
 0x7fb   : > { %8687 = vst [vmem:[#allocation9_spill] sm:$0xff] %v7352_v25 }
 0x7fc   : > { %v7354_v21 = vpop.f32.mrf.mxu0 }
 0x7fd   : > { %8688 = vst [vmem:[#allocation10_spill] sm:$0xff] %v7354_v21 }
 0x7fe   : > { %v7356_v13 = vpop.f32.mrf.mxu0 }
 0x7ff   : > { %8689 = vst [vmem:[#allocation11_spill] sm:$0xff] %v7356_v13 }
 0x800   : > { %v7358_v0 = vpop.f32.mrf.mxu0 }
 0x801   : > { %8690 = vst [vmem:[#allocation12_spill] sm:$0xff] %v7358_v0 }
 0x802   : > { %v7360_v15 = vpop.f32.mrf.mxu0 }
 0x803   : > { %8691 = vst [vmem:[#allocation24_spill] sm:$0xff] %v7360_v15 }
 0x804   : > { %v7362_v2 = vpop.f32.mrf.mxu0 }
 0x805   : > { %8692 = vst [vmem:[#allocation31_spill] sm:$0xff] %v7362_v2  ;;  %v2976_v62 = vadd.f32 %v7362_v2, %v7360_v15 }
 0x806   : > { %v7366_v47 = vpop.f32.mrf.mxu0 }
 0x807   : > { %8693 = vst [vmem:[#allocation20_spill] sm:$0xff] %v7366_v47  ;;  %2977 = vadd.xlane.f32.xlu0 %v2976_v62  ;;  %v3021_v31 = vmul.f32 %v7366_v47, %v7366_v47 }
 0x808   : > { %v7368_v46 = vpop.f32.mrf.mxu0 }
 0x809   : > { %8694 = vst [vmem:[#allocation29_spill] sm:$0xff] %v7368_v46  ;;  %v2979_v42 = vadd.f32 %v7368_v46, %v7366_v47  ;;  %v3022_v61 = vmul.f32 %v7368_v46, %v7368_v46 }
 0x80a   : > { %v7374_v54 = vpop.f32.mrf.mxu0 }
 0x80b   : > { %8695 = vst [vmem:[#allocation16_spill] sm:$0xff] %v7374_v54  ;;  %2980 = vadd.xlane.f32.xlu1 %v2979_v42  ;;  %v3059_v34 = vadd.f32 %v3022_v61, %v3021_v31  ;;  %v3023_v1 = vmul.f32 %v7374_v54, %v7374_v54 }
 0x80c   : > { %v7378_v27 = vpop.f32.mrf.mxu0 }
 0x80d   : > { %8696 = vst [vmem:[#allocation17_spill] sm:$0xff] %v7378_v27  ;;  %v2982_v41 = vadd.f32 %v7378_v27, %v7374_v54  ;;  %v3024_v53 = vmul.f32 %v7378_v27, %v7378_v27 }
 0x80e   : > { %v7384_v48 = vpop.f32.mrf.mxu0 }
 0x80f   : > { %8697 = vst [vmem:[#allocation21_spill] sm:$0xff] %v7384_v48  ;;  %3060 = vadd.xlane.f32.xlu1 %v3059_v34  ;;  %2983 = vadd.xlane.f32.xlu0 %v2982_v41  ;;  %v3062_v9 = vadd.f32 %v3024_v53, %v3023_v1  ;;  %v3025_v45 = vmul.f32 %v7384_v48, %v7384_v48 }
 0x810   : > { %v7388_v60 = vpop.f32.mrf.mxu0 }
 0x811   : > { %8698 = vst [vmem:[#allocation18_spill] sm:$0xff] %v7388_v60  ;;  %v2985_v18 = vadd.f32 %v7388_v60, %v7384_v48  ;;  %v3026_v39 = vmul.f32 %v7388_v60, %v7388_v60 }
 0x812   : > { %v7394_v20 = vpop.f32.mrf.mxu0 }
 0x813   : > { %8699 = vst [vmem:[#allocation19_spill] sm:$0xff] %v7394_v20  ;;  %3063 = vadd.xlane.f32.xlu0 %v3062_v9  ;;  %2986 = vadd.xlane.f32.xlu1 %v2985_v18  ;;  %v3065_v56 = vadd.f32 %v3026_v39, %v3025_v45  ;;  %v3027_v17 = vmul.f32 %v7394_v20, %v7394_v20 }
 0x814   : > { %v7398_v19 = vpop.f32.mrf.mxu0 }
 0x815   : > { %8700 = vst [vmem:[#allocation22_spill] sm:$0xff] %v7398_v19  ;;  %v2988_v36 = vadd.f32 %v7398_v19, %v7394_v20  ;;  %v3028_v49 = vmul.f32 %v7398_v19, %v7398_v19 }
 0x816   : > { %v7404_v50 = vpop.f32.mrf.mxu0 }
 0x817   : > { %8701 = vst [vmem:[#allocation23_spill] sm:$0xff] %v7404_v50  ;;  %3066 = vadd.xlane.f32.xlu1 %v3065_v56  ;;  %2989 = vadd.xlane.f32.xlu0 %v2988_v36  ;;  %v3068_v7 = vadd.f32 %v3028_v49, %v3027_v17  ;;  %v3029_v10 = vmul.f32 %v7404_v50, %v7404_v50 }
 0x818   : > { %v7408_v23 = vpop.f32.mrf.mxu0  ;;  %v3020_v56 = vmul.f32 %v7362_v2, %v7362_v2 }
 0x819   : > { %8702 = vst [vmem:[#allocation25_spill] sm:$0xff] %v7408_v23  ;;  %v2991_v38 = vadd.f32 %v7408_v23, %v7404_v50  ;;  %v3030_v51 = vmul.f32 %v7408_v23, %v7408_v23 }
 0x81a   : > { %v7414_v29 = vpop.f32.mrf.mxu0 }
 0x81b   : > { %8703 = vst [vmem:[#allocation35_spill] sm:$0xff] %v7414_v29  ;;  %3069 = vadd.xlane.f32.xlu0 %v3068_v7  ;;  %2992 = vadd.xlane.f32.xlu1 %v2991_v38  ;;  %v3071_v12 = vadd.f32 %v3030_v51, %v3029_v10  ;;  %v3031_v58 = vmul.f32 %v7414_v29, %v7414_v29  ;;  %v7473_v7 = vld [vmem:[%s8340_s6 + $0x18] sm:$0xff] }
 0x81c   : > { %v7418_v5 = vpop.f32.mrf.mxu0  ;;  %v3019_v38 = vmul.f32 %v7360_v15, %v7360_v15  ;;  %8713 = vst [vmem:[#allocation6_spill] sm:$0xff] %v7473_v7 }
 0x81d   : > { %8704 = vst [vmem:[#allocation30_spill] sm:$0xff] %v7418_v5  ;;  %v2994_v35 = vadd.f32 %v7418_v5, %v7414_v29  ;;  %v3032_v37 = vmul.f32 %v7418_v5, %v7418_v5 }
 0x81e   : > { %v7424_v55 = vpop.f32.mrf.mxu0  ;;  %v3056_v10 = vadd.f32 %v3020_v56, %v3019_v38 }
 0x81f   : > { %8705 = vst [vmem:[#allocation33_spill] sm:$0xff] %v7424_v55  ;;  %3072 = vadd.xlane.f32.xlu1 %v3071_v12  ;;  %2995 = vadd.xlane.f32.xlu0 %v2994_v35  ;;  %v3074_v26 = vadd.f32 %v3032_v37, %v3031_v58  ;;  %v3033_v4 = vmul.f32 %v7424_v55, %v7424_v55  ;;  %v7478_v35 = vld [vmem:[%s8340_s6 + $0x10] sm:$0xff]  ;;  %v3108_v12 = vsel %vm754_vm0, %v7473_v7, 0.0 }
 0x820   : > { %v7428_v30 = vpop.f32.mrf.mxu0  ;;  %8714 = vst [vmem:[#allocation42_spill] sm:$0xff] %v7478_v35  ;;  %v2973_v37 = vadd.f32 %v7358_v0, %v7356_v13  ;;  %v2970_v58 = vadd.f32 %v7354_v21, %v7352_v25 }
 0x821   : > { %8706 = vst [vmem:[#allocation34_spill] sm:$0xff] %v7428_v30  ;;  %v2997_v3 = vadd.f32 %v7428_v30, %v7424_v55  ;;  %v3034_v11 = vmul.f32 %v7428_v30, %v7428_v30 }
 0x822   : > { %v7434_v22 = vpop.f32.mrf.mxu0 }
 0x823   : > { %8707 = vst [vmem:[#allocation36_spill] sm:$0xff] %v7434_v22  ;;  %3075 = vadd.xlane.f32.xlu0 %v3074_v26  ;;  %2998 = vadd.xlane.f32.xlu1 %v2997_v3  ;;  %v3077_v42 = vadd.f32 %v3034_v11, %v3033_v4  ;;  %v3035_v31 = vmul.f32 %v7434_v22, %v7434_v22  ;;  %v3107_v3 = vsel %vm754_vm0, %v7478_v35, 0.0  ;;  %v3130_v11 = vsel %vm773_vm1, %v3108_v12, 0.0 }
 0x824   : > { %v7438_v16 = vpop.f32.mrf.mxu0  ;;  %v3018_v26 = vmul.f32 %v7358_v0, %v7358_v0  ;;  %v3127_v4 = vsel %vm773_vm1, %v3107_v3, 0.0  ;;  %v2961_v3 = vadd.f32 %v7342_v32, %v7340_v28 }
 0x825   : > { %8708 = vst [vmem:[#allocation37_spill] sm:$0xff] %v7438_v16  ;;  %v3000_v52 = vadd.f32 %v7438_v16, %v7434_v22  ;;  %v3036_v62 = vmul.f32 %v7438_v16, %v7438_v16 }
 0x826   : > { %v7444_v61 = vpop.f32.mrf.mxu0 }
 0x827   : > { %8709 = vst [vmem:[#allocation32_spill] sm:$0xff] %v7444_v61  ;;  %3078 = vadd.xlane.f32.xlu1 %v3077_v42  ;;  %3001 = vadd.xlane.f32.xlu0 %v3000_v52  ;;  %v3080_v1 = vadd.f32 %v3036_v62, %v3035_v31  ;;  %v3037_v39 = vmul.f32 %v7444_v61, %v7444_v61 }
 0x828   : > { %v7448_v41 = vpop.f32.mrf.mxu0  ;;  %v3016_v52 = vmul.f32 %v7354_v21, %v7354_v21  ;;  %v3017_v62 = vmul.f32 %v7356_v13, %v7356_v13  ;;  %v3015_v42 = vmul.f32 %v7352_v25, %v7352_v25 }
 0x829   : > { %8710 = vst [vmem:[#allocation27_spill] sm:$0xff] %v7448_v41  ;;  %v3003_v53 = vadd.f32 %v7448_v41, %v7444_v61  ;;  %v3038_v34 = vmul.f32 %v7448_v41, %v7448_v41 }
 0x82a   : > { %v7454_v18 = vpop.f32.mrf.mxu0  ;;  %v3053_v31 = vadd.f32 %v3018_v26, %v3017_v62  ;;  %v3009_v26 = vmul.f32 %v7340_v28, %v7340_v28 }
 0x82b   : > { %8711 = vst [vmem:[#allocation28_spill] sm:$0xff] %v7454_v18  ;;  %v3039_v9 = vmul.f32 %v7454_v18, %v7454_v18  ;;  %3081 = vadd.xlane.f32.xlu0 %v3080_v1  ;;  %3004 = vadd.xlane.f32.xlu1 %v3003_v53  ;;  %v3083_v49 = vadd.f32 %v3038_v34, %v3037_v39  ;;  %v7503_v53 = vld [vmem:[%s8340_s6 + $0x8] sm:$0xff]  ;;  %v7508_v1 = vld [vmem:[%s8340_s6] sm:$0xff] }
 0x82c   : > { %v7460_v45 = vpop.f32.mrf.mxu0  ;;  %8715 = vst [vmem:[#allocation49_spill] sm:$0xff] %v7503_v53  ;;  %v3050_v34 = vadd.f32 %v3016_v52, %v3015_v42  ;;  %8716 = vst [vmem:[#allocation41_spill] sm:$0xff] %v7508_v1  ;;  %v2967_v39 = vadd.f32 %v7350_v40, %v7348_v63  ;;  %v7536_v52 = vpop.xlane.xlu0 %3167 }
 0x82d   : > { %8712 = vst [vmem:[#allocation26_spill] sm:$0xff] %v7460_v45  ;;  %v3040_v36 = vmul.f32 %v7460_v45, %v7460_v45  ;;  %v3006_v51 = vadd.f32 %v7460_v45, %v7454_v18  ;;  %8717 = vst [vmem:[#allocation44_spill] sm:$0xff] %v7536_v52  ;;  %v3312_v25 = vmul.f32 256.0, %v7536_v52  ;;  %v3344_v47 = vmul.f32 2.0, %v7536_v52 }
 0x82f   : > { %v3086_v17 = vadd.f32 %v3040_v36, %v3039_v9  ;;  %3084 = vadd.xlane.f32.xlu1 %v3083_v49  ;;  %v3106_v9 = vsel %vm754_vm0, %v7503_v53, 0.0  ;;  %v2964_v36 = vadd.f32 %v7346_v33, %v7344_v8  ;;  %v3105_v49 = vsel %vm754_vm0, %v7508_v1, 0.0 }
 0x830   : > { %v3124_v56 = vsel %vm773_vm1, %v3106_v9, 0.0  ;;  %v3121_v38 = vsel %vm773_vm1, %v3105_v49, 0.0  ;;  %v7538_v62 = vpop.xlane.xlu0 %3164  ;;  %v4837_v9 = vld [vmem:[%s8340_s6 + $0x78] sm:$0xff]  ;;  %v3183_v49 = vsel %vm822_vm4, %v7262_v44, 0.0 }
 0x831   : > { %3087 = vadd.xlane.f32.xlu0 %v3086_v17  ;;  %v3014_v17 = vmul.f32 %v7350_v40, %v7350_v40  ;;  %8718 = vst [vmem:[#allocation46_spill] sm:$0xff] %v7538_v62  ;;  %v3391_v46 = vmul.f32 %v7538_v62, %v7538_v62  ;;  %v3343_v21 = vmul.f32 2.0, %v7538_v62  ;;  %v3311_v5 = vmul.f32 256.0, %v7538_v62 }
 0x833   : > { %3007 = vadd.xlane.f32.xlu1 %v3006_v51  ;;  %v3012_v51 = vmul.f32 %v7346_v33, %v7346_v33  ;;  %v3407_v18 = vmul.f32 256.0, %v3391_v46 }
 0x834   : > { %v7540_v42 = vpop.xlane.xlu0 %3158 }
 0x835   : > { %3057 = vadd.xlane.f32.xlu0 %v3056_v10  ;;  %v3013_v10 = vmul.f32 %v7348_v63, %v7348_v63  ;;  %8719 = vst [vmem:[#allocation45_spill] sm:$0xff] %v7540_v42  ;;  %v3392_v63 = vmul.f32 %v7536_v52, %v7536_v52  ;;  %v3389_v20 = vmul.f32 %v7540_v42, %v7540_v42  ;;  %v3341_v50 = vmul.f32 2.0, %v7540_v42 }
 0x837   : > { %2974 = vadd.xlane.f32.xlu1 %v2973_v37  ;;  %v3011_v37 = vmul.f32 %v7344_v8, %v7344_v8  ;;  %v3047_v12 = vadd.f32 %v3014_v17, %v3013_v10  ;;  %v3248_v17 = vsel %vm889_vm5, %v4837_v9, 0.0  ;;  %v3408_v19 = vmul.f32 256.0, %v3392_v63 }
 0x838   : > { %v3405_v46 = vmul.f32 256.0, %v3389_v20 }
 0x839   : > { %2971 = vadd.xlane.f32.xlu0 %v2970_v58  ;;  %v3044_v58 = vadd.f32 %v3012_v51, %v3011_v37  ;;  %v3227_v51 = vsel %vm773_vm1, %v3183_v49, 0.0 }
 0x83b   : > { %3131 = vadd.xlane.f32.xlu1 %v3130_v11  ;;  %v3010_v11 = vmul.f32 %v7342_v32, %v7342_v32 }
 0x83d   : > { %3128 = vadd.xlane.f32.xlu0 %v3127_v4  ;;  %v3041_v4 = vadd.f32 %v3010_v11, %v3009_v26  ;;  %v3247_v11 = vsel %vm889_vm5, %v7262_v44, 0.0 }
 0x83f   : > { %3054 = vadd.xlane.f32.xlu1 %v3053_v31  ;;  %v7542_v31 = vpop.xlane.xlu1 %3161 }
 0x840   : > { %8720 = vst [vmem:[#allocation47_spill] sm:$0xff] %v7542_v31  ;;  %v3390_v15 = vmul.f32 %v7542_v31, %v7542_v31  ;;  %v3310_v54 = vmul.f32 256.0, %v7542_v31  ;;  %v3342_v60 = vmul.f32 2.0, %v7542_v31 }
 0x841   : > { %3051 = vadd.xlane.f32.xlu0 %v3050_v34  ;;  %v7544_v34 = vpop.xlane.xlu0 %3152 }
 0x842   : > { %v3406_v41 = vmul.f32 256.0, %v3390_v15  ;;  %v3309_v15 = vmul.f32 256.0, %v7540_v42  ;;  %v3307_v53 = vmul.f32 256.0, %v7544_v34 }
 0x843   : > { %2968 = vadd.xlane.f32.xlu1 %v2967_v39  ;;  %v7546_v39 = vpop.xlane.xlu1 %3155 }
 0x844   : > { %8721 = vst [vmem:[#allocation40_spill] sm:$0xff] %v7546_v39  ;;  %v3388_v27 = vmul.f32 %v7546_v39, %v7546_v39  ;;  %v7636_v55 = vmul.f32 256.0, %v7546_v39  ;;  %v3340_v45 = vmul.f32 2.0, %v7546_v39 }
 0x845   : > { %2965 = vadd.xlane.f32.xlu0 %v2964_v36  ;;  %v3184_v36 = vsel %vm822_vm4, %v4837_v9, 0.0  ;;  %v7563_v10 = vpop.xlane.xlu0 %3146 }
 0x846   : > { %v3404_v52 = vmul.f32 256.0, %v3388_v27 }
 0x847   : > { %3125 = vadd.xlane.f32.xlu1 %v3124_v56  ;;  %v3182_v56 = vsel %vm822_vm4, %v7280_v6, 0.0 }
 0x848   : > { %v3224_v37 = vsel %vm773_vm1, %v3182_v56, 0.0 }
 0x849   : > { %3122 = vadd.xlane.f32.xlu0 %v3121_v38  ;;  %v3230_v38 = vsel %vm773_vm1, %v3184_v36, 0.0  ;;  %v7577_v9 = vpop.xlane.xlu0 %3140  ;;  %v3180_v36 = vsel %vm822_vm4, %v7298_v43, 0.0 }
 0x84a   : > { %v3218_v56 = vsel %vm773_vm1, %v3180_v36, 0.0 }
 0x84b   : > { %3048 = vadd.xlane.f32.xlu1 %v3047_v12  ;;  %v3294_v12 = vsel %vm773_vm1, %v3248_v17, 0.0 }
 0x84d   : > { %3045 = vadd.xlane.f32.xlu0 %v3044_v58  ;;  %v7567_v58 = vpop.xlane.xlu1 %3149  ;;  %v7585_v17 = vpop.xlane.xlu0 %3134 }
 0x84e   : > { %8722 = vst [vmem:[#allocation43_spill] sm:$0xff] %v7567_v58  ;;  %v3386_v61 = vmul.f32 %v7567_v58, %v7567_v58  ;;  %v7642_v29 = vmul.f32 256.0, %v7567_v58 }
 0x84f   : > { %2962 = vadd.xlane.f32.xlu1 %v2961_v3  ;;  %v3181_v3 = vsel %vm822_vm4, %v7271_v57, 0.0 }
 0x850   : > { %v3221_v26 = vsel %vm773_vm1, %v3181_v3, 0.0 }
 0x851   : > { %3228 = vadd.xlane.f32.xlu0 %v3227_v51  ;;  %v7582_v49 = vpop.xlane.xlu1 %3143 }
 0x852   : > { %v7658_v20 = vmul.f32 256.0, %v7582_v49 }
 0x853   : > { %3042 = vadd.xlane.f32.xlu1 %v3041_v4  ;;  %v3291_v4 = vsel %vm773_vm1, %v3247_v11, 0.0 }
 0x855   : > { %3295 = vadd.xlane.f32.xlu0 %v3294_v12  ;;  %v7587_v44 = vpop.xlane.xlu1 %3137 }
 0x856   : > { %v7655_v7 = vmul.f32 256.0, %v7587_v44 }
 0x857   : > { %3231 = vadd.xlane.f32.xlu1 %v3230_v38 }
 0x859   : > { %3292 = vadd.xlane.f32.xlu0 %v3291_v4 }
 0x85b   : > { %3225 = vadd.xlane.f32.xlu1 %v3224_v37 }
 0x85f   : > { %3222 = vadd.xlane.f32.xlu1 %v3221_v26 }
 0x863   : > { %3219 = vadd.xlane.f32.xlu1 %v3218_v56 }
 0x890   : > { %v7589_v38 = vpop.xlane.xlu0 %2977 }
 0x894   : > { %v7591_v51 = vpop.xlane.xlu1 %2980 }
 0x898   : > { %v7593_v37 = vpop.xlane.xlu1 %3060  ;;  %v7595_v12 = vpop.xlane.xlu0 %2983 }
 0x89c   : > { %v7597_v43 = vpop.xlane.xlu1 %2986  ;;  %v7599_v3 = vpop.xlane.xlu0 %3063 }
 0x8a0   : > { %v7601_v11 = vpop.xlane.xlu1 %3066  ;;  %v7603_v26 = vpop.xlane.xlu0 %2989 }
 0x8a4   : > { %v7605_v4 = vpop.xlane.xlu1 %2992  ;;  %v7607_v36 = vpop.xlane.xlu0 %3069 }
 0x8a8   : > { %v7609_v56 = vpop.xlane.xlu1 %3072  ;;  %v7611_v28 = vpop.xlane.xlu0 %2995 }
 0x8ac   : > { %v7613_v32 = vpop.xlane.xlu1 %2998  ;;  %v3076_v33 = vpop.xlane.xlu0 %3075 }
 0x8ad   : > { %v3357_v39 = vmul.f32 %v3341_v50, %v7613_v32 }
 0x8b0   : > { %v3079_v8 = vpop.xlane.xlu1 %3078  ;;  %v7615_v0 = vpop.xlane.xlu0 %3001 }
 0x8b1   : > { %v3358_v63 = vmul.f32 %v3342_v60, %v7615_v0  ;;  %v3402_v60 = vmul.f32 256.0, %v3386_v61 }
 0x8b4   : > { %v3005_v13 = vpop.xlane.xlu1 %3004  ;;  %v3082_v40 = vpop.xlane.xlu0 %3081 }
 0x8b5   : > { %v3359_v30 = vmul.f32 %v3343_v21, %v3005_v13  ;;  %v3338_v21 = vmul.f32 2.0, %v7567_v58  ;;  %v3374_v31 = vadd.f32 %v3358_v63, %v3082_v40  ;;  %v3373_v58 = vadd.f32 %v3357_v39, %v3079_v8 }
 0x8b6   : > { %v3327_v61 = vadd.f32 %v3311_v5, %v3005_v13  ;;  %v3326_v13 = vadd.f32 %v3310_v54, %v7615_v0 }
 0x8b8   : > { %v3085_v2 = vpop.xlane.xlu1 %3084 }
 0x8b9   : > { %v3375_v16 = vadd.f32 %v3359_v30, %v3085_v2  ;;  %v3339_v2 = vmul.f32 2.0, %v7544_v34 }
 0x8ba   : > { %v3088_v48 = vpop.xlane.xlu0 %3087 }
 0x8bb   : > { %v3423_v35 = vadd.f32 %v3407_v18, %v3375_v16  ;;  %v3355_v40 = vmul.f32 %v3339_v2, %v7605_v4  ;;  %v3354_v16 = vmul.f32 %v3338_v21, %v7603_v26  ;;  %v3334_v2 = vmul.f32 2.0, %v7587_v44 }
 0x8bc   : > { %v3008_v23 = vpop.xlane.xlu1 %3007 }
 0x8bd   : > { %v3360_v22 = vmul.f32 %v3344_v47, %v3008_v23  ;;  %v3356_v47 = vmul.f32 %v3340_v45, %v7611_v28  ;;  %v3328_v42 = vadd.f32 %v3312_v25, %v3008_v23  ;;  %v3422_v45 = vadd.f32 %v3406_v41, %v3374_v31 }
 0x8be   : > { %v7646_v62 = vpop.xlane.xlu0 %3057  ;;  %v3336_v25 = vmul.f32 2.0, %v7582_v49  ;;  %v3384_v23 = vmul.f32 %v7582_v49, %v7582_v49  ;;  %v3439_v5 = vsel %vm754_vm0, %v3327_v61, %v3423_v35  ;;  %v3335_v41 = vmul.f32 2.0, %v7577_v9 }
 0x8bf   : > { %v3376_v1 = vadd.f32 %v3360_v22, %v3088_v48  ;;  %v3387_v48 = vmul.f32 %v7544_v34, %v7544_v34  ;;  %v3372_v22 = vadd.f32 %v3356_v47, %v3076_v33  ;;  %v3421_v33 = vadd.f32 %v3405_v46, %v3373_v58 }
 0x8c0   : > { %v7652_v30 = vpop.xlane.xlu1 %2974  ;;  %v3385_v31 = vmul.f32 %v7563_v10, %v7563_v10  ;;  %v3325_v58 = vadd.f32 %v3309_v15, %v7613_v32  ;;  %v3438_v54 = vsel %vm754_vm0, %v3326_v13, %v3422_v45  ;;  %v3303_v35 = vmul.f32 256.0, %v7577_v9 }
 0x8c1   : > { %v3424_v27 = vadd.f32 %v3408_v19, %v3376_v1  ;;  %v3337_v19 = vmul.f32 2.0, %v7563_v10  ;;  %v3371_v1 = vadd.f32 %v3355_v40, %v7609_v56  ;;  %v3403_v39 = vmul.f32 256.0, %v3387_v48 }
 0x8c2   : > { %v7663_v50 = vpop.xlane.xlu0 %2971  ;;  %v3370_v56 = vadd.f32 %v3354_v16, %v7607_v36  ;;  %v3420_v0 = vadd.f32 %v3404_v52, %v3372_v22  ;;  %v3352_v21 = vmul.f32 %v3336_v25, %v7595_v12  ;;  %v3305_v46 = vmul.f32 256.0, %v7563_v10 }
 0x8c3   : > { %v3440_v8 = vsel %vm754_vm0, %v3328_v42, %v3424_v27  ;;  %v3353_v42 = vmul.f32 %v3337_v19, %v7597_v43  ;;  %v3419_v36 = vadd.f32 %v3403_v39, %v3371_v1  ;;  %v3324_v32 = vadd.f32 %v7636_v55, %v7611_v28 }
 0x8c4   : > { %v7672_v18 = vpop.xlane.xlu1 %3131  ;;  %4407 = vmatprep.subr.mxu1 %v3440_v8  ;;  %v3437_v52 = vsel %vm754_vm0, %v3325_v58, %v3421_v33  ;;  %v3351_v15 = vmul.f32 %v3335_v41, %v7591_v51  ;;  %v3383_v40 = vmul.f32 %v7577_v9, %v7577_v9  ;;  %v3400_v48 = vmul.f32 256.0, %v3384_v23 }
 0x8c5   : > { %4408 = vmatpush3.msra.mxu1 %v3440_v8  ;;  %v3369_v27 = vadd.f32 %v3353_v42, %v7601_v11  ;;  %v3401_v22 = vmul.f32 256.0, %v3385_v31  ;;  %v3368_v45 = vadd.f32 %v3352_v21, %v7599_v3  ;;  %v3323_v11 = vadd.f32 %v3307_v53, %v7605_v4 }
 0x8c6   : > { %4409 = vmatprep.subr.mxu1 %v3439_v5  ;;  %v7682_v63 = vpop.xlane.xlu0 %3128  ;;  %v3418_v8 = vadd.f32 %v3402_v60, %v3370_v56  ;;  %v3436_v28 = vsel %vm754_vm0, %v3324_v32, %v3420_v0  ;;  %v3367_v55 = vadd.f32 %v3351_v15, %v7593_v37  ;;  %v3350_v25 = vmul.f32 %v3334_v2, %v7589_v38 }
 0x8c7   : > { %4410 = vmatpush3.msra.mxu1 %v3439_v5  ;;  %v3382_v19 = vmul.f32 %v7587_v44, %v7587_v44  ;;  %v3333_v23 = vmul.f32 2.0, %v7585_v17  ;;  %v3417_v3 = vadd.f32 %v3401_v22, %v3369_v27  ;;  %v3322_v53 = vadd.f32 %v7642_v29, %v7603_v26 }
 0x8c8   : > { %v3055_v47 = vpop.xlane.xlu1 %3054  ;;  %4411 = vmatprep.subr.mxu1 %v3438_v54  ;;  %v3332_v4 = vmul.f32 2.0, %v7672_v18  ;;  %v3435_v37 = vsel %vm754_vm0, %v3323_v11, %v3419_v36  ;;  %v3399_v60 = vmul.f32 256.0, %v3383_v40  ;;  %v3366_v1 = vadd.f32 %v3350_v25, %v7646_v62 }
 0x8c9   : > { %4412 = vmatpush3.msra.mxu1 %v3438_v54  ;;  %v3349_v33 = vmul.f32 %v3333_v23, %v7652_v30  ;;  %v3381_v13 = vmul.f32 %v7585_v17, %v7585_v17  ;;  %v3321_v41 = vadd.f32 %v3305_v46, %v7597_v43  ;;  %v3416_v29 = vadd.f32 %v3400_v48, %v3368_v45 }
 0x8ca   : > { %4413 = vmatprep.subr.mxu1 %v3437_v52  ;;  %v3052_v61 = vpop.xlane.xlu0 %3051  ;;  %v3331_v26 = vmul.f32 2.0, %v7682_v63  ;;  %v3434_v42 = vsel %vm754_vm0, %v3322_v53, %v3418_v8  ;;  %v3415_v31 = vadd.f32 %v3399_v60, %v3367_v55  ;;  %v3320_v62 = vadd.f32 %v7658_v20, %v7595_v12 }
 0x8cb   : > { %4414 = vmatpush3.msra.mxu1 %v3437_v52  ;;  %v3398_v39 = vmul.f32 256.0, %v3382_v19  ;;  %v3365_v56 = vadd.f32 %v3349_v33, %v3055_v47  ;;  %v3348_v0 = vmul.f32 %v3332_v4, %v7663_v50  ;;  %v3380_v43 = vmul.f32 %v7672_v18, %v7672_v18 }
 0x8cc   : > { %v7709_v16 = vpop.xlane.xlu1 %2968  ;;  %4415 = vmatprep.subr.mxu1 %v3436_v28  ;;  %v3433_v54 = vsel %vm754_vm0, %v3321_v41, %v3417_v3  ;;  %v3319_v46 = vadd.f32 %v3303_v35, %v7591_v51  ;;  %v3301_v12 = vmul.f32 256.0, %v7585_v17  ;;  %v3397_v20 = vmul.f32 256.0, %v3381_v13 }
 0x8cd   : > { %4416 = vmatpush3.msra.mxu1 %v3436_v28  ;;  %v3414_v2 = vadd.f32 %v3398_v39, %v3366_v1  ;;  %v3364_v27 = vadd.f32 %v3348_v0, %v3052_v61  ;;  %v3347_v36 = vmul.f32 %v3331_v26, %v7709_v16  ;;  %v3379_v32 = vmul.f32 %v7682_v63, %v7682_v63 }
 0x8ce   : > { %4417 = vmatprep.subr.mxu1 %v3435_v37  ;;  %v7720_v5 = vpop.xlane.xlu0 %2965  ;;  %v3432_v52 = vsel %vm754_vm0, %v3320_v62, %v3416_v29  ;;  %v3318_v51 = vadd.f32 %v7655_v7, %v7589_v38  ;;  %v3300_v35 = vmul.f32 256.0, %v7672_v18  ;;  %v3413_v15 = vadd.f32 %v3397_v20, %v3365_v56  ;;  %v4844_v20 = vld [vmem:[%s8343_s9 + $0x38] sm:$0xff] }
 0x8cf   : > { %4418 = vmatpush3.msra.mxu1 %v3435_v37  ;;  %v3431_v48 = vsel %vm754_vm0, %v3319_v46, %v3415_v31  ;;  %v3396_v22 = vmul.f32 256.0, %v3380_v43  ;;  %v3317_v8 = vadd.f32 %v3301_v12, %v7652_v30  ;;  %v3299_v7 = vmul.f32 256.0, %v7682_v63  ;;  %v4841_v46 = vld [vmem:[%s8343_s9 + $0x20] sm:$0xff]  ;;  %v4843_v12 = vld [vmem:[%s8343_s9 + $0x30] sm:$0xff] }
 0x8d0   : > { %v7728_v58 = vpop.xlane.xlu1 %3125  ;;  %4419 = vmatprep.subr.mxu1 %v3434_v42  ;;  %v3430_v28 = vsel %vm754_vm0, %v3318_v51, %v3414_v2  ;;  %v3395_v25 = vmul.f32 256.0, %v3379_v32  ;;  %v3316_v30 = vadd.f32 %v3300_v35, %v7663_v50  ;;  %v4842_v2 = vld [vmem:[%s8343_s9 + $0x28] sm:$0xff]  ;;  %v4847_v32 = vld [vmem:[%s8343_s9 + $0x50] sm:$0xff]  ;;  %v4849_v51 = vld [vmem:[%s8343_s9 + $0x60] sm:$0xff] }
 0x8d1   : > { %4420 = vmatpush3.msra.mxu1 %v3434_v42  ;;  %v3330_v21 = vmul.f32 2.0, %v7728_v58  ;;  %v3378_v11 = vmul.f32 %v7728_v58, %v7728_v58  ;;  %v3412_v55 = vadd.f32 %v3396_v22, %v3364_v27  ;;  %v3429_v53 = vsel %vm754_vm0, %v3317_v8, %v3413_v15  ;;  %v4845_v27 = vld [vmem:[%s8343_s9 + $0x40] sm:$0xff]  ;;  %v4850_v35 = vld [vmem:[%s8343_s9 + $0x68] sm:$0xff]  ;;  %v4851_v15 = vld [vmem:[%s8343_s9 + $0x70] sm:$0xff] }
 0x8d2   : > { %4421 = vmatprep.subr.mxu1 %v3433_v54  ;;  %v7738_v47 = vpop.xlane.xlu0 %3122  ;;  %v3298_v4 = vmul.f32 256.0, %v7728_v58  ;;  %v3315_v33 = vadd.f32 %v3299_v7, %v7709_v16  ;;  %v3179_v22 = vsel %vm822_vm4, %v7289_v59, 0.0 }
 0x8d3   : > { %8723 = vst [vmem:[#allocation38_spill] sm:$0xff] %v7738_v47  ;;  %4422 = vmatpush3.msra.mxu1 %v3433_v54  ;;  %v3346_v45 = vmul.f32 %v3330_v21, %v7720_v5  ;;  %v3329_v23 = vmul.f32 2.0, %v7738_v47  ;;  %v3394_v60 = vmul.f32 256.0, %v3378_v11  ;;  %v3377_v1 = vmul.f32 %v7738_v47, %v7738_v47  ;;  %v4838_v54 = vld [vmem:[%s8343_s9 + $0x8] sm:$0xff]  ;;  %v4840_v21 = vld [vmem:[%s8343_s9 + $0x18] sm:$0xff] }
 0x8d4   : > { %v3049_v40 = vpop.xlane.xlu1 %3048  ;;  %4423 = vmatprep.subr.mxu1 %v3432_v52  ;;  %v3297_v41 = vmul.f32 256.0, %v7738_v47  ;;  %v3428_v26 = vsel %vm754_vm0, %v3316_v30, %v3412_v55  ;;  %v3314_v39 = vadd.f32 %v3298_v4, %v7720_v5  ;;  %v4839_v5 = vld [vmem:[%s8343_s9 + $0x10] sm:$0xff]  ;;  %v3245_v11 = vsel %vm889_vm5, %v7271_v57, 0.0 }
 0x8d5   : > { %v3363_v61 = vadd.f32 %v3347_v36, %v3049_v40  ;;  %4424 = vmatpush3.msra.mxu1 %v3432_v52  ;;  %v3393_v31 = vmul.f32 256.0, %v3377_v1  ;;  %v4846_v36 = vld [vmem:[%s8343_s9 + $0x48] sm:$0xff]  ;;  %v4848_v52 = vld [vmem:[%s8343_s9 + $0x58] sm:$0xff] }
 0x8d6   : > { %4425 = vmatprep.subr.mxu1 %v3431_v48  ;;  %v3046_v38 = vpop.xlane.xlu0 %3045  ;;  %v4852_v40 = vld [vmem:[%s8343_s9 + $0x78] sm:$0xff] }
 0x8d7   : > { %v3362_v19 = vadd.f32 %v3346_v45, %v3046_v38  ;;  %4426 = vmatpush3.msra.mxu1 %v3431_v48  ;;  %v3411_v37 = vadd.f32 %v3395_v25, %v3363_v61  ;;  %v3246_v48 = vsel %vm889_vm5, %v7280_v6, 0.0  ;;  %v3215_v45 = vsel %vm773_vm1, %v3179_v22, 0.0 }
 0x8d8   : > { %v2963_v3 = vpop.xlane.xlu1 %2962  ;;  %4427 = vmatprep.subr.mxu1 %v3430_v28  ;;  %v3288_v61 = vsel %vm773_vm1, %v3246_v48, 0.0  ;;  %3216 = vadd.xlane.f32.xlu1 %v3215_v45 }
 0x8d9   : > { %4428 = vmatpush3.msra.mxu1 %v3430_v28  ;;  %v3410_v13 = vadd.f32 %v3394_v60, %v3362_v19  ;;  %v3345_v29 = vmul.f32 %v3329_v23, %v2963_v3  ;;  %v3427_v62 = vsel %vm754_vm0, %v3315_v33, %v3411_v37  ;;  %v3313_v16 = vadd.f32 %v3297_v41, %v2963_v3 }
 0x8da   : > { %4429 = vmatprep.subr.mxu1 %v3429_v53  ;;  %3289 = vadd.xlane.f32.xlu0 %v3288_v61 }
 0x8db   : > { %4430 = vmatpush3.msra.mxu1 %v3429_v53  ;;  %v3426_v0 = vsel %vm754_vm0, %v3314_v39, %v3410_v13 }
 0x8dc   : > { %v3043_v50 = vpop.xlane.xlu1 %3042  ;;  %4431 = vmatprep.subr.mxu1 %v3428_v26 }
 0x8dd   : > { %v3361_v42 = vadd.f32 %v3345_v29, %v3043_v50  ;;  %4432 = vmatpush3.msra.mxu1 %v3428_v26 }
 0x8de   : > { %4433 = vmatprep.subr.mxu1 %v3427_v62 }
 0x8df   : > { %v3409_v56 = vadd.f32 %v3393_v31, %v3361_v42  ;;  %4434 = vmatpush3.msra.mxu1 %v3427_v62 }
 0x8e0   : > { %4435 = vmatprep.subr.mxu1 %v3426_v0 }
 0x8e1   : > { %4436 = vmatpush3.msra.mxu1 %v3426_v0  ;;  %v3425_v43 = vsel %vm754_vm0, %v3313_v16, %v3409_v56 }
 0x8e2   : > { %4437 = vmatprep.subr.mxu1 %v3425_v43 }
 0x8e3   : > { %4438 = vmatpush3.msra.mxu1 %v3425_v43 }
 0x8e4   : > { %4440 = vmatmul.mubr.f32.vlgmr.msra.gmra.mxu1 %v4838_v54 }
 0x8e5   : > { %4442 = vmatprep.mubr.f32.mxu1 %v4839_v5 }
 0x8e8   : > { %4443 = vmatmul.mubr.f32.gmra.mxu1 %v4840_v21 }
 0x8e9   : > { %4445 = vmatprep.mubr.f32.mxu1 %v4841_v46 }
 0x8ec   : > { %4446 = vmatmul.mubr.f32.gmra.mxu1 %v4842_v2 }
 0x8ed   : > { %4448 = vmatprep.mubr.f32.mxu1 %v4843_v12 }
 0x8f0   : > { %4449 = vmatmul.mubr.f32.gmra.mxu1 %v4844_v20 }
 0x8f1   : > { %4451 = vmatprep.mubr.f32.mxu1 %v4845_v27 }
 0x8f4   : > { %4452 = vmatmul.mubr.f32.gmra.mxu1 %v4846_v36 }
 0x8f5   : > { %4454 = vmatprep.mubr.f32.mxu1 %v4847_v32 }
 0x8f8   : > { %4455 = vmatmul.mubr.f32.gmra.mxu1 %v4848_v52 }
 0x8f9   : > { %4457 = vmatprep.mubr.f32.mxu1 %v4849_v51 }
 0x8fc   : > { %4458 = vmatmul.mubr.f32.gmra.mxu1 %v4850_v35 }
 0x8fd   : > { %4460 = vmatprep.mubr.f32.mxu1 %v4851_v15 }
 0x900   : > { %4461 = vmatmul.mubr.f32.gmra.mxu1 %v4852_v40 }
 0x901   : > { %4019 = vmatprep.mubr.f32.mxu1 %v8680_v24  ;;  %v3285_v24 = vsel %vm773_vm1, %v3245_v11, 0.0 }
 0x902   : > { %3286 = vadd.xlane.f32.xlu0 %v3285_v24 }
 0x9a4   : > { %v4441_v8 = vpop.f32.mrf.mxu1 }
 0x9a5   : > { %v7833_v7 = vmul.f32 0.0009765625, %v4441_v8 }
 0x9a6   : > { %v7835_v6 = vpop.f32.mrf.mxu1 }
 0x9a7   : > { %v3603_v59 = vsel %vm754_vm0, %v7833_v7, 0.0 }
 0x9a8   : > { %v4444_v38 = vpop.f32.mrf.mxu1  ;;  %v3621_v28 = vsel %vm1277_vm6, %v3603_v59, 0.0 }
 0x9a9   : > { %v3589_v55 = vmul.f32 0.0009765625, %v4444_v38  ;;  %3622 = vadd.xlane.f32.xlu1 %v3621_v28 }
 0x9aa   : > { %v3517_v25 = vpop.f32.mrf.mxu1 }
 0x9ab   : > { %v3605_v57 = vsel %vm754_vm0, %v3589_v55, 0.0  ;;  %v3669_v19 = vsel %vm822_vm4, %v3589_v55, 0.0  ;;  %v3588_v23 = vmul.f32 0.0009765625, %v3517_v25 }
 0x9ac   : > { %v3691_v3 = vsel %vm1277_vm6, %v3669_v19, 0.0  ;;  %v3627_v53 = vsel %vm1277_vm6, %v3605_v57, 0.0  ;;  %v4447_v30 = vpop.f32.mrf.mxu1 }
 0x9ad   : > { %v3604_v4 = vsel %vm754_vm0, %v3588_v23, 0.0  ;;  %v3668_v37 = vsel %vm822_vm4, %v3588_v23, 0.0  ;;  %3692 = vadd.xlane.f32.xlu0 %v3691_v3  ;;  %3628 = vadd.xlane.f32.xlu1 %v3627_v53  ;;  %v3591_v60 = vmul.f32 0.0009765625, %v4447_v30 }
 0x9ae   : > { %v3527_v1 = vpop.f32.mrf.mxu1  ;;  %v3688_v41 = vsel %vm1277_vm6, %v3668_v37, 0.0  ;;  %v3624_v29 = vsel %vm1277_vm6, %v3604_v4, 0.0 }
 0x9af   : > { %v3607_v33 = vsel %vm754_vm0, %v3591_v60, 0.0  ;;  %v3590_v13 = vmul.f32 0.0009765625, %v3527_v1  ;;  %v3671_v0 = vsel %vm822_vm4, %v3591_v60, 0.0 }
 0x9b0   : > { %v4450_v26 = vpop.f32.mrf.mxu1  ;;  %v3633_v31 = vsel %vm1277_vm6, %v3607_v33, 0.0  ;;  %v3697_v5 = vsel %vm1277_vm6, %v3671_v0, 0.0 }
 0x9b1   : > { %v3606_v50 = vsel %vm754_vm0, %v3590_v13, 0.0  ;;  %3689 = vadd.xlane.f32.xlu0 %v3688_v41  ;;  %3625 = vadd.xlane.f32.xlu1 %v3624_v29  ;;  %v3593_v42 = vmul.f32 0.0009765625, %v4450_v26  ;;  %v3670_v21 = vsel %vm822_vm4, %v3590_v13, 0.0 }
 0x9b2   : > { %v3630_v62 = vsel %vm1277_vm6, %v3606_v50, 0.0  ;;  %v3537_v39 = vpop.f32.mrf.mxu1  ;;  %v3694_v20 = vsel %vm1277_vm6, %v3670_v21, 0.0 }
 0x9b3   : > { %v3609_v16 = vsel %vm754_vm0, %v3593_v42, 0.0  ;;  %v3592_v56 = vmul.f32 0.0009765625, %v3537_v39  ;;  %v3673_v27 = vsel %vm822_vm4, %v3593_v42, 0.0 }
 0x9b4   : > { %v3639_v43 = vsel %vm1277_vm6, %v3609_v16, 0.0  ;;  %v4453_v2 = vpop.f32.mrf.mxu1  ;;  %v3703_v35 = vsel %vm1277_vm6, %v3673_v27, 0.0 }
 0x9b5   : > { %3634 = vadd.xlane.f32.xlu0 %v3633_v31  ;;  %3631 = vadd.xlane.f32.xlu1 %v3630_v62  ;;  %v3608_v54 = vsel %vm754_vm0, %v3592_v56, 0.0  ;;  %v3595_v12 = vmul.f32 0.0009765625, %v4453_v2  ;;  %v3672_v36 = vsel %vm822_vm4, %v3592_v56, 0.0 }
 0x9b6   : > { %v3636_v46 = vsel %vm1277_vm6, %v3608_v54, 0.0  ;;  %v3547_v32 = vpop.f32.mrf.mxu1  ;;  %v3700_v15 = vsel %vm1277_vm6, %v3672_v36, 0.0  ;;  %v3586_v54 = vmul.f32 0.0009765625, %v7835_v6 }
 0x9b7   : > { %v3611_v52 = vsel %vm754_vm0, %v3595_v12, 0.0  ;;  %v3675_v51 = vsel %vm822_vm4, %v3595_v12, 0.0  ;;  %v3594_v48 = vmul.f32 0.0009765625, %v3547_v32  ;;  %v4853_v12 = vld [vmem:[%s8340_s6 + $0x48] sm:$0xff] }
 0x9b8   : > { %v4456_v40 = vpop.f32.mrf.mxu1  ;;  %v3709_v22 = vsel %vm1277_vm6, %v3675_v51, 0.0  ;;  %v3645_v61 = vsel %vm1277_vm6, %v3611_v52, 0.0  ;;  %v3178_v6 = vsel %vm822_vm4, %v4853_v12, 0.0  ;;  %v3667_v51 = vsel %vm822_vm4, %v7833_v7, 0.0 }
 0x9b9   : > { %3698 = vadd.xlane.f32.xlu0 %v3697_v5  ;;  %3640 = vadd.xlane.f32.xlu1 %v3639_v43  ;;  %v3597_v45 = vmul.f32 0.0009765625, %v4456_v40  ;;  %v3610_v24 = vsel %vm754_vm0, %v3594_v48, 0.0  ;;  %v3674_v8 = vsel %vm822_vm4, %v3594_v48, 0.0  ;;  %v3212_v32 = vsel %vm773_vm1, %v3178_v6, 0.0  ;;  %v4855_v48 = vld [vmem:[%s8340_s6 + $0x50] sm:$0xff] }
 0x9ba   : > { %v3557_v11 = vpop.f32.mrf.mxu1  ;;  %v3706_v55 = vsel %vm1277_vm6, %v3674_v8, 0.0  ;;  %v3642_v25 = vsel %vm1277_vm6, %v3610_v24, 0.0  ;;  %v3685_v7 = vsel %vm1277_vm6, %v3667_v51, 0.0  ;;  %v4856_v24 = vld [vmem:[%s8340_s6 + $0x40] sm:$0xff] }
 0x9bb   : > { %v3613_v38 = vsel %vm754_vm0, %v3597_v45, 0.0  ;;  %v3677_v28 = vsel %vm822_vm4, %v3597_v45, 0.0  ;;  %v3596_v57 = vmul.f32 0.0009765625, %v3557_v11  ;;  %v3177_v8 = vsel %vm822_vm4, %v4856_v24, 0.0 }
 0x9bc   : > { %v4459_v59 = vpop.f32.mrf.mxu1  ;;  %v3715_v19 = vsel %vm1277_vm6, %v3677_v28, 0.0  ;;  %v3651_v23 = vsel %vm1277_vm6, %v3613_v38, 0.0  ;;  %v3209_v38 = vsel %vm773_vm1, %v3177_v8, 0.0 }
 0x9bd   : > { %3695 = vadd.xlane.f32.xlu0 %v3694_v20  ;;  %3637 = vadd.xlane.f32.xlu1 %v3636_v46  ;;  %v3599_v53 = vmul.f32 0.0009765625, %v4459_v59  ;;  %v3612_v4 = vsel %vm754_vm0, %v3596_v57, 0.0  ;;  %v3676_v37 = vsel %vm822_vm4, %v3596_v57, 0.0  ;;  %v3602_v46 = vsel %vm754_vm0, %v3586_v54, 0.0 }
 0x9be   : > { %v3567_v3 = vpop.f32.mrf.mxu1  ;;  %v3712_v33 = vsel %vm1277_vm6, %v3676_v37, 0.0  ;;  %v3648_v13 = vsel %vm1277_vm6, %v3612_v4, 0.0  ;;  %v3618_v27 = vsel %vm1277_vm6, %v3602_v46, 0.0  ;;  %v3242_v59 = vsel %vm889_vm5, %v4853_v12, 0.0 }
 0x9bf   : > { %v3615_v60 = vsel %vm754_vm0, %v3599_v53, 0.0  ;;  %v3679_v1 = vsel %vm822_vm4, %v3599_v53, 0.0  ;;  %v3598_v29 = vmul.f32 0.0009765625, %v3567_v3  ;;  %v3276_v28 = vsel %vm773_vm1, %v3242_v59, 0.0  ;;  %v4858_v3 = vld [vmem:[%s8340_s6 + $0x30] sm:$0xff] }
 0x9c0   : > { %v4462_v30 = vpop.f32.mrf.mxu1  ;;  %v3721_v26 = vsel %vm1277_vm6, %v3679_v1, 0.0  ;;  %v3657_v50 = vsel %vm1277_vm6, %v3615_v60, 0.0  ;;  %v3241_v57 = vsel %vm889_vm5, %v4856_v24, 0.0  ;;  %v3175_v53 = vsel %vm822_vm4, %v4858_v3, 0.0  ;;  %v4859_v60 = vld [vmem:[%s8340_s6 + $0x28] sm:$0xff] }
 0x9c1   : > { %3704 = vadd.xlane.f32.xlu0 %v3703_v35  ;;  %3701 = vadd.xlane.f32.xlu1 %v3700_v15  ;;  %v3601_v42 = vmul.f32 0.0009765625, %v4462_v30  ;;  %v3614_v62 = vsel %vm754_vm0, %v3598_v29, 0.0  ;;  %v3678_v39 = vsel %vm822_vm4, %v3598_v29, 0.0  ;;  %v3666_v35 = vsel %vm822_vm4, %v3586_v54, 0.0  ;;  %v4854_v15 = vld [vmem:[%s8340_s6 + $0x58] sm:$0xff]  ;;  %v4860_v29 = vld [vmem:[%s8340_s6 + $0x20] sm:$0xff] }
 0x9c2   : > { %v3577_v41 = vpop.f32.mrf.mxu1  ;;  %v3718_v0 = vsel %vm1277_vm6, %v3678_v39, 0.0  ;;  %v3654_v43 = vsel %vm1277_vm6, %v3614_v62, 0.0  ;;  %v3244_v40 = vsel %vm889_vm5, %v4854_v15, 0.0  ;;  %v3203_v4 = vsel %vm773_vm1, %v3175_v53, 0.0  ;;  %v8724_v62 = vld [vmem:[#allocation6_spill] sm:$0xff] }
 0x9c3   : > { %v3600_v31 = vmul.f32 0.0009765625, %v3577_v41  ;;  %v3617_v16 = vsel %vm754_vm0, %v3601_v42, 0.0  ;;  %v3681_v2 = vsel %vm822_vm4, %v3601_v42, 0.0  ;;  %v3282_v45 = vsel %vm773_vm1, %v3244_v40, 0.0 }
 0x9c4   : > { %v3663_v5 = vsel %vm1277_vm6, %v3617_v16, 0.0  ;;  %v3727_v20 = vsel %vm1277_vm6, %v3681_v2, 0.0  ;;  %v3174_v1 = vsel %vm822_vm4, %v4859_v60, 0.0  ;;  %v3172_v39 = vsel %vm822_vm4, %v8724_v62, 0.0  ;;  %v8726_v2 = vld [vmem:[#allocation49_spill] sm:$0xff] }
 0x9c5   : > { %3710 = vadd.xlane.f32.xlu0 %v3709_v22  ;;  %3646 = vadd.xlane.f32.xlu1 %v3645_v61  ;;  %v3616_v56 = vsel %vm754_vm0, %v3600_v31, 0.0  ;;  %v3680_v36 = vsel %vm822_vm4, %v3600_v31, 0.0  ;;  %v3243_v22 = vsel %vm889_vm5, %v4855_v48, 0.0  ;;  %v3682_v61 = vsel %vm1277_vm6, %v3666_v35, 0.0  ;;  %v8034_v48 = vpop.xlane.xlu1 %3231 }
 0x9c6   : > { %v3660_v21 = vsel %vm1277_vm6, %v3616_v56, 0.0  ;;  %v3724_v52 = vsel %vm1277_vm6, %v3680_v36, 0.0  ;;  %v3279_v11 = vsel %vm773_vm1, %v3243_v22, 0.0  ;;  %v3237_v16 = vsel %vm889_vm5, %v4860_v29, 0.0  ;;  %v8727_v36 = vld [vmem:[#allocation41_spill] sm:$0xff]  ;;  %v8036_v22 = vpop.xlane.xlu0 %3228 }
 0x9c7   : > { %v3194_v56 = vsel %vm773_vm1, %v3172_v39, 0.0  ;;  %v3170_v12 = vsel %vm822_vm4, %v8726_v2, 0.0  ;;  %v3234_v15 = vsel %vm889_vm5, %v8726_v2, 0.0 }
 0x9c8   : > { %v3252_v40 = vsel %vm773_vm1, %v3234_v15, 0.0 }
 0x9c9   : > { %3707 = vadd.xlane.f32.xlu0 %v3706_v55  ;;  %3643 = vadd.xlane.f32.xlu1 %v3642_v25  ;;  %v4857_v55 = vld [vmem:[%s8340_s6 + $0x38] sm:$0xff] }
 0x9ca   : > { %v3176_v25 = vsel %vm822_vm4, %v4857_v55, 0.0  ;;  %v3240_v30 = vsel %vm889_vm5, %v4857_v55, 0.0 }
 0x9cb   : > { %v3270_v37 = vsel %vm773_vm1, %v3240_v30, 0.0 }
 0x9cd   : > { %3716 = vadd.xlane.f32.xlu0 %v3715_v19  ;;  %3652 = vadd.xlane.f32.xlu1 %v3651_v23  ;;  %v3206_v19 = vsel %vm773_vm1, %v3176_v25, 0.0  ;;  %v3273_v23 = vsel %vm773_vm1, %v3241_v57, 0.0 }
 0x9d1   : > { %3713 = vadd.xlane.f32.xlu0 %v3712_v33  ;;  %3649 = vadd.xlane.f32.xlu1 %v3648_v13  ;;  %v3239_v33 = vsel %vm889_vm5, %v4858_v3, 0.0  ;;  %v3200_v13 = vsel %vm773_vm1, %v3174_v1, 0.0 }
 0x9d2   : > { %v3267_v41 = vsel %vm773_vm1, %v3239_v33, 0.0 }
 0x9d5   : > { %3722 = vadd.xlane.f32.xlu0 %v3721_v26  ;;  %3658 = vadd.xlane.f32.xlu1 %v3657_v50  ;;  %v3173_v26 = vsel %vm822_vm4, %v4860_v29, 0.0  ;;  %v3238_v50 = vsel %vm889_vm5, %v4859_v60, 0.0 }
 0x9d6   : > { %v3197_v42 = vsel %vm773_vm1, %v3173_v26, 0.0  ;;  %v3264_v31 = vsel %vm773_vm1, %v3238_v50, 0.0 }
 0x9d9   : > { %3719 = vadd.xlane.f32.xlu0 %v3718_v0  ;;  %3655 = vadd.xlane.f32.xlu1 %v3654_v43  ;;  %v3261_v0 = vsel %vm773_vm1, %v3237_v16, 0.0  ;;  %v8725_v43 = vld [vmem:[#allocation42_spill] sm:$0xff] }
 0x9da   : > { %v3171_v54 = vsel %vm822_vm4, %v8725_v43, 0.0  ;;  %v3235_v6 = vsel %vm889_vm5, %v8725_v43, 0.0 }
 0x9dd   : > { %3664 = vadd.xlane.f32.xlu0 %v3663_v5  ;;  %3661 = vadd.xlane.f32.xlu1 %v3660_v21  ;;  %v3236_v5 = vsel %vm889_vm5, %v8724_v62, 0.0  ;;  %v3191_v21 = vsel %vm773_vm1, %v3171_v54, 0.0 }
 0x9de   : > { %v3258_v46 = vsel %vm773_vm1, %v3236_v5, 0.0 }
 0x9e1   : > { %3728 = vadd.xlane.f32.xlu0 %v3727_v20  ;;  %3619 = vadd.xlane.f32.xlu1 %v3618_v27  ;;  %v3188_v20 = vsel %vm773_vm1, %v3170_v12, 0.0  ;;  %v3255_v27 = vsel %vm773_vm1, %v3235_v6, 0.0 }
 0x9e5   : > { %3725 = vadd.xlane.f32.xlu0 %v3724_v52  ;;  %3213 = vadd.xlane.f32.xlu1 %v3212_v32  ;;  %v3169_v32 = vsel %vm822_vm4, %v8727_v36, 0.0  ;;  %v3233_v52 = vsel %vm889_vm5, %v8727_v36, 0.0 }
 0x9e6   : > { %v3185_v51 = vsel %vm773_vm1, %v3169_v32, 0.0  ;;  %v3249_v35 = vsel %vm773_vm1, %v3233_v52, 0.0 }
 0x9e9   : > { %3686 = vadd.xlane.f32.xlu0 %v3685_v7  ;;  %3683 = vadd.xlane.f32.xlu1 %v3682_v61  ;;  %v8038_v7 = vpop.xlane.xlu1 %3225  ;;  %v8040_v61 = vpop.xlane.xlu0 %3295 }
 0x9ed   : > { %3283 = vadd.xlane.f32.xlu0 %v3282_v45  ;;  %3280 = vadd.xlane.f32.xlu1 %v3279_v11  ;;  %v8042_v45 = vpop.xlane.xlu1 %3222  ;;  %v8044_v11 = vpop.xlane.xlu0 %3292 }
 0x9f1   : > { %3210 = vadd.xlane.f32.xlu0 %v3209_v38  ;;  %3277 = vadd.xlane.f32.xlu1 %v3276_v28  ;;  %v8046_v24 = vpop.xlane.xlu1 %3219  ;;  %v8048_v8 = vpop.xlane.xlu0 %3289 }
 0x9f5   : > { %3207 = vadd.xlane.f32.xlu0 %v3206_v19  ;;  %3274 = vadd.xlane.f32.xlu1 %v3273_v23  ;;  %v8050_v59 = vpop.xlane.xlu1 %3216  ;;  %v8052_v38 = vpop.xlane.xlu0 %3286 }
 0x9f9   : > { %3204 = vadd.xlane.f32.xlu0 %v3203_v4  ;;  %3271 = vadd.xlane.f32.xlu1 %v3270_v37 }
 0x9fd   : > { %3201 = vadd.xlane.f32.xlu0 %v3200_v13  ;;  %3268 = vadd.xlane.f32.xlu1 %v3267_v41 }
 0xa01   : > { %3198 = vadd.xlane.f32.xlu0 %v3197_v42  ;;  %3265 = vadd.xlane.f32.xlu1 %v3264_v31 }
 0xa05   : > { %3195 = vadd.xlane.f32.xlu0 %v3194_v56  ;;  %3262 = vadd.xlane.f32.xlu1 %v3261_v0 }
 0xa09   : > { %3192 = vadd.xlane.f32.xlu0 %v3191_v21  ;;  %3259 = vadd.xlane.f32.xlu1 %v3258_v46 }
 0xa0d   : > { %3189 = vadd.xlane.f32.xlu0 %v3188_v20  ;;  %3256 = vadd.xlane.f32.xlu1 %v3255_v27 }
 0xa11   : > { %3186 = vadd.xlane.f32.xlu0 %v3185_v51  ;;  %3250 = vadd.xlane.f32.xlu1 %v3249_v35 }
 0xa15   : > { %3253 = vadd.xlane.f32.xlu0 %v3252_v40 }
 0xa32   : > { %v8054_v28 = vpop.xlane.xlu1 %3622 }
 0xa36   : > { %v8056_v55 = vpop.xlane.xlu1 %3628  ;;  %v8058_v25 = vpop.xlane.xlu0 %3692 }
 0xa37   : > { %v8062_v57 = vmul.f32 %v8056_v55, %v8056_v55 }
 0xa39   : > { %v3749_v19 = vsub.f32 %v8058_v25, %v8062_v57 }
 0xa3a   : > { %v8066_v23 = vpop.xlane.xlu1 %3625  ;;  %v8068_v3 = vpop.xlane.xlu0 %3689 }
 0xa3b   : > { %v8072_v53 = vmul.f32 %v8066_v23, %v8066_v23 }
 0xa3d   : > { %v8728_v14 = vsub.f32 %v8068_v3, %v8072_v53 }
 0xa3e   : > { %v8076_v4 = vpop.xlane.xlu1 %3631  ;;  %v8078_v37 = vpop.xlane.xlu0 %3634 }
 0xa3f   : > { %v3764_v47 = vadd.f32 1e-05, %v8728_v14 }
 0xa42   : > { %v8080_v60 = vpop.xlane.xlu1 %3640  ;;  %v8082_v1 = vpop.xlane.xlu0 %3698 }
 0xa46   : > { %v8084_v33 = vpop.xlane.xlu1 %3637  ;;  %v8086_v13 = vpop.xlane.xlu0 %3695 }
 0xa4a   : > { %v8088_v41 = vpop.xlane.xlu1 %3701  ;;  %v8090_v29 = vpop.xlane.xlu0 %3704 }
 0xa4e   : > { %v8092_v26 = vpop.xlane.xlu1 %3646  ;;  %v3711_v50 = vpop.xlane.xlu0 %3710 }
 0xa4f   : > { %v3739_v32 = vmul.f32 %v8092_v26, %v8092_v26 }
 0xa52   : > { %v8094_v42 = vpop.xlane.xlu1 %3643  ;;  %v3708_v31 = vpop.xlane.xlu0 %3707 }
 0xa56   : > { %v8096_v62 = vpop.xlane.xlu1 %3652  ;;  %v3717_v39 = vpop.xlane.xlu0 %3716 }
 0xa57   : > { %v3741_v0 = vmul.f32 %v8096_v62, %v8096_v62 }
 0xa59   : > { %v3757_v46 = vsub.f32 %v3717_v39, %v3741_v0  ;;  %v3755_v39 = vsub.f32 %v3711_v50, %v3739_v32  ;;  %v3735_v50 = vmul.f32 %v8078_v37, %v8078_v37  ;;  %v3736_v32 = vmul.f32 %v8084_v33, %v8084_v33 }
 0xa5a   : > { %v8098_v16 = vpop.xlane.xlu1 %3649  ;;  %v3714_v56 = vpop.xlane.xlu0 %3713 }
 0xa5b   : > { %v3740_v43 = vmul.f32 %v8098_v16, %v8098_v16  ;;  %v3773_v52 = vadd.f32 1e-05, %v3757_v46 }
 0xa5d   : > { %v3756_v12 = vsub.f32 %v3714_v56, %v3740_v43  ;;  %v3738_v56 = vmul.f32 %v8094_v42, %v8094_v42 }
 0xa5e   : > { %v8104_v54 = vpop.xlane.xlu1 %3658  ;;  %v3723_v5 = vpop.xlane.xlu0 %3722 }
 0xa5f   : > { %v3743_v21 = vmul.f32 %v8104_v54, %v8104_v54  ;;  %v3772_v35 = vadd.f32 1e-05, %v3756_v12  ;;  %v3771_v12 = vadd.f32 1e-05, %v3755_v39  ;;  %v3751_v39 = vsub.f32 %v8082_v1, %v3735_v50 }
 0xa60   : > { %v3752_v1 = vsub.f32 %v8088_v41, %v3736_v32 }
 0xa61   : > { %v3759_v2 = vsub.f32 %v3723_v5, %v3743_v21 }
 0xa62   : > { %v8108_v6 = vpop.xlane.xlu1 %3655  ;;  %v3720_v20 = vpop.xlane.xlu0 %3719 }
 0xa63   : > { %v3775_v27 = vadd.f32 1e-05, %v3759_v2  ;;  %v3742_v36 = vmul.f32 %v8108_v6, %v8108_v6  ;;  %v3737_v2 = vmul.f32 %v8080_v60, %v8080_v60 }
 0xa65   : > { %4696 = vrsqrt.f32 %v3775_v27  ;;  %v3758_v51 = vsub.f32 %v3720_v20, %v3742_v36  ;;  %v3754_v20 = vsub.f32 %v3708_v31, %v3738_v56  ;;  %v3753_v56 = vsub.f32 %v8090_v29, %v3737_v2 }
 0xa66   : > { %v8114_v15 = vpop.xlane.xlu1 %3661  ;;  %v8116_v40 = vpop.xlane.xlu0 %3664  ;;  %4698 = vrsqrt.f32 %v3773_v52 }
 0xa67   : > { %v3774_v0 = vadd.f32 1e-05, %v3758_v51  ;;  %v3745_v43 = vmul.f32 %v8116_v40, %v8116_v40  ;;  %4700 = vrsqrt.f32 %v3772_v35  ;;  %v3744_v27 = vmul.f32 %v8114_v15, %v8114_v15 }
 0xa68   : > { %v3734_v35 = vmul.f32 %v8076_v4, %v8076_v4  ;;  %v3769_v29 = vadd.f32 1e-05, %v3753_v56 }
 0xa69   : > { %4702 = vrsqrt.f32 %v3774_v0  ;;  %v3770_v0 = vadd.f32 1e-05, %v3754_v20  ;;  %v3731_v20 = vmul.f32 %v8054_v28, %v8054_v28 }
 0xa6a   : > { %v8122_v5 = vpop.xlane.xlu1 %3619  ;;  %v3729_v21 = vpop.xlane.xlu0 %3728 }
 0xa6b   : > { %v3761_v46 = vsub.f32 %v3729_v21, %v3745_v43  ;;  %v3765_v43 = vadd.f32 1e-05, %v3749_v19  ;;  %v3750_v21 = vsub.f32 %v8086_v13, %v3734_v35  ;;  %v3768_v19 = vadd.f32 1e-05, %v3752_v1  ;;  %v8729_v13 = vld [vmem:[#allocation47_spill] sm:$0xff]  ;;  %v8731_v1 = vld [vmem:[#allocation40_spill] sm:$0xff] }
 0xa6c   : > { %v3730_v14 = vmul.f32 %v8122_v5, %v8122_v5 }
 0xa6d   : > { %v3777_v36 = vadd.f32 1e-05, %v3761_v46  ;;  %v3766_v25 = vadd.f32 1e-05, %v3750_v21 }
 0xa6e   : > { %v8132_v52 = vpop.xlane.xlu1 %3213  ;;  %v3726_v51 = vpop.xlane.xlu0 %3725 }
 0xa6f   : > { %4704 = vrsqrt.f32 %v3777_v36  ;;  %v3760_v31 = vsub.f32 %v3726_v51, %v3744_v27  ;;  %v3767_v36 = vadd.f32 1e-05, %v3751_v39  ;;  %v3817_v51 = vsub.f32 %v7582_v49, %v8080_v60  ;;  %v8730_v39 = vld [vmem:[#allocation43_spill] sm:$0xff]  ;;  %v8750_v60 = vld [vmem:[#allocation18_spill] sm:$0xff] }
 0xa70   : > { %4706 = vrsqrt.f32 %v3771_v12  ;;  %v3823_v12 = vsub.f32 %v8729_v13, %v8104_v54  ;;  %v3815_v54 = vsub.f32 %v7587_v44, %v8078_v37 }
 0xa71   : > { %v3776_v46 = vadd.f32 1e-05, %v3760_v31  ;;  %v3819_v31 = vsub.f32 %v8730_v39, %v8092_v26  ;;  %v8739_v39 = vld [vmem:[#allocation25_spill] sm:$0xff] }
 0xa72   : > { %v4697_v30 = vpop.eup %4696  ;;  %v3684_v50 = vpop.xlane.xlu1 %3683 }
 0xa73   : > { %v3687_v27 = vpop.xlane.xlu0 %3686  ;;  %4708 = vrsqrt.f32 %v3776_v46  ;;  %v3807_v2 = vmul.f32 %v4697_v30, %v8038_v7  ;;  %v4699_v57 = vpop.eup %4698  ;;  %v3813_v7 = vsub.f32 %v7672_v18, %v8056_v55  ;;  %v3818_v46 = vsub.f32 %v7563_v10, %v8094_v42  ;;  %v8734_v10 = vld [vmem:[#allocation44_spill] sm:$0xff]  ;;  %v8756_v55 = vld [vmem:[#allocation29_spill] sm:$0xff] }
 0xa74   : > { %4710 = vrsqrt.f32 %v3770_v0  ;;  %v4701_v41 = vpop.eup %4700  ;;  %v8160_v35 = vmul.f32 %v4699_v57, %v8046_v24  ;;  %v3747_v56 = vsub.f32 %v3687_v27, %v3731_v20  ;;  %v3820_v24 = vsub.f32 %v7544_v34, %v8098_v16  ;;  %v8733_v27 = vld [vmem:[#allocation46_spill] sm:$0xff]  ;;  %v8735_v16 = vld [vmem:[#allocation35_spill] sm:$0xff] }
 0xa75   : > { %4712 = vrsqrt.f32 %v3765_v43  ;;  %v3839_v30 = vmul.f32 %v3823_v12, %v3807_v2  ;;  %v3804_v0 = vmul.f32 %v4701_v41, %v8050_v59  ;;  %v3824_v57 = vsub.f32 %v8733_v27, %v8114_v15  ;;  %v8736_v12 = vld [vmem:[#allocation36_spill] sm:$0xff] }
 0xa76   : > { %4714 = vrsqrt.f32 %v3764_v47  ;;  %v3281_v3 = vpop.xlane.xlu1 %3280  ;;  %v3746_v47 = vsub.f32 %v3684_v50, %v3730_v14  ;;  %v4703_v32 = vpop.eup %4702  ;;  %v3821_v50 = vsub.f32 %v8731_v1, %v8096_v62  ;;  %v3825_v42 = vsub.f32 %v8734_v10, %v8116_v40 }
 0xa77   : > { %v3284_v53 = vpop.xlane.xlu0 %3283  ;;  %4716 = vrsqrt.f32 %v3767_v36  ;;  %v8732_v36 = vld [vmem:[#allocation45_spill] sm:$0xff]  ;;  %v3855_v26 = vadd.f32 %v3839_v30, %v8048_v8  ;;  %v3806_v59 = vmul.f32 %v4703_v32, %v8042_v45  ;;  %v3884_v8 = vmul.f32 %v3807_v2, %v8736_v12  ;;  %v8738_v32 = vld [vmem:[#allocation23_spill] sm:$0xff] }
 0xa78   : > { %4718 = vrsqrt.f32 %v3769_v29  ;;  %v3822_v29 = vsub.f32 %v8732_v36, %v8108_v6  ;;  %v3837_v34 = vmul.f32 %v3821_v50, %v8160_v35  ;;  %v8185_v6 = vmul.f32 %v8160_v35, %v8735_v16  ;;  %v8737_v30 = vld [vmem:[#allocation37_spill] sm:$0xff] }
 0xa79   : > { %4720 = vrsqrt.f32 %v3766_v25  ;;  %v3763_v14 = vadd.f32 1e-05, %v3747_v56  ;;  %v3836_v15 = vmul.f32 %v3820_v24, %v3804_v0  ;;  %v3879_v1 = vmul.f32 %v3804_v0, %v8739_v39  ;;  %v8741_v24 = vld [vmem:[#allocation26_spill] sm:$0xff] }
 0xa7a   : > { %4722 = vrsqrt.f32 %v3768_v19  ;;  %v8165_v43 = vpop.xlane.xlu1 %3277  ;;  %v3762_v19 = vadd.f32 1e-05, %v3746_v47  ;;  %v3885_v47 = vmul.f32 %v3807_v2, %v8737_v30  ;;  %v3916_v36 = vadd.f32 %v3884_v8, %v3855_v26 }
 0xa7b   : > { %v3211_v21 = vpop.xlane.xlu0 %3210  ;;  %v3852_v27 = vadd.f32 %v3836_v15, %v3281_v3 }
 0xa7c   : > { %v4705_v25 = vpop.eup %4704  ;;  %4724 = vrsqrt.f32 %v3762_v19  ;;  %v3917_v3 = vadd.f32 %v3885_v47, %v3855_v26  ;;  %v8745_v26 = vld [vmem:[#allocation34_spill] sm:$0xff] }
 0xa7d   : > { %v4707_v13 = vpop.eup %4706  ;;  %v3809_v62 = vmul.f32 %v4705_v25, %v8034_v48  ;;  %v3878_v48 = vmul.f32 %v3804_v0, %v8738_v32  ;;  %v3838_v25 = vmul.f32 %v3822_v29, %v3806_v59  ;;  %4726 = vrsqrt.f32 %v3763_v14 }
 0xa7e   : > { %v8189_v45 = vmul.f32 %v4707_v13, %v8132_v52  ;;  %v3275_v41 = vpop.xlane.xlu1 %3274  ;;  %v8740_v13 = vld [vmem:[#allocation28_spill] sm:$0xff]  ;;  %4728 = vtanh.f32 %v3916_v36  ;;  %v3883_v47 = vmul.f32 %v3806_v59, %v8745_v26 }
 0xa7f   : > { %v3208_v20 = vpop.xlane.xlu0 %3207  ;;  %v3841_v40 = vmul.f32 %v3825_v42, %v3809_v62  ;;  %v3888_v56 = vmul.f32 %v3809_v62, %v8740_v13  ;;  %v3889_v16 = vmul.f32 %v3809_v62, %v8741_v24  ;;  %v3853_v42 = vadd.f32 %v3837_v34, %v3284_v53  ;;  %v8744_v34 = vld [vmem:[#allocation27_spill] sm:$0xff] }
 0xa80   : > { %v4709_v50 = vpop.eup %4708  ;;  %v3835_v0 = vmul.f32 %v3819_v31, %v8189_v45  ;;  %v3854_v62 = vadd.f32 %v3838_v25, %v8052_v38  ;;  %v8743_v31 = vld [vmem:[#allocation32_spill] sm:$0xff]  ;;  %v3911_v24 = vadd.f32 %v3879_v1, %v3852_v27 }
 0xa81   : > { %v4711_v10 = vpop.eup %4710  ;;  %v3857_v52 = vadd.f32 %v3841_v40, %v8040_v61  ;;  %v3808_v12 = vmul.f32 %v4709_v50, %v8036_v22  ;;  %v8742_v22 = vld [vmem:[#allocation33_spill] sm:$0xff]  ;;  %v3910_v50 = vadd.f32 %v3878_v48, %v3852_v27 }
 0xa82   : > { %v8198_v2 = vpop.eup %4712  ;;  %v3802_v30 = vmul.f32 %v4711_v10, %v3211_v21  ;;  %v3272_v8 = vpop.xlane.xlu1 %3271  ;;  %v3882_v39 = vmul.f32 %v3806_v59, %v8742_v22  ;;  %v8747_v59 = vld [vmem:[#allocation19_spill] sm:$0xff] }
 0xa83   : > { %v3205_v29 = vpop.xlane.xlu0 %3204  ;;  %v8201_v19 = vpop.eup %4714  ;;  %v3920_v15 = vadd.f32 %v3888_v56, %v3857_v52  ;;  %v3921_v61 = vadd.f32 %v3889_v16, %v3857_v52  ;;  %v3840_v40 = vmul.f32 %v3824_v57, %v3808_v12  ;;  %v3886_v21 = vmul.f32 %v3808_v12, %v8743_v31 }
 0xa84   : > { %v4717_v32 = vpop.eup %4716  ;;  %v3887_v10 = vmul.f32 %v3808_v12, %v8744_v34  ;;  %v3834_v57 = vmul.f32 %v3818_v46, %v3802_v30  ;;  %v3914_v16 = vadd.f32 %v3882_v39, %v3854_v62  ;;  %v3851_v12 = vadd.f32 %v3835_v0, %v8165_v43  ;;  %v8748_v0 = vld [vmem:[#allocation22_spill] sm:$0xff]  ;;  %v8749_v39 = vld [vmem:[#allocation21_spill] sm:$0xff] }
 0xa85   : > { %v4719_v14 = vpop.eup %4718  ;;  %4730 = vtanh.f32 %v3920_v15  ;;  %v3856_v53 = vadd.f32 %v3840_v40, %v8044_v11  ;;  %v8746_v11 = vld [vmem:[#allocation30_spill] sm:$0xff]  ;;  %v3915_v40 = vadd.f32 %v3883_v47, %v3854_v62  ;;  %v3876_v46 = vmul.f32 %v8189_v45, %v8747_v59  ;;  %v8752_v47 = vld [vmem:[#allocation17_spill] sm:$0xff] }
 0xa86   : > { %v4721_v13 = vpop.eup %4720  ;;  %4732 = vtanh.f32 %v3921_v61  ;;  %v3801_v52 = vmul.f32 %v4719_v14, %v3208_v20  ;;  %v3269_v36 = vpop.xlane.xlu1 %3268  ;;  %v3881_v15 = vmul.f32 %v8160_v35, %v8746_v11  ;;  %v3912_v61 = vadd.f32 %v8185_v6, %v3853_v42 }
 0xa87   : > { %v3202_v56 = vpop.xlane.xlu0 %3201  ;;  %v4723_v38 = vpop.eup %4722  ;;  %4734 = vtanh.f32 %v3917_v3  ;;  %v3918_v25 = vadd.f32 %v3886_v21, %v3856_v53  ;;  %v3919_v48 = vadd.f32 %v3887_v10, %v3856_v53  ;;  %v3850_v3 = vadd.f32 %v3834_v57, %v3275_v41 }
 0xa88   : > { %4736 = vtanh.f32 %v3910_v50  ;;  %v3800_v20 = vmul.f32 %v4723_v38, %v3205_v29  ;;  %v3833_v1 = vmul.f32 %v3817_v51, %v3801_v52  ;;  %v3816_v35 = vsub.f32 %v7577_v9, %v8084_v33 }
 0xa89   : > { %4738 = vtanh.f32 %v3918_v25  ;;  %v3913_v43 = vadd.f32 %v3881_v15, %v3853_v42  ;;  %v3877_v62 = vmul.f32 %v8189_v45, %v8748_v0  ;;  %v3908_v29 = vadd.f32 %v3876_v46, %v3851_v12  ;;  %v8223_v41 = vpop.eup %4724 }
 0xa8a   : > { %4740 = vtanh.f32 %v3919_v48  ;;  %v3266_v27 = vpop.xlane.xlu1 %3265  ;;  %v3874_v50 = vmul.f32 %v3802_v30, %v8749_v39  ;;  %v3799_v6 = vmul.f32 %v4717_v32, %v3202_v56  ;;  %v3875_v51 = vmul.f32 %v3802_v30, %v8750_v60  ;;  %v4727_v21 = vpop.eup %4726  ;;  %v8751_v30 = vld [vmem:[#allocation16_spill] sm:$0xff] }
 0xa8b   : > { %v3199_v22 = vpop.xlane.xlu0 %3198  ;;  %4742 = vtanh.f32 %v3911_v24  ;;  %v3909_v49 = vadd.f32 %v3877_v62, %v3851_v12  ;;  %v3832_v14 = vmul.f32 %v3816_v35, %v3800_v20  ;;  %v3849_v9 = vadd.f32 %v3833_v1, %v3272_v8  ;;  %v8759_v39 = vld [vmem:[#allocation8_spill] sm:$0xff] }
 0xa8c   : > { %4744 = vtanh.f32 %v3914_v16  ;;  %v3906_v53 = vadd.f32 %v3874_v50, %v3850_v3  ;;  %v3798_v33 = vmul.f32 %v4721_v13, %v3199_v22  ;;  %v3812_v45 = vsub.f32 %v7682_v63, %v8066_v23  ;;  %v8235_v13 = vpop.eup %4728  ;;  %v8755_v16 = vld [vmem:[#allocation10_spill] sm:$0xff]  ;;  %v8757_v22 = vld [vmem:[#allocation31_spill] sm:$0xff] }
 0xa8d   : > { %4746 = vtanh.f32 %v3915_v40  ;;  %v3814_v32 = vsub.f32 %v7585_v17, %v8076_v4  ;;  %v3907_v10 = vadd.f32 %v3875_v51, %v3850_v3  ;;  %v3872_v26 = vmul.f32 %v3801_v52, %v8751_v30 }
 0xa8e   : > { %4748 = vtanh.f32 %v3912_v61  ;;  %v3263_v42 = vpop.xlane.xlu1 %3262  ;;  %v3831_v8 = vmul.f32 %v3815_v54, %v3799_v6  ;;  %v3873_v57 = vmul.f32 %v3801_v52, %v8752_v47  ;;  %v3848_v63 = vadd.f32 %v3832_v14, %v3269_v36  ;;  %v8754_v54 = vld [vmem:[#allocation9_spill] sm:$0xff] }
 0xa8f   : > { %v3196_v31 = vpop.xlane.xlu0 %3195  ;;  %4750 = vtanh.f32 %v3913_v43  ;;  %v3904_v4 = vadd.f32 %v3872_v26, %v3849_v9  ;;  %v3830_v38 = vmul.f32 %v3814_v32, %v3798_v33  ;;  %v3869_v35 = vmul.f32 %v3799_v6, %v8757_v22 }
 0xa90   : > { %v3797_v34 = vmul.f32 %v8198_v2, %v3196_v31  ;;  %4752 = vtanh.f32 %v3908_v29  ;;  %v8753_v2 = vld [vmem:[#allocation20_spill] sm:$0xff]  ;;  %v3905_v18 = vadd.f32 %v3873_v57, %v3849_v9  ;;  %v3847_v15 = vadd.f32 %v3831_v8, %v3266_v27 }
 0xa91   : > { %4754 = vtanh.f32 %v3909_v49  ;;  %v3870_v56 = vmul.f32 %v3800_v20, %v8753_v2  ;;  %v8758_v29 = vld [vmem:[#allocation24_spill] sm:$0xff]  ;;  %v8760_v49 = vld [vmem:[#allocation7_spill] sm:$0xff]  ;;  %v3811_v26 = vsub.f32 %v7728_v58, %v8054_v28 }
 0xa92   : > { %v3829_v17 = vmul.f32 %v3813_v7, %v3797_v34  ;;  %v4731_v23 = vpop.eup %4730  ;;  %4756 = vtanh.f32 %v3906_v53  ;;  %v3260_v25 = vpop.xlane.xlu1 %3259  ;;  %v3864_v24 = vmul.f32 %v3797_v34, %v8754_v54  ;;  %v3865_v11 = vmul.f32 %v3797_v34, %v8755_v16  ;;  %v8761_v53 = vld [vmem:[#allocation11_spill] sm:$0xff]  ;;  %v8762_v31 = vld [vmem:[#allocation12_spill] sm:$0xff] }
 0xa93   : > { %v3193_v48 = vpop.xlane.xlu0 %3192  ;;  %v4733_v44 = vpop.eup %4732  ;;  %4758 = vtanh.f32 %v3907_v10  ;;  %v3871_v7 = vmul.f32 %v3800_v20, %v8756_v55  ;;  %v3902_v40 = vadd.f32 %v3870_v56, %v3848_v63  ;;  %v3868_v20 = vmul.f32 %v3799_v6, %v8758_v29  ;;  %v8766_v16 = vld [vmem:[#allocation48_spill] sm:$0xff] }
 0xa94   : > { %v3845_v37 = vadd.f32 %v3829_v17, %v3260_v25  ;;  %v3796_v52 = vmul.f32 %v8201_v19, %v3193_v48  ;;  %v4735_v36 = vpop.eup %4734  ;;  %3955 = vmatprep.subr.mxu1 %v4733_v44  ;;  %4760 = vtanh.f32 %v3904_v4  ;;  %v3846_v19 = vadd.f32 %v3830_v38, %v3263_v42  ;;  %v8764_v25 = vld [vmem:[#allocation14_spill] sm:$0xff]  ;;  %v8765_v44 = vld [vmem:[#allocation13_spill] sm:$0xff] }
 0xa95   : > { %v8246_v12 = vpop.eup %4736  ;;  %3956 = vmatpush1.msra.mxu1 %v4731_v23  ;;  %v3903_v1 = vadd.f32 %v3871_v7, %v3848_v63  ;;  %4762 = vtanh.f32 %v3905_v18  ;;  %v3901_v14 = vadd.f32 %v3869_v35, %v3847_v15  ;;  %v3866_v9 = vmul.f32 %v3798_v33, %v8761_v53  ;;  %v8763_v63 = vld [vmem:[#allocation38_spill] sm:$0xff]  ;;  %v8767_v18 = vld [vmem:[#allocation15_spill] sm:$0xff] }
 0xa96   : > { %v3896_v59 = vadd.f32 %v3864_v24, %v3845_v37  ;;  %v3897_v46 = vadd.f32 %v3865_v11, %v3845_v37  ;;  %v3828_v61 = vmul.f32 %v3812_v45, %v3796_v52  ;;  %v4739_v3 = vpop.eup %4738  ;;  %v3257_v43 = vpop.xlane.xlu1 %3256  ;;  %v3862_v50 = vmul.f32 %v3796_v52, %v8759_v39  ;;  %v4034_v39 = vld [vmem:[%s8342_s8] sm:$0xff] }
 0xa97   : > { %v3190_v0 = vpop.xlane.xlu0 %3189  ;;  %v4741_v62 = vpop.eup %4740  ;;  %v3863_v60 = vmul.f32 %v3796_v52, %v8760_v49  ;;  %v3867_v45 = vmul.f32 %v3798_v33, %v8762_v31  ;;  %v3900_v42 = vadd.f32 %v3868_v20, %v3847_v15  ;;  %4764 = vtanh.f32 %v3903_v1  ;;  %v3954_v20 = vld [vmem:[%s8341_s7] sm:$0xff] }
 0xa98   : > { %v3844_v27 = vadd.f32 %v3828_v61, %v3257_v43  ;;  %v4743_v51 = vpop.eup %4742  ;;  %3957 = vmatprep.subr.mxu1 %v4741_v62  ;;  %v3795_v30 = vmul.f32 %v4727_v21, %v3190_v0  ;;  %v3810_v17 = vsub.f32 %v8763_v63, %v8122_v5  ;;  %4766 = vtanh.f32 %v3902_v40 }
 0xa99   : > { %v4745_v32 = vpop.eup %4744  ;;  %3958 = vmatpush1.msra.mxu1 %v4739_v3  ;;  %v3899_v8 = vadd.f32 %v3867_v45, %v3846_v19  ;;  %v3898_v33 = vadd.f32 %v3866_v9, %v3846_v19  ;;  %4768 = vtanh.f32 %v3901_v14  ;;  %v4035_v49 = vsel %vm754_vm0, %v4034_v39, 0.0 }
 0xa9a   : > { %v3894_v34 = vadd.f32 %v3862_v50, %v3844_v27  ;;  %v3895_v10 = vadd.f32 %v3863_v60, %v3844_v27  ;;  %v4747_v6 = vpop.eup %4746  ;;  %3959 = vmatprep.subr.mxu1 %v4735_v36  ;;  %4770 = vtanh.f32 %v3900_v42  ;;  %v3251_v58 = vpop.xlane.xlu1 %3250  ;;  %v3827_v2 = vmul.f32 %v3811_v26, %v3795_v30 }
 0xa9b   : > { %v3187_v47 = vpop.xlane.xlu0 %3186  ;;  %v4749_v57 = vpop.eup %4748  ;;  %3960 = vmatpush1.msra.mxu1 %v8235_v13  ;;  %4772 = vtanh.f32 %v3899_v8  ;;  %v3860_v13 = vmul.f32 %v3795_v30, %v8764_v25  ;;  %v3861_v37 = vmul.f32 %v3795_v30, %v8765_v44  ;;  %v4036_v60 = vsel %vm773_vm1, %v4035_v49, 0.0 }
 0xa9c   : > { %v3794_v23 = vmul.f32 %v8223_v41, %v3187_v47  ;;  %v4751_v21 = vpop.eup %4750  ;;  %3961 = vmatprep.subr.mxu1 %v4747_v6  ;;  %4774 = vtanh.f32 %v3898_v33  ;;  %4037 = vadd.xlane.f32.xlu0 %v4036_v60 }
 0xa9d   : > { %v4753_v4 = vpop.eup %4752  ;;  %3962 = vmatpush1.msra.mxu1 %v4745_v32  ;;  %4776 = vtanh.f32 %v3897_v46 }
 0xa9e   : > { %v3826_v28 = vmul.f32 %v3810_v17, %v3794_v23  ;;  %v4755_v56 = vpop.eup %4754  ;;  %3963 = vmatprep.subr.mxu1 %v4751_v21  ;;  %4778 = vtanh.f32 %v3896_v59  ;;  %v3859_v11 = vmul.f32 %v3794_v23, %v8766_v16  ;;  %v3858_v55 = vmul.f32 %v3794_v23, %v8767_v18 }
 0xa9f   : > { %v3254_v38 = vpop.xlane.xlu0 %3253  ;;  %v4757_v5 = vpop.eup %4756  ;;  %3964 = vmatpush1.msra.mxu1 %v4749_v57  ;;  %4780 = vtanh.f32 %v3895_v10 }
 0xaa0   : > { %v3843_v48 = vadd.f32 %v3827_v2, %v3254_v38  ;;  %v3842_v41 = vadd.f32 %v3826_v28, %v3251_v58  ;;  %3965 = vmatprep.subr.mxu1 %v4743_v51  ;;  %v4759_v54 = vpop.eup %4758  ;;  %4782 = vtanh.f32 %v3894_v34  ;;  %v4043_v58 = vsel %vm889_vm5, %v4034_v39, 0.0 }
 0xaa1   : > { %3966 = vmatpush1.msra.mxu1 %v8246_v12  ;;  %v4761_v36 = vpop.eup %4760  ;;  %v4044_v38 = vsel %vm773_vm1, %v4043_v58, 0.0 }
 0xaa2   : > { %v3892_v24 = vadd.f32 %v3860_v13, %v3843_v48  ;;  %v3893_v52 = vadd.f32 %v3861_v37, %v3843_v48  ;;  %3967 = vmatprep.subr.mxu1 %v4755_v56  ;;  %v3891_v7 = vadd.f32 %v3859_v11, %v3842_v41  ;;  %v4763_v15 = vpop.eup %4762  ;;  %v3890_v40 = vadd.f32 %v3858_v55, %v3842_v41 }
 0xaa3   : > { %3968 = vmatpush1.msra.mxu1 %v4753_v4  ;;  %v4039_v4 = vsel %vm822_vm4, %v4034_v39, 0.0 }
 0xaa4   : > { %3969 = vmatprep.subr.mxu1 %v4759_v54  ;;  %4784 = vtanh.f32 %v3892_v24  ;;  %v4765_v59 = vpop.eup %4764  ;;  %v4040_v56 = vsel %vm773_vm1, %v4039_v4, 0.0 }
 0xaa5   : > { %3970 = vmatpush1.msra.mxu1 %v4757_v5  ;;  %4786 = vtanh.f32 %v3893_v52  ;;  %v4767_v12 = vpop.eup %4766 }
 0xaa6   : > { %3971 = vmatprep.subr.mxu1 %v4763_v15  ;;  %4788 = vtanh.f32 %v3891_v7  ;;  %v4769_v46 = vpop.eup %4768 }
 0xaa7   : > { %3972 = vmatpush1.msra.mxu1 %v4761_v36  ;;  %4790 = vtanh.f32 %v3890_v40  ;;  %v4771_v61 = vpop.eup %4770 }
 0xaa8   : > { %3973 = vmatprep.subr.mxu1 %v4765_v59  ;;  %v4773_v3 = vpop.eup %4772 }
 0xaa9   : > { %3974 = vmatpush1.msra.mxu1 %v4767_v12  ;;  %v4775_v1 = vpop.eup %4774 }
 0xaaa   : > { %3975 = vmatprep.subr.mxu1 %v4769_v46  ;;  %v4777_v22 = vpop.eup %4776 }
 0xaab   : > { %3976 = vmatpush1.msra.mxu1 %v4771_v61  ;;  %v4779_v35 = vpop.eup %4778 }
 0xaac   : > { %3977 = vmatprep.subr.mxu1 %v4773_v3  ;;  %v4781_v19 = vpop.eup %4780 }
 0xaad   : > { %3978 = vmatpush1.msra.mxu1 %v4775_v1  ;;  %v4783_v43 = vpop.eup %4782 }
 0xaae   : > { %3979 = vmatprep.subr.mxu1 %v4777_v22 }
 0xaaf   : > { %3980 = vmatpush1.msra.mxu1 %v4779_v35 }
 0xab0   : > { %3981 = vmatprep.subr.mxu1 %v4781_v19 }
 0xab1   : > { %3982 = vmatpush1.msra.mxu1 %v4783_v43  ;;  %v4785_v0 = vpop.eup %4784 }
 0xab2   : > { %v4787_v62 = vpop.eup %4786 }
 0xab3   : > { %3983 = vmatprep.subr.mxu1 %v4787_v62  ;;  %v4789_v29 = vpop.eup %4788 }
 0xab4   : > { %3984 = vmatpush1.msra.mxu1 %v4785_v0  ;;  %v4791_v27 = vpop.eup %4790 }
 0xab5   : > { %3985 = vmatprep.subr.mxu1 %v4789_v29 }
 0xab6   : > { %3986 = vmatpush1.msra.mxu1 %v4791_v27 }
 0xab7   : > { %4020 = vmatmul.mubr.f32.vlgmr.msra.gmra.mxu1 %v3954_v20 }
 0xb25   : > { %v4038_v32 = vpop.xlane.xlu0 %4037 }
 0xb26   : > { %v4049_v42 = vmul.f32 2.0, %v4038_v32  ;;  %v4052_v34 = vmul.f32 %v4038_v32, %v4038_v32  ;;  %v4047_v30 = vmul.f32 256.0, %v4038_v32 }
 0xb28   : > { %v4053_v8 = vmul.f32 256.0, %v4052_v34 }
 0xb77   : > { %v4021_v51 = vpop.f32.mrf.mxu1 }
 0xb78   : > { %v4029_v53 = vmul.f32 %v4021_v51, %v4021_v51 }
 0xb79   : > { %v4023_v14 = vpop.f32.mrf.mxu1 }
 0xb7a   : > { %v4026_v9 = vadd.f32 %v4023_v14, %v4021_v51  ;;  %v4030_v31 = vmul.f32 %v4023_v14, %v4023_v14 }
 0xb7c   : > { %v4031_v45 = vadd.f32 %v4030_v31, %v4029_v53  ;;  %4027 = vadd.xlane.f32.xlu1 %v4026_v9 }
 0xb7e   : > { %4032 = vadd.xlane.f32.xlu0 %v4031_v45 }
 0xc05   : > { %v4028_v10 = vpop.xlane.xlu1 %4027 }
 0xc06   : > { %v4050_v6 = vmul.f32 %v4049_v42, %v4028_v10  ;;  %v4048_v57 = vadd.f32 %v4047_v30, %v4028_v10 }
 0xc07   : > { %v4033_v26 = vpop.xlane.xlu0 %4032 }
 0xc08   : > { %v4051_v47 = vadd.f32 %v4050_v6, %v4033_v26 }
 0xc0a   : > { %v4054_v63 = vadd.f32 %v4053_v8, %v4051_v47 }
 0xc0c   : > { %v4055_v17 = vsel %vm754_vm0, %v4048_v57, %v4054_v63 }
 0xc0d   : > { %v4056_v33 = vmul.f32 0.00390625, %v4055_v17 }
 0xc0f   : > { %v4057_v23 = vsel %vm754_vm0, %v4056_v33, 0.0  ;;  %v4061_v21 = vsel %vm822_vm4, %v4056_v33, 0.0 }
 0xc10   : > { %v4058_v28 = vsel %vm1277_vm6, %v4057_v23, 0.0  ;;  %v4062_v2 = vsel %vm1277_vm6, %v4061_v21, 0.0 }
 0xc11   : > { %4059 = vadd.xlane.f32.xlu1 %v4058_v28  ;;  %4063 = vadd.xlane.f32.xlu0 %v4062_v2 }
 0xc15   : > { %4041 = vadd.xlane.f32.xlu1 %v4040_v56  ;;  %4045 = vadd.xlane.f32.xlu0 %v4044_v38 }
 0xc9a   : > { %v4060_v5 = vpop.xlane.xlu1 %4059  ;;  %v4064_v13 = vpop.xlane.xlu0 %4063 }
 0xc9b   : > { %v4065_v25 = vmul.f32 %v4060_v5, %v4060_v5  ;;  %v4070_v54 = vsub.f32 %v4038_v32, %v4060_v5 }
 0xc9d   : > { %v4066_v48 = vsub.f32 %v4064_v13, %v4065_v25 }
 0xc9e   : > { %v4042_v44 = vpop.xlane.xlu1 %4041  ;;  %v4046_v16 = vpop.xlane.xlu0 %4045 }
 0xc9f   : > { %v4067_v41 = vadd.f32 1e-05, %v4066_v48 }
 0xca1   : > { %4792 = vrsqrt.f32 %v4067_v41 }
 0xcae   : > { %v4793_v37 = vpop.eup %4792 }
 0xcaf   : > { %v4069_v24 = vmul.f32 %v4793_v37, %v4042_v44 }
 0xcb1   : > { %v4071_v11 = vmul.f32 %v4070_v54, %v4069_v24  ;;  %v4073_v36 = vmul.f32 %v4069_v24, %v4021_v51  ;;  %v4074_v18 = vmul.f32 %v4069_v24, %v4023_v14 }
 0xcb3   : > { %v4072_v52 = vadd.f32 %v4071_v11, %v4046_v16 }
 0xcb5   : > { %v4075_v55 = vadd.f32 %v4073_v36, %v4072_v52  ;;  %v4076_v7 = vadd.f32 %v4074_v18, %v4072_v52 }
 0xcb7   : > { %v4190_v15 = vmul.f32 -1.442695, %v4075_v55  ;;  %v4191_v40 = vmul.f32 -1.442695, %v4076_v7 }
 0xcb9   : > { %4794 = vpow2.f32 %v4190_v15 }
 0xcba   : > { %4796 = vpow2.f32 %v4191_v40 }
 0xcc6   : > { %v4795_v59 = vpop.eup %4794 }
 0xcc7   : > { %v4797_v12 = vpop.eup %4796  ;;  %v4083_v46 = vadd.f32 1.0, %v4795_v59 }
 0xcc8   : > { %v4084_v61 = vadd.f32 1.0, %v4797_v12 }
 0xcc9   : > { %4798 = vrcp.f32 %v4083_v46 }
 0xcca   : > { %4800 = vrcp.f32 %v4084_v61 }
 0xcd6   : > { %v4799_v3 = vpop.eup %4798 }
 0xcd7   : > { %v4801_v1 = vpop.eup %4800  ;;  %4089 = vst [vmem:[%s352_s27] sm:$0xff] %v4799_v3 }
 0xcd8   : > { %4090 = vst [vmem:[%s352_s27 + $0x8] sm:$0xff] %v4801_v1 }
 0xcd9   : > { %4874 = shalt.err (!%p4871_p3)
}
 0xcda   : > { %s4875_s26 = scalar_lea.hbm %s8293_s11, 256  ;;  %s4879_s29 = scalar_lea.hbm %s8344_s10, 512 }
 0xcdb   : > { %p4876_p4 = scmp.ne.s32.totalorder %s8293_s11, %s4875_s26  ;;  %p4880_p9 = scmp.lt.s32.totalorder %s8293_s11, %s8344_s10 }
 0xcdc   : > { %p4881_p10 = scmp.lt.s32.totalorder %s4879_s29, %s4875_s26 }
 0xcdd   : > { %p4877_p7 = pnand %p4876_p4, %p5018_p5 }
 0xcde   : > { %p4882_p11 = por %p4881_p10, %p4880_p9 }
 0xcdf   : > { %p4878_p8 = pneg %p4877_p7 }
 0xce1   : > { %p4883_p12 = pnand %p4882_p11, %p4878_p8 }
 0xce3   : > { %4886 = shalt.err (!%p4883_p12)
}
 0xce4   : > { %4463 = dma.vmem_to_hbm [thread:$0]  (%p5018_p5), %s8295_s28, 256, %s8293_s11, %s4092_s12  }
 0xce5 PF: > { %p4469_p13 = scmp.ge.s32.totalorder %s4921_s16, 2  ;;  %s4118_s18 = sand.u32 1, %s4909_s13  }
 0xce6   : > { %s4119_s20 = scalar_lea.sflag [#allocation3], %s4118_s18 }
 0xce7   : > { %p4466_p0 = pnand %p4469_p13, %p5022_p6 }
 0xce9   : > { %p4467_p1 = pneg %p4466_p0 }
 0xceb   : > { %4904 = dma.done.wait (%p4467_p1), %s4119_s20, 256  }
 0xcec   : > { %4906 = vsyncadd (%p4467_p1), %s4119_s20, 4294967040  ;;  %p20_p2 = scmp.ge.s32.totalorder %s5005_s19, 4   ;;  %s8769_s13 = smov %s4913_s14 }
 0xced   : > { %s8770_s14 = smov %s4917_s15  ;;  %s8771_s15 = smov %s5016_s22 }
 0xcee   : > { %s8772_s16 = smov %s5005_s19  ;;  %22 = sbr.rel (!%p20_p2) target bundleno = 3 (0x3), region = 95 }
 0xcf3   :  { %4124 = vsyncpa [#allocation3], 1 }
 0xcf4   :  { %4126 = vsyncpa [#allocation3 + $0x1], 1 }

</bundles_post_ra>
